<compile_context>
chip_gen: v7x
topology: tpu7x:2x2x1
jax: 0.10.0
libtpu: 0.0.40
codegen_flags: <defaults>
</compile_context>

<pallas_src>
import functools

import jax
import jax.numpy as jnp
from jax.experimental import pallas as pl
from jax.experimental.pallas import tpu as pltpu


# ---------------------------------------------------------------------------
# fused StockPool forward kernel (processes GB graphs per grid step)
# ---------------------------------------------------------------------------
def _make_stockpool_kernel(F, H, N, C1, C2):
    f32 = jnp.float32
    H2 = 2 * N
    # row offsets inside the packed head buffer (every segment 8-row aligned)
    BL1_ROW = H
    W2_ROW = H + 8
    BL2_ROW = H + 8 + H2

    def kernel(x_ref, adj_ref, wb_ref, s1t_ref, s2t_ref, head_ref, o_ref):
        gb = x_ref.shape[0]                      # graphs handled this step

        def bmm(a, b):
            """[GB,i,j] @ [GB,j,k] -> [GB,i,k]  (canonical batched matmul)."""
            return jax.lax.dot_general(
                a, b, (((2,), (1,)), ((0,), (0,))), preferred_element_type=f32)

        def bmm_rt(a, b):
            """[GB,i,j] x [GB,k,j] -> [GB,i,k]  (contract both minor dims)."""
            return jax.lax.dot_general(
                a, b, (((2,), (2,)), ((0,), (0,))), preferred_element_type=f32)

        def node_matmul(h, w):
            """Per-node dense layer h @ w, h [GB, n, fi], w [fi, fo]."""
            _, n, fi = h.shape
            fo = w.shape[1]
            if n % 8 == 0:
                # layout-preserving flatten -> one sublane-dense MXU matmul
                out = jnp.dot(h.reshape(gb * n, fi), w,
                              preferred_element_type=f32)
                return out.reshape(gb, n, fo)
            # tiny pooled level (n < 8): batched matmul against broadcast W
            return bmm(h, jnp.broadcast_to(w, (gb, fi, fo)))

        def gcn_norm(adj):
            """Binarize + self loops; return A_hat and rsqrt(row degree).

            Assumes a symmetric adjacency (undirected edge_index), so
            D^-1/2 A_hat D^-1/2 h == r * (A_hat @ (r * h)) with r = rsqrt(deg).
            """
            n = adj.shape[-1]
            row = jax.lax.broadcasted_iota(jnp.int32, (n, n), 0)
            col = jax.lax.broadcasted_iota(jnp.int32, (n, n), 1)
            abin = (adj != 0).astype(f32)
            ahat = jnp.where(row == col, 1.0, abin)        # force self loops
            deg = jnp.sum(ahat, axis=-1, keepdims=True)    # [GB, n, 1]
            return ahat, jax.lax.rsqrt(deg)

        def gcn_layer(ahat, r, h, w, b):
            hw = node_matmul(h, w)
            msg = bmm(ahat, r * hw)
            return jnp.maximum(r * msg + b, 0.0)

        def gcn_block(ahat, r, h, layer_ids, fin0):
            fins = (fin0, H, H)
            for l, fin in zip(layer_ids, fins):
                wb_l = wb_ref[l]                 # [H+1, H]: weight rows + bias
                w = wb_l[:fin, :]
                b = wb_l[H:H + 1, :]
                h = gcn_layer(ahat, r, h, w, b)
            return h

        def pool(h, adj, st):
            """st = S^T [c, n]; softmax over clusters; s^T x and s^T adj s."""
            c, n = st.shape
            m = jnp.max(st, axis=0, keepdims=True)
            e = jnp.exp(st - m)
            pt = e * pl.reciprocal(jnp.sum(e, axis=0, keepdims=True),
                                   approx=True)            # [c, n], EUP recip
            ptb = jnp.broadcast_to(pt, (gb, c, n))
            out_x = bmm(ptb, h)                             # s^T x
            out_adj = bmm_rt(bmm(ptb, adj), ptb)            # s^T adj s
            return out_x, out_adj

        # --- level 0 : original graphs -----------------------------------
        adj0 = adj_ref[...]
        ahat0, r0 = gcn_norm(adj0)                          # hoisted, reused x3
        h = gcn_block(ahat0, r0, x_ref[...], (0, 1, 2), F)

        # --- pool 1 + level 1 ---------------------------------------------
        h, adj1 = pool(h, adj0, s1t_ref[...])
        ahat1, r1 = gcn_norm(adj1)
        h = gcn_block(ahat1, r1, h, (3, 4, 5), H)

        # --- pool 2 + level 2 ---------------------------------------------
        h, adj2 = pool(h, adj1, s2t_ref[...])
        ahat2, r2 = gcn_norm(adj2)
        h = gcn_block(ahat2, r2, h, (6, 7, 8), H)

        # --- head: mean -> Linear -> ReLU -> Linear -> sigmoid -------------
        m = jnp.mean(h, axis=1)                             # [GB, H]
        wl1 = head_ref[:H, :]                               # [H, 2N]
        bl1 = head_ref[BL1_ROW:BL1_ROW + 1, :]              # [1, 2N]
        wl2 = head_ref[W2_ROW:W2_ROW + H2, :N]              # [2N, N]
        bl2 = head_ref[BL2_ROW:BL2_ROW + 1, :N]             # [1, N]
        z = jnp.maximum(
            jnp.dot(m, wl1, preferred_element_type=f32) + bl1, 0.0)
        z = jnp.dot(z, wl2, preferred_element_type=f32) + bl2
        o_ref[...] = pl.reciprocal(1.0 + jnp.exp(-z), approx=True)  # sigmoid

    return kernel


# ---------------------------------------------------------------------------
# one-time parameter packing (outside the jitted forward)
# ---------------------------------------------------------------------------
def stockpool_prepare(params, num_features, hidden, num_nodes):
    F, H, N = num_features, hidden, num_nodes
    H2 = 2 * N
    layers = list(params["gnn1"]) + list(params["gnn2"]) + list(params["gnn3"])
    blocks = []
    for (w, b) in layers:
        w_pad = jnp.zeros((H, H), jnp.float32).at[: w.shape[0], :].set(w)
        blocks.append(jnp.concatenate([w_pad, b], axis=0))   # [H+1, H]
    gnn_wb = jnp.stack(blocks)                                # [9, H+1, H]

    head = jnp.zeros((H + H2 + 16, H2), jnp.float32)          # 8-row aligned
    head = head.at[:H, :].set(params["w1"])
    head = head.at[H, :].set(params["b1"][0])
    head = head.at[H + 8:H + 8 + H2, :N].set(params["w2"])
    head = head.at[H + 8 + H2, :N].set(params["b2"][0])

    return {
        "gnn_wb": gnn_wb,
        "s1t": jnp.transpose(params["S1"]),                   # [C1, N]
        "s2t": jnp.transpose(params["S2"]),                   # [C2, C1]
        "head": head,
    }


# ---------------------------------------------------------------------------
# batched forward: one pallas_call, grid over graphs
# ---------------------------------------------------------------------------
@functools.partial(jax.jit, static_argnames=("graphs_per_block",))
def stockpool_forward(x, adj, packed, *, graphs_per_block=8):
    """x: [B, N, F], adj: [B, N, N] (symmetric) -> sigmoid logits [B, N]."""
    B, N, F = x.shape
    GB = graphs_per_block
    nine, Hp1, H = packed["gnn_wb"].shape
    C1 = packed["s1t"].shape[0]
    C2 = packed["s2t"].shape[0]
    H2 = 2 * N
    head_rows = packed["head"].shape[0]

    assert B % GB == 0
    assert GB % 8 == 0 or GB == B   # keep the 2-D output block tile-aligned

    kernel = _make_stockpool_kernel(F, H, N, C1, C2)

    return pl.pallas_call(
        kernel,
        out_shape=jax.ShapeDtypeStruct((B, N), jnp.float32),
        grid=(B // GB,),
        in_specs=[
            pl.BlockSpec((GB, N, F), lambda b: (b, 0, 0)),    # per-graph data
            pl.BlockSpec((GB, N, N), lambda b: (b, 0, 0)),
            # shared parameters: constant index maps -> stay VMEM-resident
            pl.BlockSpec((nine, Hp1, H), lambda b: (0, 0, 0)),
            pl.BlockSpec((C1, N), lambda b: (0, 0)),
            pl.BlockSpec((C2, C1), lambda b: (0, 0)),
            pl.BlockSpec((head_rows, H2), lambda b: (0, 0)),
        ],
        out_specs=pl.BlockSpec((GB, N), lambda b: (b, 0)),
        compiler_params=pltpu.CompilerParams(
            dimension_semantics=("parallel",)),               # megacore on v7x
    )(x, adj, packed["gnn_wb"], packed["s1t"], packed["s2t"], packed["head"])


# ---------------------------------------------------------------------------
# pure-JAX reference (same math, no Pallas) for a sanity check
# ---------------------------------------------------------------------------
def _gcn_norm_ref(adj):
    n = adj.shape[0]
    abin = (adj != 0).astype(jnp.float32)
    ahat = jnp.where(jnp.eye(n, dtype=bool), 1.0, abin)
    dr = jnp.sum(ahat, axis=1, keepdims=True)
    dc = jnp.sum(ahat, axis=0, keepdims=True)
    return jax.lax.rsqrt(dr) * ahat * jax.lax.rsqrt(dc)


def _gcn_layer_ref(anorm, x, w, b):
    hp = jax.lax.Precision.HIGHEST
    xw = jnp.dot(x, w, precision=hp)
    return jnp.maximum(jnp.dot(anorm, xw, precision=hp) + b, 0.0)


def _pool_ref(x, adj, s):
    hp = jax.lax.Precision.HIGHEST
    p = jax.nn.softmax(s, axis=-1)
    out = jnp.dot(p.T, x, precision=hp)
    out_adj = jnp.dot(jnp.dot(p.T, adj, precision=hp), p, precision=hp)
    return out, out_adj


def stockpool_forward_ref(x, adj, params):
    hp = jax.lax.Precision.HIGHEST
    h = x
    anorm = _gcn_norm_ref(adj)
    for (w, b) in params["gnn1"]:
        h = _gcn_layer_ref(anorm, h, w, b)
    h, adj1 = _pool_ref(h, adj, params["S1"])
    anorm1 = _gcn_norm_ref(adj1)
    for (w, b) in params["gnn2"]:
        h = _gcn_layer_ref(anorm1, h, w, b)
    h, adj2 = _pool_ref(h, adj1, params["S2"])
    anorm2 = _gcn_norm_ref(adj2)
    for (w, b) in params["gnn3"]:
        h = _gcn_layer_ref(anorm2, h, w, b)
    m = jnp.mean(h, axis=0, keepdims=True)
    hdn = jnp.maximum(jnp.dot(m, params["w1"], precision=hp) + params["b1"], 0.0)
    z = jnp.dot(hdn, params["w2"], precision=hp) + params["b2"]
    return jax.nn.sigmoid(z)[0]


# ---------------------------------------------------------------------------
# deterministic parameter / input construction
# ---------------------------------------------------------------------------
def make_params(key, num_features, hidden, num_nodes, c1, c2):
    ks = list(jax.random.split(key, 16))

    def lin(k, fan_in, fan_out):
        scale = (2.0 / (fan_in + fan_out)) ** 0.5
        w = scale * jax.random.normal(k, (fan_in, fan_out), jnp.float32)
        b = jnp.zeros((1, fan_out), jnp.float32)
        return w, b

    params = {
        "gnn1": [
            lin(ks[0], num_features, hidden),
            lin(ks[1], hidden, hidden),
            lin(ks[2], hidden, hidden),
        ],
        "gnn2": [
            lin(ks[3], hidden, hidden),
            lin(ks[4], hidden, hidden),
            lin(ks[5], hidden, hidden),
        ],
        "gnn3": [
            lin(ks[6], hidden, hidden),
            lin(ks[7], hidden, hidden),
            lin(ks[8], hidden, hidden),
        ],
        "S1": jax.random.normal(ks[9], (num_nodes, c1), jnp.float32),
        "S2": jax.random.normal(ks[10], (c1, c2), jnp.float32),
    }
    w1, b1 = lin(ks[11], hidden, num_nodes * 2)
    w2, b2 = lin(ks[12], num_nodes * 2, num_nodes)
    params.update({"w1": w1, "b1": b1, "w2": w2, "b2": b2})
    return params


if __name__ == "__main__":
    NUM_NODES = 16      # stocks per graph
    NUM_FEATURES = 8
    HIDDEN = 32
    C1 = 8              # sub-industry clusters (columns of S_subindustry)
    C2 = 4              # industry clusters    (columns of S_industry)
    BATCH = 16          # graphs per forward
    GB = 8              # graphs per grid step  -> grid = (2,)

    key = jax.random.PRNGKey(0)
    kx, ka, kp = jax.random.split(key, 3)

    x = jax.random.normal(kx, (BATCH, NUM_NODES, NUM_FEATURES), jnp.float32)
    r = jax.random.uniform(ka, (BATCH, NUM_NODES, NUM_NODES), jnp.float32)
    adj = (r < 0.3).astype(jnp.float32)
    adj = jnp.maximum(adj, jnp.swapaxes(adj, -1, -2))   # symmetric per graph

    params = make_params(kp, NUM_FEATURES, HIDDEN, NUM_NODES, C1, C2)
    packed = stockpool_prepare(params, NUM_FEATURES, HIDDEN, NUM_NODES)

    out = stockpool_forward(x, adj, packed, graphs_per_block=GB)
    out = jax.block_until_ready(out)

    ref = jax.vmap(lambda xg, ag: stockpool_forward_ref(xg, ag, params))(x, adj)
    assert out.shape == (BATCH, NUM_NODES)
    err = float(jnp.max(jnp.abs(out - ref)))
    # tolerance covers default-precision MXU matmuls + approx EUP reciprocals
    assert err < 2e-2, f"Pallas output diverges from reference (max|diff|={err})"

    print("KERNEL_OK")
</pallas_src>

<mosaic_0001>
module attributes {stable_mosaic.version = 11 : i64} {
  func.func @kernel(%arg0: i32, %arg1: memref<8x16x8xf32, #tpu.memory_space<vmem>>, %arg2: memref<8x16x16xf32, #tpu.memory_space<vmem>>, %arg3: memref<9x33x32xf32, #tpu.memory_space<vmem>>, %arg4: memref<8x16xf32, #tpu.memory_space<vmem>>, %arg5: memref<4x8xf32, #tpu.memory_space<vmem>>, %arg6: memref<80x32xf32, #tpu.memory_space<vmem>>, %arg7: memref<8x16xf32, #tpu.memory_space<vmem>>) attributes {dimension_semantics = [#tpu.dimension_semantics<parallel>], iteration_bounds = array<i64: 2>, scalar_prefetch = 0 : i64, scratch_operands = 0 : i64, tpu.core_type = #tpu.core_type<tc>, window_params = [{transform_indices = @transform_0, window_bounds = array<i64: 8, 16, 8>}, {transform_indices = @transform_1, window_bounds = array<i64: 8, 16, 16>}, {pipeline_mode = #tpu.pipeline_mode<synchronous>, transform_indices = @transform_2, window_bounds = array<i64: 9, 33, 32>}, {pipeline_mode = #tpu.pipeline_mode<synchronous>, transform_indices = @transform_3, window_bounds = array<i64: 8, 16>}, {pipeline_mode = #tpu.pipeline_mode<synchronous>, transform_indices = @transform_4, window_bounds = array<i64: 4, 8>}, {pipeline_mode = #tpu.pipeline_mode<synchronous>, transform_indices = @transform_5, window_bounds = array<i64: 80, 32>}, {transform_indices = @transform_6, window_bounds = array<i64: 8, 16>}]} {
    %c0 = arith.constant 0 : index
    %c0_0 = arith.constant 0 : index
    %c0_1 = arith.constant 0 : index
    %0 = vector.load %arg2[%c0, %c0_0, %c0_1] : memref<8x16x16xf32, #tpu.memory_space<vmem>>, vector<8x16x16xf32>
    %1 = tpu.iota {dimensions = array<i32: 0>} : vector<16x16xi32>
    %2 = tpu.iota {dimensions = array<i32: 1>} : vector<16x16xi32>
    %cst = arith.constant 0.000000e+00 : f32
    %3 = vector.broadcast %cst : f32 to vector<8x16x16xf32>
    %4 = arith.cmpf one, %0, %3 : vector<8x16x16xf32>
    %5 = arith.extui %4 : vector<8x16x16xi1> to vector<8x16x16xi32>
    %6 = arith.sitofp %5 : vector<8x16x16xi32> to vector<8x16x16xf32>
    %7 = arith.cmpi eq, %1, %2 : vector<16x16xi32>
    %cst_2 = arith.constant 1.000000e+00 : f32
    %8 = vector.shape_cast %7 : vector<16x16xi1> to vector<1x16x16xi1>
    %9 = vector.broadcast %8 : vector<1x16x16xi1> to vector<8x16x16xi1>
    %10 = vector.broadcast %cst_2 : f32 to vector<8x16x16xf32>
    %11 = arith.select %9, %10, %6 : vector<8x16x16xi1>, vector<8x16x16xf32>
    %cst_3 = arith.constant dense<0.000000e+00> : vector<8x16xf32>
    %12 = vector.multi_reduction <add>, %11, %cst_3 [2] : vector<8x16x16xf32> to vector<8x16xf32>
    %13 = vector.shape_cast %12 : vector<8x16xf32> to vector<8x16x1xf32>
    %14 = math.rsqrt %13 : vector<8x16x1xf32>
    %c0_4 = arith.constant 0 : index
    %c0_5 = arith.constant 0 : index
    %c0_6 = arith.constant 0 : index
    %15 = vector.load %arg1[%c0_4, %c0_5, %c0_6] : memref<8x16x8xf32, #tpu.memory_space<vmem>>, vector<8x16x8xf32>
    %c0_7 = arith.constant 0 : index
    %c0_8 = arith.constant 0 : index
    %c0_9 = arith.constant 0 : index
    %16 = vector.load %arg3[%c0_7, %c0_8, %c0_9] : memref<9x33x32xf32, #tpu.memory_space<vmem>>, vector<1x33x32xf32>
    %17 = vector.shape_cast %16 : vector<1x33x32xf32> to vector<33x32xf32>
    %18 = vector.extract_strided_slice %17 {offsets = [0, 0], sizes = [8, 32], strides = [1, 1]} : vector<33x32xf32> to vector<8x32xf32>
    %19 = vector.extract_strided_slice %17 {offsets = [32, 0], sizes = [1, 32], strides = [1, 1]} : vector<33x32xf32> to vector<1x32xf32>
    %20 = vector.shape_cast %15 : vector<8x16x8xf32> to vector<128x8xf32>
    %cst_10 = arith.constant dense<0.000000e+00> : vector<128x32xf32>
    %21 = tpu.matmul %20, %18, %cst_10 {dimension_numbers = #tpu.dot_dimension_numbers<[1], [0], [0], [1], [0, 0, 1, 1], [], []>} : vector<128x8xf32>, vector<8x32xf32>, vector<128x32xf32> -> vector<128x32xf32>
    %22 = vector.shape_cast %21 : vector<128x32xf32> to vector<8x16x32xf32>
    %23 = vector.broadcast %14 : vector<8x16x1xf32> to vector<8x16x32xf32>
    %24 = arith.mulf %23, %22 : vector<8x16x32xf32>
    %cst_11 = arith.constant dense<0.000000e+00> : vector<8x16x32xf32>
    %25 = tpu.matmul %11, %24, %cst_11 {dimension_numbers = #tpu.dot_dimension_numbers<[2], [1], [1], [2], [0, 0, 0, 1, 1, 2], [0], [0]>} : vector<8x16x16xf32>, vector<8x16x32xf32>, vector<8x16x32xf32> -> vector<8x16x32xf32>
    %26 = vector.broadcast %14 : vector<8x16x1xf32> to vector<8x16x32xf32>
    %27 = arith.mulf %26, %25 : vector<8x16x32xf32>
    %28 = vector.shape_cast %19 : vector<1x32xf32> to vector<1x1x32xf32>
    %29 = vector.broadcast %28 : vector<1x1x32xf32> to vector<8x16x32xf32>
    %30 = arith.addf %27, %29 : vector<8x16x32xf32>
    %cst_12 = arith.constant 0.000000e+00 : f32
    %31 = vector.broadcast %cst_12 : f32 to vector<8x16x32xf32>
    %32 = arith.maximumf %30, %31 : vector<8x16x32xf32>
    %c1 = arith.constant 1 : index
    %c0_13 = arith.constant 0 : index
    %c0_14 = arith.constant 0 : index
    %33 = vector.load %arg3[%c1, %c0_13, %c0_14] : memref<9x33x32xf32, #tpu.memory_space<vmem>>, vector<1x33x32xf32>
    %34 = vector.shape_cast %33 : vector<1x33x32xf32> to vector<33x32xf32>
    %35 = vector.extract_strided_slice %34 {offsets = [0, 0], sizes = [32, 32], strides = [1, 1]} : vector<33x32xf32> to vector<32x32xf32>
    %36 = vector.extract_strided_slice %34 {offsets = [32, 0], sizes = [1, 32], strides = [1, 1]} : vector<33x32xf32> to vector<1x32xf32>
    %37 = vector.shape_cast %32 : vector<8x16x32xf32> to vector<128x32xf32>
    %cst_15 = arith.constant dense<0.000000e+00> : vector<128x32xf32>
    %38 = tpu.matmul %37, %35, %cst_15 {dimension_numbers = #tpu.dot_dimension_numbers<[1], [0], [0], [1], [0, 0, 1, 1], [], []>} : vector<128x32xf32>, vector<32x32xf32>, vector<128x32xf32> -> vector<128x32xf32>
    %39 = vector.shape_cast %38 : vector<128x32xf32> to vector<8x16x32xf32>
    %40 = vector.broadcast %14 : vector<8x16x1xf32> to vector<8x16x32xf32>
    %41 = arith.mulf %40, %39 : vector<8x16x32xf32>
    %cst_16 = arith.constant dense<0.000000e+00> : vector<8x16x32xf32>
    %42 = tpu.matmul %11, %41, %cst_16 {dimension_numbers = #tpu.dot_dimension_numbers<[2], [1], [1], [2], [0, 0, 0, 1, 1, 2], [0], [0]>} : vector<8x16x16xf32>, vector<8x16x32xf32>, vector<8x16x32xf32> -> vector<8x16x32xf32>
    %43 = vector.broadcast %14 : vector<8x16x1xf32> to vector<8x16x32xf32>
    %44 = arith.mulf %43, %42 : vector<8x16x32xf32>
    %45 = vector.shape_cast %36 : vector<1x32xf32> to vector<1x1x32xf32>
    %46 = vector.broadcast %45 : vector<1x1x32xf32> to vector<8x16x32xf32>
    %47 = arith.addf %44, %46 : vector<8x16x32xf32>
    %cst_17 = arith.constant 0.000000e+00 : f32
    %48 = vector.broadcast %cst_17 : f32 to vector<8x16x32xf32>
    %49 = arith.maximumf %47, %48 : vector<8x16x32xf32>
    %c2 = arith.constant 2 : index
    %c0_18 = arith.constant 0 : index
    %c0_19 = arith.constant 0 : index
    %50 = vector.load %arg3[%c2, %c0_18, %c0_19] : memref<9x33x32xf32, #tpu.memory_space<vmem>>, vector<1x33x32xf32>
    %51 = vector.shape_cast %50 : vector<1x33x32xf32> to vector<33x32xf32>
    %52 = vector.extract_strided_slice %51 {offsets = [0, 0], sizes = [32, 32], strides = [1, 1]} : vector<33x32xf32> to vector<32x32xf32>
    %53 = vector.extract_strided_slice %51 {offsets = [32, 0], sizes = [1, 32], strides = [1, 1]} : vector<33x32xf32> to vector<1x32xf32>
    %54 = vector.shape_cast %49 : vector<8x16x32xf32> to vector<128x32xf32>
    %cst_20 = arith.constant dense<0.000000e+00> : vector<128x32xf32>
    %55 = tpu.matmul %54, %52, %cst_20 {dimension_numbers = #tpu.dot_dimension_numbers<[1], [0], [0], [1], [0, 0, 1, 1], [], []>} : vector<128x32xf32>, vector<32x32xf32>, vector<128x32xf32> -> vector<128x32xf32>
    %56 = vector.shape_cast %55 : vector<128x32xf32> to vector<8x16x32xf32>
    %57 = vector.broadcast %14 : vector<8x16x1xf32> to vector<8x16x32xf32>
    %58 = arith.mulf %57, %56 : vector<8x16x32xf32>
    %cst_21 = arith.constant dense<0.000000e+00> : vector<8x16x32xf32>
    %59 = tpu.matmul %11, %58, %cst_21 {dimension_numbers = #tpu.dot_dimension_numbers<[2], [1], [1], [2], [0, 0, 0, 1, 1, 2], [0], [0]>} : vector<8x16x16xf32>, vector<8x16x32xf32>, vector<8x16x32xf32> -> vector<8x16x32xf32>
    %60 = vector.broadcast %14 : vector<8x16x1xf32> to vector<8x16x32xf32>
    %61 = arith.mulf %60, %59 : vector<8x16x32xf32>
    %62 = vector.shape_cast %53 : vector<1x32xf32> to vector<1x1x32xf32>
    %63 = vector.broadcast %62 : vector<1x1x32xf32> to vector<8x16x32xf32>
    %64 = arith.addf %61, %63 : vector<8x16x32xf32>
    %cst_22 = arith.constant 0.000000e+00 : f32
    %65 = vector.broadcast %cst_22 : f32 to vector<8x16x32xf32>
    %66 = arith.maximumf %64, %65 : vector<8x16x32xf32>
    %c0_23 = arith.constant 0 : index
    %c0_24 = arith.constant 0 : index
    %67 = vector.load %arg4[%c0_23, %c0_24] : memref<8x16xf32, #tpu.memory_space<vmem>>, vector<8x16xf32>
    %cst_25 = arith.constant dense<0xFF800000> : vector<16xf32>
    %68 = vector.multi_reduction <maximumf>, %67, %cst_25 [0] : vector<8x16xf32> to vector<16xf32>
    %69 = vector.shape_cast %68 : vector<16xf32> to vector<1x16xf32>
    %70 = vector.broadcast %69 : vector<1x16xf32> to vector<8x16xf32>
    %71 = arith.subf %67, %70 : vector<8x16xf32>
    %72 = math.exp %71 : vector<8x16xf32>
    %cst_26 = arith.constant dense<0.000000e+00> : vector<16xf32>
    %73 = vector.multi_reduction <add>, %72, %cst_26 [0] : vector<8x16xf32> to vector<16xf32>
    %74 = vector.shape_cast %73 : vector<16xf32> to vector<1x16xf32>
    %75 = tpu.reciprocal %74 {approx = true} : vector<1x16xf32> -> vector<1x16xf32>
    %76 = vector.broadcast %75 : vector<1x16xf32> to vector<8x16xf32>
    %77 = arith.mulf %72, %76 : vector<8x16xf32>
    %78 = vector.shape_cast %77 : vector<8x16xf32> to vector<1x8x16xf32>
    %79 = vector.broadcast %78 : vector<1x8x16xf32> to vector<8x8x16xf32>
    %cst_27 = arith.constant dense<0.000000e+00> : vector<8x8x32xf32>
    %80 = tpu.matmul %79, %66, %cst_27 {dimension_numbers = #tpu.dot_dimension_numbers<[2], [1], [1], [2], [0, 0, 0, 1, 1, 2], [0], [0]>} : vector<8x8x16xf32>, vector<8x16x32xf32>, vector<8x8x32xf32> -> vector<8x8x32xf32>
    %cst_28 = arith.constant dense<0.000000e+00> : vector<8x8x16xf32>
    %81 = tpu.matmul %79, %0, %cst_28 {dimension_numbers = #tpu.dot_dimension_numbers<[2], [1], [1], [2], [0, 0, 0, 1, 1, 2], [0], [0]>} : vector<8x8x16xf32>, vector<8x16x16xf32>, vector<8x8x16xf32> -> vector<8x8x16xf32>
    %cst_29 = arith.constant dense<0.000000e+00> : vector<8x8x8xf32>
    %82 = tpu.matmul %81, %79, %cst_29 {dimension_numbers = #tpu.dot_dimension_numbers<[2], [2], [1], [1], [0, 0, 0, 1, 1, 1], [0], [0]>} : vector<8x8x16xf32>, vector<8x8x16xf32>, vector<8x8x8xf32> -> vector<8x8x8xf32>
    %83 = tpu.iota {dimensions = array<i32: 0>} : vector<8x8xi32>
    %84 = tpu.iota {dimensions = array<i32: 1>} : vector<8x8xi32>
    %cst_30 = arith.constant 0.000000e+00 : f32
    %85 = vector.broadcast %cst_30 : f32 to vector<8x8x8xf32>
    %86 = arith.cmpf one, %82, %85 : vector<8x8x8xf32>
    %87 = arith.extui %86 : vector<8x8x8xi1> to vector<8x8x8xi32>
    %88 = arith.sitofp %87 : vector<8x8x8xi32> to vector<8x8x8xf32>
    %89 = arith.cmpi eq, %83, %84 : vector<8x8xi32>
    %cst_31 = arith.constant 1.000000e+00 : f32
    %90 = vector.shape_cast %89 : vector<8x8xi1> to vector<1x8x8xi1>
    %91 = vector.broadcast %90 : vector<1x8x8xi1> to vector<8x8x8xi1>
    %92 = vector.broadcast %cst_31 : f32 to vector<8x8x8xf32>
    %93 = arith.select %91, %92, %88 : vector<8x8x8xi1>, vector<8x8x8xf32>
    %cst_32 = arith.constant dense<0.000000e+00> : vector<8x8xf32>
    %94 = vector.multi_reduction <add>, %93, %cst_32 [2] : vector<8x8x8xf32> to vector<8x8xf32>
    %95 = vector.shape_cast %94 : vector<8x8xf32> to vector<8x8x1xf32>
    %96 = math.rsqrt %95 : vector<8x8x1xf32>
    %c3 = arith.constant 3 : index
    %c0_33 = arith.constant 0 : index
    %c0_34 = arith.constant 0 : index
    %97 = vector.load %arg3[%c3, %c0_33, %c0_34] : memref<9x33x32xf32, #tpu.memory_space<vmem>>, vector<1x33x32xf32>
    %98 = vector.shape_cast %97 : vector<1x33x32xf32> to vector<33x32xf32>
    %99 = vector.extract_strided_slice %98 {offsets = [0, 0], sizes = [32, 32], strides = [1, 1]} : vector<33x32xf32> to vector<32x32xf32>
    %100 = vector.extract_strided_slice %98 {offsets = [32, 0], sizes = [1, 32], strides = [1, 1]} : vector<33x32xf32> to vector<1x32xf32>
    %101 = vector.shape_cast %80 : vector<8x8x32xf32> to vector<64x32xf32>
    %cst_35 = arith.constant dense<0.000000e+00> : vector<64x32xf32>
    %102 = tpu.matmul %101, %99, %cst_35 {dimension_numbers = #tpu.dot_dimension_numbers<[1], [0], [0], [1], [0, 0, 1, 1], [], []>} : vector<64x32xf32>, vector<32x32xf32>, vector<64x32xf32> -> vector<64x32xf32>
    %103 = vector.shape_cast %102 : vector<64x32xf32> to vector<8x8x32xf32>
    %104 = vector.broadcast %96 : vector<8x8x1xf32> to vector<8x8x32xf32>
    %105 = arith.mulf %104, %103 : vector<8x8x32xf32>
    %cst_36 = arith.constant dense<0.000000e+00> : vector<8x8x32xf32>
    %106 = tpu.matmul %93, %105, %cst_36 {dimension_numbers = #tpu.dot_dimension_numbers<[2], [1], [1], [2], [0, 0, 0, 1, 1, 2], [0], [0]>} : vector<8x8x8xf32>, vector<8x8x32xf32>, vector<8x8x32xf32> -> vector<8x8x32xf32>
    %107 = vector.broadcast %96 : vector<8x8x1xf32> to vector<8x8x32xf32>
    %108 = arith.mulf %107, %106 : vector<8x8x32xf32>
    %109 = vector.shape_cast %100 : vector<1x32xf32> to vector<1x1x32xf32>
    %110 = vector.broadcast %109 : vector<1x1x32xf32> to vector<8x8x32xf32>
    %111 = arith.addf %108, %110 : vector<8x8x32xf32>
    %cst_37 = arith.constant 0.000000e+00 : f32
    %112 = vector.broadcast %cst_37 : f32 to vector<8x8x32xf32>
    %113 = arith.maximumf %111, %112 : vector<8x8x32xf32>
    %c4 = arith.constant 4 : index
    %c0_38 = arith.constant 0 : index
    %c0_39 = arith.constant 0 : index
    %114 = vector.load %arg3[%c4, %c0_38, %c0_39] : memref<9x33x32xf32, #tpu.memory_space<vmem>>, vector<1x33x32xf32>
    %115 = vector.shape_cast %114 : vector<1x33x32xf32> to vector<33x32xf32>
    %116 = vector.extract_strided_slice %115 {offsets = [0, 0], sizes = [32, 32], strides = [1, 1]} : vector<33x32xf32> to vector<32x32xf32>
    %117 = vector.extract_strided_slice %115 {offsets = [32, 0], sizes = [1, 32], strides = [1, 1]} : vector<33x32xf32> to vector<1x32xf32>
    %118 = vector.shape_cast %113 : vector<8x8x32xf32> to vector<64x32xf32>
    %cst_40 = arith.constant dense<0.000000e+00> : vector<64x32xf32>
    %119 = tpu.matmul %118, %116, %cst_40 {dimension_numbers = #tpu.dot_dimension_numbers<[1], [0], [0], [1], [0, 0, 1, 1], [], []>} : vector<64x32xf32>, vector<32x32xf32>, vector<64x32xf32> -> vector<64x32xf32>
    %120 = vector.shape_cast %119 : vector<64x32xf32> to vector<8x8x32xf32>
    %121 = vector.broadcast %96 : vector<8x8x1xf32> to vector<8x8x32xf32>
    %122 = arith.mulf %121, %120 : vector<8x8x32xf32>
    %cst_41 = arith.constant dense<0.000000e+00> : vector<8x8x32xf32>
    %123 = tpu.matmul %93, %122, %cst_41 {dimension_numbers = #tpu.dot_dimension_numbers<[2], [1], [1], [2], [0, 0, 0, 1, 1, 2], [0], [0]>} : vector<8x8x8xf32>, vector<8x8x32xf32>, vector<8x8x32xf32> -> vector<8x8x32xf32>
    %124 = vector.broadcast %96 : vector<8x8x1xf32> to vector<8x8x32xf32>
    %125 = arith.mulf %124, %123 : vector<8x8x32xf32>
    %126 = vector.shape_cast %117 : vector<1x32xf32> to vector<1x1x32xf32>
    %127 = vector.broadcast %126 : vector<1x1x32xf32> to vector<8x8x32xf32>
    %128 = arith.addf %125, %127 : vector<8x8x32xf32>
    %cst_42 = arith.constant 0.000000e+00 : f32
    %129 = vector.broadcast %cst_42 : f32 to vector<8x8x32xf32>
    %130 = arith.maximumf %128, %129 : vector<8x8x32xf32>
    %c5 = arith.constant 5 : index
    %c0_43 = arith.constant 0 : index
    %c0_44 = arith.constant 0 : index
    %131 = vector.load %arg3[%c5, %c0_43, %c0_44] : memref<9x33x32xf32, #tpu.memory_space<vmem>>, vector<1x33x32xf32>
    %132 = vector.shape_cast %131 : vector<1x33x32xf32> to vector<33x32xf32>
    %133 = vector.extract_strided_slice %132 {offsets = [0, 0], sizes = [32, 32], strides = [1, 1]} : vector<33x32xf32> to vector<32x32xf32>
    %134 = vector.extract_strided_slice %132 {offsets = [32, 0], sizes = [1, 32], strides = [1, 1]} : vector<33x32xf32> to vector<1x32xf32>
    %135 = vector.shape_cast %130 : vector<8x8x32xf32> to vector<64x32xf32>
    %cst_45 = arith.constant dense<0.000000e+00> : vector<64x32xf32>
    %136 = tpu.matmul %135, %133, %cst_45 {dimension_numbers = #tpu.dot_dimension_numbers<[1], [0], [0], [1], [0, 0, 1, 1], [], []>} : vector<64x32xf32>, vector<32x32xf32>, vector<64x32xf32> -> vector<64x32xf32>
    %137 = vector.shape_cast %136 : vector<64x32xf32> to vector<8x8x32xf32>
    %138 = vector.broadcast %96 : vector<8x8x1xf32> to vector<8x8x32xf32>
    %139 = arith.mulf %138, %137 : vector<8x8x32xf32>
    %cst_46 = arith.constant dense<0.000000e+00> : vector<8x8x32xf32>
    %140 = tpu.matmul %93, %139, %cst_46 {dimension_numbers = #tpu.dot_dimension_numbers<[2], [1], [1], [2], [0, 0, 0, 1, 1, 2], [0], [0]>} : vector<8x8x8xf32>, vector<8x8x32xf32>, vector<8x8x32xf32> -> vector<8x8x32xf32>
    %141 = vector.broadcast %96 : vector<8x8x1xf32> to vector<8x8x32xf32>
    %142 = arith.mulf %141, %140 : vector<8x8x32xf32>
    %143 = vector.shape_cast %134 : vector<1x32xf32> to vector<1x1x32xf32>
    %144 = vector.broadcast %143 : vector<1x1x32xf32> to vector<8x8x32xf32>
    %145 = arith.addf %142, %144 : vector<8x8x32xf32>
    %cst_47 = arith.constant 0.000000e+00 : f32
    %146 = vector.broadcast %cst_47 : f32 to vector<8x8x32xf32>
    %147 = arith.maximumf %145, %146 : vector<8x8x32xf32>
    %c0_48 = arith.constant 0 : index
    %c0_49 = arith.constant 0 : index
    %148 = vector.load %arg5[%c0_48, %c0_49] : memref<4x8xf32, #tpu.memory_space<vmem>>, vector<4x8xf32>
    %cst_50 = arith.constant dense<0xFF800000> : vector<8xf32>
    %149 = vector.multi_reduction <maximumf>, %148, %cst_50 [0] : vector<4x8xf32> to vector<8xf32>
    %150 = vector.shape_cast %149 : vector<8xf32> to vector<1x8xf32>
    %151 = vector.broadcast %150 : vector<1x8xf32> to vector<4x8xf32>
    %152 = arith.subf %148, %151 : vector<4x8xf32>
    %153 = math.exp %152 : vector<4x8xf32>
    %cst_51 = arith.constant dense<0.000000e+00> : vector<8xf32>
    %154 = vector.multi_reduction <add>, %153, %cst_51 [0] : vector<4x8xf32> to vector<8xf32>
    %155 = vector.shape_cast %154 : vector<8xf32> to vector<1x8xf32>
    %156 = tpu.reciprocal %155 {approx = true} : vector<1x8xf32> -> vector<1x8xf32>
    %157 = vector.broadcast %156 : vector<1x8xf32> to vector<4x8xf32>
    %158 = arith.mulf %153, %157 : vector<4x8xf32>
    %159 = vector.shape_cast %158 : vector<4x8xf32> to vector<1x4x8xf32>
    %160 = vector.broadcast %159 : vector<1x4x8xf32> to vector<8x4x8xf32>
    %cst_52 = arith.constant dense<0.000000e+00> : vector<8x4x32xf32>
    %161 = tpu.matmul %160, %147, %cst_52 {dimension_numbers = #tpu.dot_dimension_numbers<[2], [1], [1], [2], [0, 0, 0, 1, 1, 2], [0], [0]>} : vector<8x4x8xf32>, vector<8x8x32xf32>, vector<8x4x32xf32> -> vector<8x4x32xf32>
    %cst_53 = arith.constant dense<0.000000e+00> : vector<8x4x8xf32>
    %162 = tpu.matmul %160, %82, %cst_53 {dimension_numbers = #tpu.dot_dimension_numbers<[2], [1], [1], [2], [0, 0, 0, 1, 1, 2], [0], [0]>} : vector<8x4x8xf32>, vector<8x8x8xf32>, vector<8x4x8xf32> -> vector<8x4x8xf32>
    %cst_54 = arith.constant dense<0.000000e+00> : vector<8x4x4xf32>
    %163 = tpu.matmul %162, %160, %cst_54 {dimension_numbers = #tpu.dot_dimension_numbers<[2], [2], [1], [1], [0, 0, 0, 1, 1, 1], [0], [0]>} : vector<8x4x8xf32>, vector<8x4x8xf32>, vector<8x4x4xf32> -> vector<8x4x4xf32>
    %164 = tpu.iota {dimensions = array<i32: 0>} : vector<4x4xi32>
    %165 = tpu.iota {dimensions = array<i32: 1>} : vector<4x4xi32>
    %cst_55 = arith.constant 0.000000e+00 : f32
    %166 = vector.broadcast %cst_55 : f32 to vector<8x4x4xf32>
    %167 = arith.cmpf one, %163, %166 : vector<8x4x4xf32>
    %168 = arith.extui %167 : vector<8x4x4xi1> to vector<8x4x4xi32>
    %169 = arith.sitofp %168 : vector<8x4x4xi32> to vector<8x4x4xf32>
    %170 = arith.cmpi eq, %164, %165 : vector<4x4xi32>
    %cst_56 = arith.constant 1.000000e+00 : f32
    %171 = vector.shape_cast %170 : vector<4x4xi1> to vector<1x4x4xi1>
    %172 = vector.broadcast %171 : vector<1x4x4xi1> to vector<8x4x4xi1>
    %173 = vector.broadcast %cst_56 : f32 to vector<8x4x4xf32>
    %174 = arith.select %172, %173, %169 : vector<8x4x4xi1>, vector<8x4x4xf32>
    %cst_57 = arith.constant dense<0.000000e+00> : vector<8x4xf32>
    %175 = vector.multi_reduction <add>, %174, %cst_57 [2] : vector<8x4x4xf32> to vector<8x4xf32>
    %176 = vector.shape_cast %175 : vector<8x4xf32> to vector<8x4x1xf32>
    %177 = math.rsqrt %176 : vector<8x4x1xf32>
    %c6 = arith.constant 6 : index
    %c0_58 = arith.constant 0 : index
    %c0_59 = arith.constant 0 : index
    %178 = vector.load %arg3[%c6, %c0_58, %c0_59] : memref<9x33x32xf32, #tpu.memory_space<vmem>>, vector<1x33x32xf32>
    %179 = vector.shape_cast %178 : vector<1x33x32xf32> to vector<33x32xf32>
    %180 = vector.extract_strided_slice %179 {offsets = [0, 0], sizes = [32, 32], strides = [1, 1]} : vector<33x32xf32> to vector<32x32xf32>
    %181 = vector.extract_strided_slice %179 {offsets = [32, 0], sizes = [1, 32], strides = [1, 1]} : vector<33x32xf32> to vector<1x32xf32>
    %182 = vector.shape_cast %180 : vector<32x32xf32> to vector<1x32x32xf32>
    %183 = vector.broadcast %182 : vector<1x32x32xf32> to vector<8x32x32xf32>
    %cst_60 = arith.constant dense<0.000000e+00> : vector<8x4x32xf32>
    %184 = tpu.matmul %161, %183, %cst_60 {dimension_numbers = #tpu.dot_dimension_numbers<[2], [1], [1], [2], [0, 0, 0, 1, 1, 2], [0], [0]>} : vector<8x4x32xf32>, vector<8x32x32xf32>, vector<8x4x32xf32> -> vector<8x4x32xf32>
    %185 = vector.broadcast %177 : vector<8x4x1xf32> to vector<8x4x32xf32>
    %186 = arith.mulf %185, %184 : vector<8x4x32xf32>
    %cst_61 = arith.constant dense<0.000000e+00> : vector<8x4x32xf32>
    %187 = tpu.matmul %174, %186, %cst_61 {dimension_numbers = #tpu.dot_dimension_numbers<[2], [1], [1], [2], [0, 0, 0, 1, 1, 2], [0], [0]>} : vector<8x4x4xf32>, vector<8x4x32xf32>, vector<8x4x32xf32> -> vector<8x4x32xf32>
    %188 = vector.broadcast %177 : vector<8x4x1xf32> to vector<8x4x32xf32>
    %189 = arith.mulf %188, %187 : vector<8x4x32xf32>
    %190 = vector.shape_cast %181 : vector<1x32xf32> to vector<1x1x32xf32>
    %191 = vector.broadcast %190 : vector<1x1x32xf32> to vector<8x4x32xf32>
    %192 = arith.addf %189, %191 : vector<8x4x32xf32>
    %cst_62 = arith.constant 0.000000e+00 : f32
    %193 = vector.broadcast %cst_62 : f32 to vector<8x4x32xf32>
    %194 = arith.maximumf %192, %193 : vector<8x4x32xf32>
    %c7 = arith.constant 7 : index
    %c0_63 = arith.constant 0 : index
    %c0_64 = arith.constant 0 : index
    %195 = vector.load %arg3[%c7, %c0_63, %c0_64] : memref<9x33x32xf32, #tpu.memory_space<vmem>>, vector<1x33x32xf32>
    %196 = vector.shape_cast %195 : vector<1x33x32xf32> to vector<33x32xf32>
    %197 = vector.extract_strided_slice %196 {offsets = [0, 0], sizes = [32, 32], strides = [1, 1]} : vector<33x32xf32> to vector<32x32xf32>
    %198 = vector.extract_strided_slice %196 {offsets = [32, 0], sizes = [1, 32], strides = [1, 1]} : vector<33x32xf32> to vector<1x32xf32>
    %199 = vector.shape_cast %197 : vector<32x32xf32> to vector<1x32x32xf32>
    %200 = vector.broadcast %199 : vector<1x32x32xf32> to vector<8x32x32xf32>
    %cst_65 = arith.constant dense<0.000000e+00> : vector<8x4x32xf32>
    %201 = tpu.matmul %194, %200, %cst_65 {dimension_numbers = #tpu.dot_dimension_numbers<[2], [1], [1], [2], [0, 0, 0, 1, 1, 2], [0], [0]>} : vector<8x4x32xf32>, vector<8x32x32xf32>, vector<8x4x32xf32> -> vector<8x4x32xf32>
    %202 = vector.broadcast %177 : vector<8x4x1xf32> to vector<8x4x32xf32>
    %203 = arith.mulf %202, %201 : vector<8x4x32xf32>
    %cst_66 = arith.constant dense<0.000000e+00> : vector<8x4x32xf32>
    %204 = tpu.matmul %174, %203, %cst_66 {dimension_numbers = #tpu.dot_dimension_numbers<[2], [1], [1], [2], [0, 0, 0, 1, 1, 2], [0], [0]>} : vector<8x4x4xf32>, vector<8x4x32xf32>, vector<8x4x32xf32> -> vector<8x4x32xf32>
    %205 = vector.broadcast %177 : vector<8x4x1xf32> to vector<8x4x32xf32>
    %206 = arith.mulf %205, %204 : vector<8x4x32xf32>
    %207 = vector.shape_cast %198 : vector<1x32xf32> to vector<1x1x32xf32>
    %208 = vector.broadcast %207 : vector<1x1x32xf32> to vector<8x4x32xf32>
    %209 = arith.addf %206, %208 : vector<8x4x32xf32>
    %cst_67 = arith.constant 0.000000e+00 : f32
    %210 = vector.broadcast %cst_67 : f32 to vector<8x4x32xf32>
    %211 = arith.maximumf %209, %210 : vector<8x4x32xf32>
    %c8 = arith.constant 8 : index
    %c0_68 = arith.constant 0 : index
    %c0_69 = arith.constant 0 : index
    %212 = vector.load %arg3[%c8, %c0_68, %c0_69] : memref<9x33x32xf32, #tpu.memory_space<vmem>>, vector<1x33x32xf32>
    %213 = vector.shape_cast %212 : vector<1x33x32xf32> to vector<33x32xf32>
    %214 = vector.extract_strided_slice %213 {offsets = [0, 0], sizes = [32, 32], strides = [1, 1]} : vector<33x32xf32> to vector<32x32xf32>
    %215 = vector.extract_strided_slice %213 {offsets = [32, 0], sizes = [1, 32], strides = [1, 1]} : vector<33x32xf32> to vector<1x32xf32>
    %216 = vector.shape_cast %214 : vector<32x32xf32> to vector<1x32x32xf32>
    %217 = vector.broadcast %216 : vector<1x32x32xf32> to vector<8x32x32xf32>
    %cst_70 = arith.constant dense<0.000000e+00> : vector<8x4x32xf32>
    %218 = tpu.matmul %211, %217, %cst_70 {dimension_numbers = #tpu.dot_dimension_numbers<[2], [1], [1], [2], [0, 0, 0, 1, 1, 2], [0], [0]>} : vector<8x4x32xf32>, vector<8x32x32xf32>, vector<8x4x32xf32> -> vector<8x4x32xf32>
    %219 = vector.broadcast %177 : vector<8x4x1xf32> to vector<8x4x32xf32>
    %220 = arith.mulf %219, %218 : vector<8x4x32xf32>
    %cst_71 = arith.constant dense<0.000000e+00> : vector<8x4x32xf32>
    %221 = tpu.matmul %174, %220, %cst_71 {dimension_numbers = #tpu.dot_dimension_numbers<[2], [1], [1], [2], [0, 0, 0, 1, 1, 2], [0], [0]>} : vector<8x4x4xf32>, vector<8x4x32xf32>, vector<8x4x32xf32> -> vector<8x4x32xf32>
    %222 = vector.broadcast %177 : vector<8x4x1xf32> to vector<8x4x32xf32>
    %223 = arith.mulf %222, %221 : vector<8x4x32xf32>
    %224 = vector.shape_cast %215 : vector<1x32xf32> to vector<1x1x32xf32>
    %225 = vector.broadcast %224 : vector<1x1x32xf32> to vector<8x4x32xf32>
    %226 = arith.addf %223, %225 : vector<8x4x32xf32>
    %cst_72 = arith.constant 0.000000e+00 : f32
    %227 = vector.broadcast %cst_72 : f32 to vector<8x4x32xf32>
    %228 = arith.maximumf %226, %227 : vector<8x4x32xf32>
    %cst_73 = arith.constant dense<0.000000e+00> : vector<8x32xf32>
    %229 = vector.multi_reduction <add>, %228, %cst_73 [1] : vector<8x4x32xf32> to vector<8x32xf32>
    %cst_74 = arith.constant 4.000000e+00 : f32
    %230 = vector.broadcast %cst_74 : f32 to vector<8x32xf32>
    %231 = arith.divf %229, %230 : vector<8x32xf32>
    %c0_75 = arith.constant 0 : index
    %c0_76 = arith.constant 0 : index
    %232 = vector.load %arg6[%c0_75, %c0_76] : memref<80x32xf32, #tpu.memory_space<vmem>>, vector<32x32xf32>
    %c32 = arith.constant 32 : index
    %c0_77 = arith.constant 0 : index
    %233 = vector.load %arg6[%c32, %c0_77] : memref<80x32xf32, #tpu.memory_space<vmem>>, vector<1x32xf32>
    %c40 = arith.constant 40 : index
    %c0_78 = arith.constant 0 : index
    %234 = vector.load %arg6[%c40, %c0_78] : memref<80x32xf32, #tpu.memory_space<vmem>>, vector<32x16xf32>
    %c72 = arith.constant 72 : index
    %c0_79 = arith.constant 0 : index
    %235 = vector.load %arg6[%c72, %c0_79] : memref<80x32xf32, #tpu.memory_space<vmem>>, vector<1x16xf32>
    %cst_80 = arith.constant dense<0.000000e+00> : vector<8x32xf32>
    %236 = tpu.matmul %231, %232, %cst_80 {dimension_numbers = #tpu.dot_dimension_numbers<[1], [0], [0], [1], [0, 0, 1, 1], [], []>} : vector<8x32xf32>, vector<32x32xf32>, vector<8x32xf32> -> vector<8x32xf32>
    %237 = vector.broadcast %233 : vector<1x32xf32> to vector<8x32xf32>
    %238 = arith.addf %236, %237 : vector<8x32xf32>
    %cst_81 = arith.constant 0.000000e+00 : f32
    %239 = vector.broadcast %cst_81 : f32 to vector<8x32xf32>
    %240 = arith.maximumf %238, %239 : vector<8x32xf32>
    %cst_82 = arith.constant dense<0.000000e+00> : vector<8x16xf32>
    %241 = tpu.matmul %240, %234, %cst_82 {dimension_numbers = #tpu.dot_dimension_numbers<[1], [0], [0], [1], [0, 0, 1, 1], [], []>} : vector<8x32xf32>, vector<32x16xf32>, vector<8x16xf32> -> vector<8x16xf32>
    %242 = vector.broadcast %235 : vector<1x16xf32> to vector<8x16xf32>
    %243 = arith.addf %241, %242 : vector<8x16xf32>
    %cst_83 = arith.constant 0.000000e+00 : f32
    %244 = vector.broadcast %cst_83 : f32 to vector<8x16xf32>
    %245 = arith.subf %244, %243 : vector<8x16xf32>
    %246 = math.exp %245 : vector<8x16xf32>
    %cst_84 = arith.constant 1.000000e+00 : f32
    %247 = vector.broadcast %cst_84 : f32 to vector<8x16xf32>
    %248 = arith.addf %247, %246 : vector<8x16xf32>
    %249 = tpu.reciprocal %248 {approx = true} : vector<8x16xf32> -> vector<8x16xf32>
    %c0_85 = arith.constant 0 : index
    %c0_86 = arith.constant 0 : index
    %250 = vector.load %arg7[%c0_85, %c0_86] : memref<8x16xf32, #tpu.memory_space<vmem>>, vector<8x16xf32>
    tpu.vector_store %arg7[%c0_85, %c0_86], %249 {strides = array<i32>} : memref<8x16xf32, #tpu.memory_space<vmem>>, vector<8x16xf32>,
    return
  }
  func.func @transform_0(%arg0: i32) -> (i32, i32, i32) {
    %c0_i32 = arith.constant 0 : i32
    %c0_i32_0 = arith.constant 0 : i32
    %c0_i32_1 = arith.constant 0 : i32
    return %arg0, %c0_i32, %c0_i32_0 : i32, i32, i32
  }
  func.func @transform_1(%arg0: i32) -> (i32, i32, i32) {
    %c0_i32 = arith.constant 0 : i32
    %c0_i32_0 = arith.constant 0 : i32
    %c0_i32_1 = arith.constant 0 : i32
    return %arg0, %c0_i32, %c0_i32_0 : i32, i32, i32
  }
  func.func @transform_2(%arg0: i32) -> (i32, i32, i32) {
    %c0_i32 = arith.constant 0 : i32
    %c0_i32_0 = arith.constant 0 : i32
    %c0_i32_1 = arith.constant 0 : i32
    %c0_i32_2 = arith.constant 0 : i32
    return %c0_i32, %c0_i32_0, %c0_i32_1 : i32, i32, i32
  }
  func.func @transform_3(%arg0: i32) -> (i32, i32) {
    %c0_i32 = arith.constant 0 : i32
    %c0_i32_0 = arith.constant 0 : i32
    %c0_i32_1 = arith.constant 0 : i32
    return %c0_i32, %c0_i32_0 : i32, i32
  }
  func.func @transform_4(%arg0: i32) -> (i32, i32) {
    %c0_i32 = arith.constant 0 : i32
    %c0_i32_0 = arith.constant 0 : i32
    %c0_i32_1 = arith.constant 0 : i32
    return %c0_i32, %c0_i32_0 : i32, i32
  }
  func.func @transform_5(%arg0: i32) -> (i32, i32) {
    %c0_i32 = arith.constant 0 : i32
    %c0_i32_0 = arith.constant 0 : i32
    %c0_i32_1 = arith.constant 0 : i32
    return %c0_i32, %c0_i32_0 : i32, i32
  }
  func.func @transform_6(%arg0: i32) -> (i32, i32) {
    %c0_i32 = arith.constant 0 : i32
    %c0_i32_0 = arith.constant 0 : i32
    return %arg0, %c0_i32 : i32, i32
  }
}

</mosaic_0001>

<bundles_post_ra>
// kernel: stockpool_forward.1
= control target key start
LH: loop header
LB: loop body
LE: loop exit
PB: predicated region body
PF: predicated region fallthrough
CT: control target
= control target key end

     0   :  { %11 = vsyncpa [#allocation3], 0  ;;  %s17336_s0 = inlined_call_operand.vmem [shape: f32[16,16,8], index: 0, kind: input, shape index: {}]   ;;  %s17337_s1 = inlined_call_operand.vmem [shape: f32[16,16,16], index: 1, kind: input, shape index: {}]   ;;  %s17338_s2 = inlined_call_operand.vmem [shape: f32[9,33,32], index: 2, kind: input, shape index: {}]   ;;  %s17339_s3 = inlined_call_operand.vmem [shape: f32[8,16], index: 3, kind: input, shape index: {}]   ;;  %s17340_s4 = inlined_call_operand.vmem [shape: f32[4,8], index: 4, kind: input, shape index: {}]   ;;  %s17341_s5 = inlined_call_operand.vmem [shape: f32[80,32], index: 5, kind: input, shape index: {}]   ;;  %s17342_s6 = inlined_call_operand.hbm [shape: f32[16,16], index: 6, kind: output, shape index: {}]  }
   0x1   :  { %13 = vsyncpa [#allocation3 + $0x1], 0  ;;  %s15501_s21 = smov 0   ;;  %s15503_s22 = smov 0  }
   0x2   :  { %s15505_s23 = smov 0   ;;  %s15507_s24 = smov 0  }
   0x3 LB: > { %s15522_s25 = sadd.s32 4294967295, %s15460_s24   ;;  %s12899_s26 = sadd.s32 4294967294, %s15460_s24   ;;  %s15460_s24 = sphi %s15507_s24, %s17352_s24   ;;  %s15456_s23 = sphi %s15505_s23, %s17351_s23   ;;  %s15452_s22 = sphi %s15503_s22, %s17350_s22   ;;  %s15448_s21 = sphi %s15501_s21, %s17349_s21  }
   0x4   : > { %s15526_s27 = sadd.s32 1, %s15460_s24   ;;  %s162_s28 = sadd.s32 1, %s15456_s23 }
   0x5   : > { %s159_s29 = ssub.s32 %s15460_s24, %s15526_s27  ;;  %p172_p0 = scmp.ne.s32.totalorder %s15456_s23, %s15452_s22 }
   0x6   : > { %p160_p1 = scmp.eq.s32.totalorder %s159_s29, 0  ;;  %p173_p2 = scmp.eq.s32.totalorder %s15522_s25, 1 }
   0x7   : > { %p178_p3 = scmp.ne.s32.totalorder %s15452_s22, %s15448_s21  ;;  %p179_p4 = scmp.eq.s32.totalorder %s12899_s26, 1 }
   0x8   : > { %s15537_s30 = scalar_select %p160_p1, %s15456_s23, %s162_s28  }
   0x9   : > { %p15539_p5 = por %p173_p2, %p172_p0  ;;  %p15543_p6 = por %p179_p4, %p178_p3 }
   0xa   : > { %p12902_p7 = scmp.ge.s32.totalorder %s15460_s24, 1  ;;  %p229_p8 = scmp.lt.s32.totalorder %s15460_s24, 3 }
   0xc   : > { %p230_p9 = pnand %p12902_p7, %p229_p8 }
   0xd   : > { %v452_v0 = vld [vmem:[%s17338_s2] sm:$0xff] (!%p230_p9)  ;;  %s12904_s11 = sshll.u32 (!%p230_p9), %s15522_s25, 3  ;;  %v296_v1 = vlaneseq (!%p230_p9)  ;;  %vm454_vm0 = vcmask (!%p230_p9), 64512   ;;  %vm371_vm4 = vcmask (!%p230_p9), 130048   ;;  %v15462_v18 = vmov (!%p230_p9), 0.0   ;;  %v12960_v14 = vld [vmem:[%s17338_s2 + $0x30] sm:$0xff] (!%p230_p9) }
   0xe   : > { %233 = sbr.rel (%p230_p9) target bundleno = 5266 (0x1492), region = 44  ;;  %13808 = vmatprep.subr.mxu0 (!%p230_p9), %v452_v0  ;;  %p267_p10 = scmp.lt.s32.totalorder (!%p230_p9), %s12904_s11, 15 }
   0xf   : > { %13809 = vmatpush3.msra.mxu0 (!%p230_p9), %v452_v0  ;;  %v297_v2 = vshrl.u32 (!%p230_p9), %v296_v1, 7  ;;  %v300_v6 = vand.u32 (!%p230_p9), 127, %v296_v1  ;;  %s263_s26 = sand.u32 (!%p230_p9), 1, %s15452_s22   ;;  %s13276_s29 = sshll.u32 (!%p230_p9), %s15522_s25, 7 }
  0x10   : > { %s12903_s28 = sshll.u32 (!%p230_p9), %s263_s26, 3  ;;  %s17293_s13 = scalar_lea.hbm (!%p230_p9), %s17342_s6, %s13276_s29 }
  0x11   : > { %v298_v7 = vadd.s32 (!%p230_p9), 8, %v297_v2  ;;  %vm15573_vm1 = vcmp.eq.s32.totalorder (!%p230_p9), %v297_v2, %v300_v6  ;;  %s265_s9 = scalar_lea.vmem (!%p230_p9), [#allocation2], %s12903_s28  ;;  %s15465_s25 = smov (!%p230_p9), [#allocation2]  }
  0x12   : > { %s12828_s10 = sshll.u32 (!%p230_p9), %s265_s9, 4  ;;  %s17295_s10 = int_to_ptr.vmem [resolvable:$true] %s12828_s10 }
  0x13   : > { %vm15578_vm2 = vcmp.eq.s32.totalorder (!%p230_p9), %v298_v7, %v300_v6  ;;  %s15398_s14 = scalar_lea.vmem (!%p230_p9), %s17295_s10, 128 }
  0x14   : > { %p15399_p11 = scmp.ne.s32.totalorder (!%p230_p9), %s17295_s10, %s15398_s14 }
  0x15   : > { %s17354_s11 = smov (!%p267_p10, %s12904_s11), 15 }
  0x16   : > { %s13279_s12 = sshll.u32 %s17354_s11, 4  ;;  %p15400_p12 = pnand %p15399_p11, %p15539_p5 }
  0x17   : > { %s15556_s15 = scalar_lea.vmem %s17336_s0, %s13279_s12  ;;  %s15565_s18 = scalar_lea.vmem %s17337_s1, %s13279_s12 }
  0x18   : > { %v436_v3 = vld [vmem:[%s15556_s15] sm:$0xff]  ;;  %v437_v4 = vld [vmem:[%s15556_s15 + $0x8] sm:$0xff]  ;;  %v438_v5 = vld [vmem:[%s15556_s15 + $0x10] sm:$0xff]  ;;  %p15401_p13 = pneg %p15400_p12 }
  0x19   : > { %13810 = vmatprep.mubr.msk.f32.mxu0 %vm454_vm0, %v436_v3  ;;  %v439_v8 = vld [vmem:[%s15556_s15 + $0x18] sm:$0xff]  ;;  %v440_v9 = vld [vmem:[%s15556_s15 + $0x20] sm:$0xff]  ;;  %v441_v10 = vld [vmem:[%s15556_s15 + $0x28] sm:$0xff] }
  0x1a   : > { %13811 = vmatmul.mubr.msk.f32.vlgmr.msra.gmra.mrb[0].mxu0 %vm454_vm0, %v437_v4  ;;  %v280_v11 = vld [vmem:[%s15565_s18] sm:$0xff]  ;;  %v281_v13 = vld [vmem:[%s15565_s18 + $0x8] sm:$0xff]  ;;  %v442_v15 = vld [vmem:[%s15556_s15 + $0x30] sm:$0xff] }
  0x1b   : > { %13813 = vmatprep.mubr.msk.f32.mxu0 %vm454_vm0, %v438_v5  ;;  %vm301_vm3 = vcmp.ne.f32.partialorder %v280_v11, 0.0  ;;  %vm302_vm5 = vcmp.ne.f32.partialorder %v281_v13, 0.0  ;;  %v282_v16 = vld [vmem:[%s15565_s18 + $0x10] sm:$0xff]  ;;  %v283_v17 = vld [vmem:[%s15565_s18 + $0x18] sm:$0xff]  ;;  %v285_v21 = vld [vmem:[%s15565_s18 + $0x28] sm:$0xff] }
  0x1c   : > { %v12910_v19 = vsel %vm301_vm3, 1.0, %v15462_v18  ;;  %v12911_v20 = vsel %vm302_vm5, 1.0, %v15462_v18  ;;  %vm303_vm6 = vcmp.ne.f32.partialorder %v282_v16, 0.0  ;;  %vm304_vm7 = vcmp.ne.f32.partialorder %v283_v17, 0.0  ;;  %v284_v22 = vld [vmem:[%s15565_s18 + $0x20] sm:$0xff]  ;;  %v287_v27 = vld [vmem:[%s15565_s18 + $0x38] sm:$0xff] }
  0x1d   : > { %v15593_v23 = vsel %vm15573_vm1, 1.0, %v12910_v19  ;;  %v15597_v24 = vsel %vm15578_vm2, 1.0, %v12911_v20  ;;  %v12912_v25 = vsel %vm303_vm6, 1.0, %v15462_v18  ;;  %v12913_v26 = vsel %vm304_vm7, 1.0, %v15462_v18  ;;  %v286_v28 = vld [vmem:[%s15565_s18 + $0x30] sm:$0xff]  ;;  %v443_v34 = vld [vmem:[%s15556_s15 + $0x38] sm:$0xff] }
  0x1e   : > { %13814 = vmatmul.mubr.msk.f32.gmra.mrb[2].mxu0 %vm454_vm0, %v439_v8  ;;  %v372_v29 = vsel %vm371_vm4, %v15593_v23, 0.0  ;;  %v15607_v30 = vsel %vm15573_vm1, 1.0, %v12912_v25  ;;  %v15611_v31 = vsel %vm15578_vm2, 1.0, %v12913_v26  ;;  %13838 = vmatprep.mubr.msk.f32.mxu1 %vm371_vm4, %v15593_v23  ;;  %v375_v32 = vsel %vm371_vm4, %v15597_v24, 0.0  ;;  %v288_v37 = vld [vmem:[%s15565_s18 + $0x40] sm:$0xff]  ;;  %v289_v41 = vld [vmem:[%s15565_s18 + $0x48] sm:$0xff] }
  0x1f   : > { %13816 = vmatprep.mubr.msk.f32.mxu0 %vm454_vm0, %v440_v9  ;;  %373 = vadd.xlane.f32.xlu0 %v372_v29  ;;  %v378_v33 = vsel %vm371_vm4, %v15607_v30, 0.0  ;;  %vm306_vm8 = vcmp.ne.f32.partialorder %v285_v21, 0.0  ;;  %vm305_vm9 = vcmp.ne.f32.partialorder %v284_v22, 0.0  ;;  %vm308_vm10 = vcmp.ne.f32.partialorder %v287_v27, 0.0  ;;  %v444_v38 = vld [vmem:[%s15556_s15 + $0x40] sm:$0xff]  ;;  %v445_v45 = vld [vmem:[%s15556_s15 + $0x48] sm:$0xff] }
  0x20   : > { %379 = vadd.xlane.f32.xlu1 %v378_v33  ;;  %v12915_v35 = vsel %vm306_vm8, 1.0, %v15462_v18  ;;  %v12914_v36 = vsel %vm305_vm9, 1.0, %v15462_v18  ;;  %vm307_vm11 = vcmp.ne.f32.partialorder %v286_v28, 0.0  ;;  %v381_v39 = vsel %vm371_vm4, %v15611_v31, 0.0  ;;  %v290_v47 = vld [vmem:[%s15565_s18 + $0x50] sm:$0xff]  ;;  %v291_v51 = vld [vmem:[%s15565_s18 + $0x58] sm:$0xff] }
  0x21   : > { %v15630_v40 = vsel %vm15573_vm1, 1.0, %v12914_v36  ;;  %v15635_v42 = vsel %vm15578_vm2, 1.0, %v12915_v35  ;;  %v12916_v43 = vsel %vm307_vm11, 1.0, %v15462_v18  ;;  %v12917_v44 = vsel %vm308_vm10, 1.0, %v15462_v18  ;;  %v446_v48 = vld [vmem:[%s15556_s15 + $0x50] sm:$0xff]  ;;  %v447_v55 = vld [vmem:[%s15556_s15 + $0x58] sm:$0xff] }
  0x22   : > { %13817 = vmatmul.mubr.msk.f32.gmra.mrb[4].mxu0 %vm454_vm0, %v441_v10  ;;  %vm309_vm12 = vcmp.ne.f32.partialorder %v288_v37, 0.0  ;;  %v384_v46 = vsel %vm371_vm4, %v15630_v40, 0.0  ;;  %vm310_vm13 = vcmp.ne.f32.partialorder %v289_v41, 0.0  ;;  %v387_v49 = vsel %vm371_vm4, %v15635_v42, 0.0  ;;  %v292_v57 = vld [vmem:[%s15565_s18 + $0x60] sm:$0xff]  ;;  %v293_v61 = vld [vmem:[%s15565_s18 + $0x68] sm:$0xff] }
  0x23   : > { %13819 = vmatprep.mubr.msk.f32.mxu0 %vm454_vm0, %v442_v15  ;;  %376 = vadd.xlane.f32.xlu0 %v375_v32  ;;  %v15650_v50 = vsel %vm15573_vm1, 1.0, %v12916_v43  ;;  %v15655_v52 = vsel %vm15578_vm2, 1.0, %v12917_v44  ;;  %v12918_v53 = vsel %vm309_vm12, 1.0, %v15462_v18  ;;  %v12919_v54 = vsel %vm310_vm13, 1.0, %v15462_v18  ;;  %v448_v58 = vld [vmem:[%s15556_s15 + $0x60] sm:$0xff]  ;;  %v449_v1 = vld [vmem:[%s15556_s15 + $0x68] sm:$0xff] }
  0x24   : > { %382 = vadd.xlane.f32.xlu1 %v381_v39  ;;  %vm311_vm14 = vcmp.ne.f32.partialorder %v290_v47, 0.0  ;;  %v390_v56 = vsel %vm371_vm4, %v15650_v50, 0.0  ;;  %vm312_vm15 = vcmp.ne.f32.partialorder %v291_v51, 0.0  ;;  %v393_v59 = vsel %vm371_vm4, %v15655_v52, 0.0  ;;  %v294_v3 = vld [vmem:[%s15565_s18 + $0x70] sm:$0xff]  ;;  %v295_v7 = vld [vmem:[%s15565_s18 + $0x78] sm:$0xff] }
  0x25   : > { %v15670_v60 = vsel %vm15573_vm1, 1.0, %v12918_v53  ;;  %v15675_v62 = vsel %vm15578_vm2, 1.0, %v12919_v54  ;;  %v12920_v63 = vsel %vm311_vm14, 1.0, %v15462_v18  ;;  %v12921_v0 = vsel %vm312_vm15, 1.0, %v15462_v18  ;;  %v450_v4 = vld [vmem:[%s15556_s15 + $0x70] sm:$0xff]  ;;  %v451_v11 = vld [vmem:[%s15556_s15 + $0x78] sm:$0xff] }
  0x26   : > { %13820 = vmatmul.mubr.msk.f32.gmra.mrb[6].mxu0 %vm454_vm0, %v443_v34  ;;  %vm313_vm3 = vcmp.ne.f32.partialorder %v292_v57, 0.0  ;;  %v396_v2 = vsel %vm371_vm4, %v15670_v60, 0.0  ;;  %vm314_vm5 = vcmp.ne.f32.partialorder %v293_v61, 0.0  ;;  %v399_v5 = vsel %vm371_vm4, %v15675_v62, 0.0  ;;  %v12959_v29 = vld [vmem:[%s17338_s2 + $0x28] sm:$0xff]  ;;  %s15402_s15 = sshll.u32 %s15465_s25, 4  ;;  %s15403_s15 = int_to_ptr.vmem [resolvable:$false] %s15402_s15 }
  0x27   : > { %13822 = vmatprep.mubr.msk.f32.mxu0 %vm454_vm0, %v444_v38  ;;  %385 = vadd.xlane.f32.xlu0 %v384_v46  ;;  %v15690_v6 = vsel %vm15573_vm1, 1.0, %v12920_v63  ;;  %v15695_v8 = vsel %vm15578_vm2, 1.0, %v12921_v0  ;;  %v12922_v9 = vsel %vm313_vm3, 1.0, %v15462_v18  ;;  %v12923_v10 = vsel %vm314_vm5, 1.0, %v15462_v18  ;;  %s15404_s16 = scalar_lea.vmem %s15403_s15, 256  ;;  %p15405_p0 = scmp.lt.s32.totalorder %s17295_s10, %s15403_s15 }
  0x28   : > { %388 = vadd.xlane.f32.xlu1 %v387_v49  ;;  %vm315_vm6 = vcmp.ne.f32.partialorder %v294_v3, 0.0  ;;  %v402_v13 = vsel %vm371_vm4, %v15690_v6, 0.0  ;;  %vm316_vm7 = vcmp.ne.f32.partialorder %v295_v7, 0.0  ;;  %v405_v15 = vsel %vm371_vm4, %v15695_v8, 0.0  ;;  %p15406_p1 = scmp.lt.s32.totalorder %s15404_s16, %s15398_s14 }
  0x29   : > { %v15708_v16 = vsel %vm15573_vm1, 1.0, %v12922_v9  ;;  %v15712_v17 = vsel %vm15578_vm2, 1.0, %v12923_v10  ;;  %v12924_v19 = vsel %vm315_vm6, 1.0, %v15462_v18  ;;  %v12925_v20 = vsel %vm316_vm7, 1.0, %v15462_v18 }
  0x2a   : > { %13823 = vmatmul.mubr.msk.f32.gmra.mrb[8].mxu0 %vm454_vm0, %v445_v45  ;;  %v408_v21 = vsel %vm371_vm4, %v15708_v16, 0.0  ;;  %v411_v22 = vsel %vm371_vm4, %v15712_v17, 0.0  ;;  %v15723_v25 = vsel %vm15573_vm1, 1.0, %v12924_v19  ;;  %v15727_v26 = vsel %vm15578_vm2, 1.0, %v12925_v20  ;;  %p15407_p2 = por %p15406_p1, %p15405_p0 }
  0x2b   : > { %13825 = vmatprep.mubr.msk.f32.mxu0 %vm454_vm0, %v446_v48  ;;  %391 = vadd.xlane.f32.xlu0 %v390_v56  ;;  %v414_v27 = vsel %vm371_vm4, %v15723_v25, 0.0  ;;  %v417_v28 = vsel %vm371_vm4, %v15727_v26, 0.0  ;;  %v14956_v32 = vpack.c.bf16 %v12960_v14, %v12959_v29  ;;  %vm1370_vm2 = vcmask 261120  }
  0x2c   : > { %394 = vadd.xlane.f32.xlu1 %v393_v59  ;;  %vm15464_vm8 = vmmov 0   ;;  %vm7108_vm5 = vcmask 60416   ;;  %vm8867_vm6 = vcmask 27648   ;;  %p15408_p3 = pnand %p15407_p2, %p15401_p13 }
  0x2d   : > { %14957 = vmatprep.subr.bf16.mxu0 %v14956_v32 }
  0x2e   : > { %13826 = vmatmul.mubr.msk.f32.gmra.mrb[10].mxu0 %vm454_vm0, %v447_v55 }
  0x2f   : > { %13828 = vmatprep.mubr.msk.f32.mxu0 %vm454_vm0, %v448_v58  ;;  %397 = vadd.xlane.f32.xlu0 %v396_v2 }
  0x30   : > { %400 = vadd.xlane.f32.xlu1 %v399_v5  ;;  %14959 = vmatpush3.bf16.msra.mxu0 %v14956_v32 }
  0x32   : > { %13829 = vmatmul.mubr.msk.f32.gmra.mrb[12].mxu0 %vm454_vm0, %v449_v1 }
  0x33   : > { %13831 = vmatprep.mubr.msk.f32.mxu0 %vm454_vm0, %v450_v4  ;;  %403 = vadd.xlane.f32.xlu0 %v402_v13 }
  0x34   : > { %406 = vadd.xlane.f32.xlu1 %v405_v15 }
  0x36   : > { %13832 = vmatmul.mubr.msk.f32.gmra.mrb[14].mxu0 %vm454_vm0, %v451_v11 }
  0x37   : > { %409 = vadd.xlane.f32.xlu0 %v408_v21 }
  0x38   : > { %412 = vadd.xlane.f32.xlu1 %v411_v22 }
  0x3b   : > { %415 = vadd.xlane.f32.xlu0 %v414_v27 }
  0x3c   : > { %418 = vadd.xlane.f32.xlu1 %v417_v28 }
  0xac   : > { %v374_v34 = vpop.xlane.xlu0 %373 }
  0xad   : > { %v380_v33 = vpop.xlane.xlu1 %379 }
  0xb0   : > { %v377_v36 = vpop.xlane.xlu0 %376 }
  0xb1   : > { %v383_v35 = vpop.xlane.xlu1 %382  ;;  %15306 = vrsqrt.f32 %v377_v36 }
  0xb2   : > { %15308 = vrsqrt.f32 %v374_v34 }
  0xb3   : > { %15310 = vrsqrt.f32 %v383_v35 }
  0xb4   : > { %v386_v38 = vpop.xlane.xlu0 %385  ;;  %15312 = vrsqrt.f32 %v380_v33 }
  0xb5   : > { %v389_v37 = vpop.xlane.xlu1 %388 }
  0xb6   : > { %15314 = vrsqrt.f32 %v389_v37 }
  0xb7   : > { %15316 = vrsqrt.f32 %v386_v38 }
  0xb8   : > { %v392_v41 = vpop.xlane.xlu0 %391 }
  0xb9   : > { %v395_v39 = vpop.xlane.xlu1 %394 }
  0xba   : > { %15318 = vrsqrt.f32 %v395_v39 }
  0xbb   : > { %v15739_v45 = vpop.eup %15306  ;;  %15320 = vrsqrt.f32 %v392_v41 }
  0xbc   : > { %v398_v44 = vpop.xlane.xlu0 %397  ;;  %v15741_v47 = vpop.eup %15308 }
  0xbd   : > { %v401_v43 = vpop.xlane.xlu1 %400  ;;  %v15744_v53 = vpop.eup %15310 }
  0xbe   : > { %15322 = vrsqrt.f32 %v401_v43  ;;  %v15747_v58 = vpop.eup %15312 }
  0xbf   : > { %15324 = vrsqrt.f32 %v398_v44 }
  0xc0   : > { %v404_v55 = vpop.xlane.xlu0 %403  ;;  %v15750_v63 = vpop.eup %15314 }
  0xc1   : > { %v407_v51 = vpop.xlane.xlu1 %406  ;;  %v15753_v1 = vpop.eup %15316 }
  0xc2   : > { %15326 = vrsqrt.f32 %v407_v51 }
  0xc3   : > { %15328 = vrsqrt.f32 %v404_v55 }
  0xc4   : > { %v410_v5 = vpop.xlane.xlu0 %409  ;;  %v15756_v10 = vpop.eup %15318 }
  0xc5   : > { %v413_v2 = vpop.xlane.xlu1 %412  ;;  %v15761_v13 = vpop.eup %15320 }
  0xc6   : > { %15330 = vrsqrt.f32 %v413_v2 }
  0xc7   : > { %15332 = vrsqrt.f32 %v410_v5 }
  0xc8   : > { %v15766_v27 = vpop.eup %15322  ;;  %v416_v29 = vpop.xlane.xlu0 %415 }
  0xc9   : > { %v419_v22 = vpop.xlane.xlu1 %418  ;;  %v15771_v14 = vpop.eup %15324 }
  0xca   : > { %15334 = vrsqrt.f32 %v419_v22 }
  0xcb   : > { %15336 = vrsqrt.f32 %v416_v29 }
  0xcc   : > { %v15776_v36 = vpop.eup %15326 }
  0xcd   : > { %v15781_v38 = vpop.eup %15328 }
  0xed   : > { %v13812_v46 = vpop.f32.mrb[0].mxu0 }
  0xee   : > { %v649_v48 = vmul.f32 %v15739_v45, %v13812_v46  ;;  %v569_v49 = vpop.f32.mrb[1].mxu0  ;;  %v15786_v46 = vpop.eup %15330 }
  0xef   : > { %v648_v54 = vmul.f32 %v15741_v47, %v569_v49  ;;  %v15791_v49 = vpop.eup %15332 }
  0xf1   : > { %v13815_v56 = vpop.f32.mrb[2].mxu0  ;;  %v14924_v57 = vpack.c.bf16 %v649_v48, %v648_v54 }
  0xf2   : > { %v651_v59 = vmul.f32 %v15744_v53, %v13815_v56  ;;  %v579_v61 = vpop.f32.mrb[3].mxu0 }
  0xf3   : > { %v650_v0 = vmul.f32 %v15747_v58, %v579_v61  ;;  %14925 = vmatprep.subr.bf16.mxu1 %v14924_v57 }
  0xf4   : > { %14927 = vmatpush3.bf16.msra.mxu1 %v14924_v57  ;;  %v15796_v57 = vpop.eup %15334 }
  0xf5   : > { %v14928_v3 = vpack.c.bf16 %v651_v59, %v650_v0  ;;  %v13818_v4 = vpop.f32.mrb[4].mxu0  ;;  %v15801_v61 = vpop.eup %15336 }
  0xf6   : > { %v653_v7 = vmul.f32 %v15750_v63, %v13818_v4  ;;  %v589_v9 = vpop.f32.mrb[5].mxu0 }
  0xf7   : > { %v652_v11 = vmul.f32 %v15753_v1, %v589_v9  ;;  %13839 = vmatmul.mubr.msk.f32.vlgmr.msra.gmra.mrb[0].mxu1 %vm371_vm4, %v15597_v24  ;;  %14929 = vmatprep.subr.bf16.mxu1 %v14928_v3  ;;  %v12961_v9 = vld [vmem:[%s17338_s2 + $0x38] sm:$0xff] }
  0xf8   : > { %14931 = vmatpush3.bf16.msra.mxu1 %v14928_v3  ;;  %13845 = vmatprep.mubr.msk.f32.mxu1 %vm371_vm4, %v15607_v30 }
  0xf9   : > { %v14932_v15 = vpack.c.bf16 %v653_v7, %v652_v11  ;;  %v13821_v19 = vpop.f32.mrb[6].mxu0  ;;  %v12962_v11 = vld [vmem:[%s17338_s2 + $0x40] sm:$0xff] }
  0xfa   : > { %v655_v20 = vmul.f32 %v15756_v10, %v13821_v19  ;;  %v599_v21 = vpop.f32.mrb[7].mxu0  ;;  %v15828_v19 = vld [vmem:[%s17338_s2 + $0x20] ss:$0 sm:$0xff] }
  0xfb   : > { %v654_v28 = vmul.f32 %v15761_v13, %v599_v21  ;;  %13846 = vmatmul.mubr.msk.f32.vlgmr.msra.gmra.mrb[2].mxu1 %vm371_vm4, %v15611_v31  ;;  %14933 = vmatprep.subr.bf16.mxu1 %v14932_v15 }
  0xfc   : > { %14935 = vmatpush3.bf16.msra.mxu1 %v14932_v15  ;;  %13852 = vmatprep.mubr.msk.f32.mxu1 %vm371_vm4, %v15630_v40  ;;  %v14960_v15 = vpack.c.bf16 %v12962_v11, %v12961_v9 }
  0xfd   : > { %v14936_v32 = vpack.c.bf16 %v655_v20, %v654_v28  ;;  %v13824_v33 = vpop.f32.mrb[8].mxu0 }
  0xfe   : > { %v657_v34 = vmul.f32 %v15766_v27, %v13824_v33  ;;  %v609_v35 = vpop.f32.mrb[9].mxu0  ;;  %14961 = vmatprep.subr.bf16.mxu0 %v14960_v15 }
  0xff   : > { %v656_v37 = vmul.f32 %v15771_v14, %v609_v35  ;;  %13853 = vmatmul.mubr.msk.f32.vlgmr.msra.gmra.mrb[4].mxu1 %vm371_vm4, %v15635_v42  ;;  %14937 = vmatprep.subr.bf16.mxu1 %v14936_v32 }
 0x100   : > { %14939 = vmatpush3.bf16.msra.mxu1 %v14936_v32  ;;  %13859 = vmatprep.mubr.msk.f32.mxu1 %vm371_vm4, %v15650_v50 }
 0x101   : > { %v14940_v39 = vpack.c.bf16 %v657_v34, %v656_v37  ;;  %v13827_v41 = vpop.f32.mrb[10].mxu0  ;;  %14963 = vmatpush3.bf16.msra.mxu0 %v14960_v15 }
 0x102   : > { %v659_v43 = vmul.f32 %v15776_v36, %v13827_v41  ;;  %v619_v44 = vpop.f32.mrb[11].mxu0 }
 0x103   : > { %v658_v48 = vmul.f32 %v15781_v38, %v619_v44  ;;  %13860 = vmatmul.mubr.msk.f32.vlgmr.msra.gmra.mrb[6].mxu1 %vm371_vm4, %v15655_v52  ;;  %14941 = vmatprep.subr.bf16.mxu1 %v14940_v39 }
 0x104   : > { %14943 = vmatpush3.bf16.msra.mxu1 %v14940_v39  ;;  %13866 = vmatprep.mubr.msk.f32.mxu1 %vm371_vm4, %v15670_v60 }
 0x105   : > { %v14944_v51 = vpack.c.bf16 %v659_v43, %v658_v48  ;;  %v13830_v54 = vpop.f32.mrb[12].mxu0 }
 0x106   : > { %v661_v55 = vmul.f32 %v15786_v46, %v13830_v54  ;;  %v629_v56 = vpop.f32.mrb[13].mxu0 }
 0x107   : > { %v660_v59 = vmul.f32 %v15791_v49, %v629_v56  ;;  %13867 = vmatmul.mubr.msk.f32.vlgmr.msra.gmra.mrb[8].mxu1 %vm371_vm4, %v15675_v62  ;;  %14945 = vmatprep.subr.bf16.mxu1 %v14944_v51 }
 0x108   : > { %14947 = vmatpush3.bf16.msra.mxu1 %v14944_v51  ;;  %13873 = vmatprep.mubr.msk.f32.mxu1 %vm371_vm4, %v15690_v6 }
 0x109   : > { %v14948_v0 = vpack.c.bf16 %v661_v55, %v660_v59  ;;  %v13833_v2 = vpop.f32.mrb[14].mxu0 }
 0x10a   : > { %v663_v3 = vmul.f32 %v15796_v57, %v13833_v2  ;;  %v639_v4 = vpop.f32.mrb[15].mxu0 }
 0x10b   : > { %v662_v5 = vmul.f32 %v15801_v61, %v639_v4  ;;  %13874 = vmatmul.mubr.msk.f32.vlgmr.msra.gmra.mrb[10].mxu1 %vm371_vm4, %v15695_v8  ;;  %14949 = vmatprep.subr.bf16.mxu1 %v14948_v0 }
 0x10c   : > { %14951 = vmatpush3.bf16.msra.mxu1 %v14948_v0  ;;  %13880 = vmatprep.mubr.msk.f32.mxu1 %vm371_vm4, %v15708_v16 }
 0x10d   : > { %v14952_v7 = vpack.c.bf16 %v663_v3, %v662_v5 }
 0x10f   : > { %13881 = vmatmul.mubr.msk.f32.vlgmr.msra.gmra.mrb[12].mxu1 %vm371_vm4, %v15712_v17  ;;  %14953 = vmatprep.subr.bf16.mxu1 %v14952_v7 }
 0x110   : > { %14955 = vmatpush3.bf16.msra.mxu1 %v14952_v7  ;;  %13887 = vmatprep.mubr.msk.f32.mxu1 %vm371_vm4, %v15723_v25 }
 0x113   : > { %13888 = vmatmul.mubr.msk.f32.vlgmr.msra.gmra.mrb[14].mxu1 %vm371_vm4, %v15727_v26 }
 0x114   : > { %13926 = vmatprep.mubr.msk.f32.mxu1 %vm371_vm4, %v15593_v23 }
 0x1ca   : > { %v13840_v20 = vpop.f32.mrb[0].mxu1 }
 0x1cb   : > { %v1313_v21 = vmul.f32 %v15739_v45, %v13840_v20  ;;  %v736_v22 = vpop.f32.mrb[1].mxu1 }
 0x1cc   : > { %v1312_v28 = vmul.f32 %v15741_v47, %v736_v22 }
 0x1cd   : > { %v1333_v29 = vadd.f32 %v15828_v19, %v1313_v21 }
 0x1ce   : > { %v1332_v32 = vadd.f32 %v15828_v19, %v1312_v28  ;;  %v13847_v33 = vpop.f32.mrb[2].mxu1 }
 0x1cf   : > { %v1315_v34 = vmul.f32 %v15744_v53, %v13847_v33  ;;  %v817_v35 = vpop.f32.mrb[3].mxu1  ;;  %v1349_v41 = vmax.f32 %v1333_v29, 0.0 }
 0x1d0   : > { %v1348_v37 = vmax.f32 %v1332_v32, 0.0  ;;  %v1314_v39 = vmul.f32 %v15747_v58, %v817_v35 }
 0x1d1   : > { %v1335_v43 = vadd.f32 %v15828_v19, %v1315_v34 }
 0x1d2   : > { %v1334_v44 = vadd.f32 %v15828_v19, %v1314_v39  ;;  %v13854_v48 = vpop.f32.mrb[4].mxu1  ;;  %13898 = vmatprep.mubr.msk.f32.mxu0 %vm1370_vm2, %v1348_v37 }
 0x1d3   : > { %v1317_v51 = vmul.f32 %v15750_v63, %v13854_v48  ;;  %v898_v54 = vpop.f32.mrb[5].mxu1  ;;  %13899 = vmatmul.mubr.msk.f32.vlgmr.msra.gmra.mrb[16].mxu0 %vm1370_vm2, %v1349_v41  ;;  %v1351_v59 = vmax.f32 %v1335_v43, 0.0 }
 0x1d4   : > { %v1350_v55 = vmax.f32 %v1334_v44, 0.0  ;;  %v1316_v56 = vmul.f32 %v15753_v1, %v898_v54 }
 0x1d5   : > { %v1337_v0 = vadd.f32 %v15828_v19, %v1317_v51 }
 0x1d6   : > { %v1336_v2 = vadd.f32 %v15828_v19, %v1316_v56  ;;  %v13861_v3 = vpop.f32.mrb[6].mxu1  ;;  %13901 = vmatprep.mubr.msk.f32.mxu0 %vm1370_vm2, %v1350_v55 }
 0x1d7   : > { %v1319_v4 = vmul.f32 %v15756_v10, %v13861_v3  ;;  %v979_v5 = vpop.f32.mrb[7].mxu1  ;;  %13902 = vmatmul.mubr.msk.f32.gmra.mrb[18].mxu0 %vm1370_vm2, %v1351_v59  ;;  %v1353_v11 = vmax.f32 %v1337_v0, 0.0 }
 0x1d8   : > { %v1352_v7 = vmax.f32 %v1336_v2, 0.0  ;;  %v1318_v9 = vmul.f32 %v15761_v13, %v979_v5 }
 0x1d9   : > { %v1339_v15 = vadd.f32 %v15828_v19, %v1319_v4 }
 0x1da   : > { %v1338_v20 = vadd.f32 %v15828_v19, %v1318_v9  ;;  %v13868_v21 = vpop.f32.mrb[8].mxu1  ;;  %13904 = vmatprep.mubr.msk.f32.mxu0 %vm1370_vm2, %v1352_v7 }
 0x1db   : > { %v1321_v22 = vmul.f32 %v15766_v27, %v13868_v21  ;;  %v1060_v28 = vpop.f32.mrb[9].mxu1  ;;  %13905 = vmatmul.mubr.msk.f32.gmra.mrb[20].mxu0 %vm1370_vm2, %v1353_v11  ;;  %v1355_v33 = vmax.f32 %v1339_v15, 0.0 }
 0x1dc   : > { %v1354_v29 = vmax.f32 %v1338_v20, 0.0  ;;  %v1320_v32 = vmul.f32 %v15771_v14, %v1060_v28 }
 0x1dd   : > { %v1341_v34 = vadd.f32 %v15828_v19, %v1321_v22 }
 0x1de   : > { %v1340_v35 = vadd.f32 %v15828_v19, %v1320_v32  ;;  %v13875_v37 = vpop.f32.mrb[10].mxu1  ;;  %13907 = vmatprep.mubr.msk.f32.mxu0 %vm1370_vm2, %v1354_v29 }
 0x1df   : > { %v1323_v39 = vmul.f32 %v15776_v36, %v13875_v37  ;;  %v1141_v41 = vpop.f32.mrb[11].mxu1  ;;  %13908 = vmatmul.mubr.msk.f32.gmra.mrb[22].mxu0 %vm1370_vm2, %v1355_v33  ;;  %v1357_v48 = vmax.f32 %v1341_v34, 0.0  ;;  %v12997_v33 = vld [vmem:[%s17338_s2 + $0x50] sm:$0xff]  ;;  %v12998_v34 = vld [vmem:[%s17338_s2 + $0x58] sm:$0xff] }
 0x1e0   : > { %v1356_v43 = vmax.f32 %v1340_v35, 0.0  ;;  %v1322_v44 = vmul.f32 %v15781_v38, %v1141_v41  ;;  %v14996_v35 = vpack.c.bf16 %v12998_v34, %v12997_v33 }
 0x1e1   : > { %v1343_v51 = vadd.f32 %v15828_v19, %v1323_v39 }
 0x1e2   : > { %v1342_v54 = vadd.f32 %v15828_v19, %v1322_v44  ;;  %v13882_v55 = vpop.f32.mrb[12].mxu1  ;;  %13910 = vmatprep.mubr.msk.f32.mxu0 %vm1370_vm2, %v1356_v43  ;;  %14997 = vmatprep.subr.bf16.mxu0 %v14996_v35 }
 0x1e3   : > { %v1325_v56 = vmul.f32 %v15786_v46, %v13882_v55  ;;  %v1222_v59 = vpop.f32.mrb[13].mxu1  ;;  %13911 = vmatmul.mubr.msk.f32.gmra.mrb[24].mxu0 %vm1370_vm2, %v1357_v48  ;;  %v1359_v3 = vmax.f32 %v1343_v51, 0.0 }
 0x1e4   : > { %v1358_v0 = vmax.f32 %v1342_v54, 0.0  ;;  %v1324_v2 = vmul.f32 %v15791_v49, %v1222_v59  ;;  %14999 = vmatpush3.bf16.msra.mxu0 %v14996_v35 }
 0x1e5   : > { %v1345_v4 = vadd.f32 %v15828_v19, %v1325_v56 }
 0x1e6   : > { %v1344_v5 = vadd.f32 %v15828_v19, %v1324_v2  ;;  %v13889_v7 = vpop.f32.mrb[14].mxu1  ;;  %13913 = vmatprep.mubr.msk.f32.mxu0 %vm1370_vm2, %v1358_v0 }
 0x1e7   : > { %v1327_v9 = vmul.f32 %v15796_v57, %v13889_v7  ;;  %v1303_v11 = vpop.f32.mrb[15].mxu1  ;;  %13914 = vmatmul.mubr.msk.f32.gmra.mrb[26].mxu0 %vm1370_vm2, %v1359_v3  ;;  %v1361_v21 = vmax.f32 %v1345_v4, 0.0 }
 0x1e8   : > { %v1360_v15 = vmax.f32 %v1344_v5, 0.0  ;;  %v1326_v20 = vmul.f32 %v15801_v61, %v1303_v11 }
 0x1e9   : > { %v1347_v22 = vadd.f32 %v15828_v19, %v1327_v9 }
 0x1ea   : > { %v1346_v28 = vadd.f32 %v15828_v19, %v1326_v20  ;;  %13916 = vmatprep.mubr.msk.f32.mxu0 %vm1370_vm2, %v1360_v15 }
 0x1eb   : > { %13917 = vmatmul.mubr.msk.f32.gmra.mrb[28].mxu0 %vm1370_vm2, %v1361_v21  ;;  %v1363_v32 = vmax.f32 %v1347_v22, 0.0 }
 0x1ec   : > { %v1362_v29 = vmax.f32 %v1346_v28, 0.0 }
 0x1ee   : > { %13919 = vmatprep.mubr.msk.f32.mxu0 %vm1370_vm2, %v1362_v29 }
 0x1ef   : > { %13920 = vmatmul.mubr.msk.f32.gmra.mrb[30].mxu0 %vm1370_vm2, %v1363_v32 }
 0x2a6   : > { %v13900_v19 = vpop.f32.mrb[16].mxu0 }
 0x2a7   : > { %v1565_v37 = vmul.f32 %v15739_v45, %v13900_v19  ;;  %v1485_v39 = vpop.f32.mrb[17].mxu0 }
 0x2a8   : > { %v1564_v41 = vmul.f32 %v15741_v47, %v1485_v39 }
 0x2aa   : > { %v14964_v43 = vpack.c.bf16 %v1565_v37, %v1564_v41  ;;  %v13903_v44 = vpop.f32.mrb[18].mxu0 }
 0x2ab   : > { %v1567_v48 = vmul.f32 %v15744_v53, %v13903_v44  ;;  %v1495_v51 = vpop.f32.mrb[19].mxu0 }
 0x2ac   : > { %v1566_v54 = vmul.f32 %v15747_v58, %v1495_v51  ;;  %14965 = vmatprep.subr.bf16.mxu1 %v14964_v43 }
 0x2ad   : > { %14967 = vmatpush3.bf16.msra.mxu1 %v14964_v43 }
 0x2ae   : > { %v14968_v55 = vpack.c.bf16 %v1567_v48, %v1566_v54  ;;  %v13906_v56 = vpop.f32.mrb[20].mxu0 }
 0x2af   : > { %v1569_v59 = vmul.f32 %v15750_v63, %v13906_v56  ;;  %v1505_v0 = vpop.f32.mrb[21].mxu0  ;;  %v12999_v56 = vld [vmem:[%s17338_s2 + $0x60] sm:$0xff] }
 0x2b0   : > { %v1568_v2 = vmul.f32 %v15753_v1, %v1505_v0  ;;  %13927 = vmatmul.mubr.msk.f32.vlgmr.msra.gmra.mrb[16].mxu1 %vm371_vm4, %v15597_v24  ;;  %14969 = vmatprep.subr.bf16.mxu1 %v14968_v55 }
 0x2b1   : > { %14971 = vmatpush3.bf16.msra.mxu1 %v14968_v55  ;;  %13933 = vmatprep.mubr.msk.f32.mxu1 %vm371_vm4, %v15607_v30 }
 0x2b2   : > { %v14972_v3 = vpack.c.bf16 %v1569_v59, %v1568_v2  ;;  %v13909_v4 = vpop.f32.mrb[22].mxu0  ;;  %v13000_v59 = vld [vmem:[%s17338_s2 + $0x68] sm:$0xff] }
 0x2b3   : > { %v1571_v5 = vmul.f32 %v15756_v10, %v13909_v4  ;;  %v1515_v7 = vpop.f32.mrb[23].mxu0  ;;  %v15000_v0 = vpack.c.bf16 %v13000_v59, %v12999_v56  ;;  %v15941_v2 = vld [vmem:[%s17338_s2 + $0x48] ss:$0 sm:$0xff] }
 0x2b4   : > { %v1570_v9 = vmul.f32 %v15761_v13, %v1515_v7  ;;  %13934 = vmatmul.mubr.msk.f32.vlgmr.msra.gmra.mrb[18].mxu1 %vm371_vm4, %v15611_v31  ;;  %14973 = vmatprep.subr.bf16.mxu1 %v14972_v3 }
 0x2b5   : > { %14975 = vmatpush3.bf16.msra.mxu1 %v14972_v3  ;;  %13940 = vmatprep.mubr.msk.f32.mxu1 %vm371_vm4, %v15630_v40 }
 0x2b6   : > { %v14976_v11 = vpack.c.bf16 %v1571_v5, %v1570_v9  ;;  %v13912_v15 = vpop.f32.mrb[24].mxu0  ;;  %15001 = vmatprep.subr.bf16.mxu0 %v15000_v0 }
 0x2b7   : > { %v1573_v20 = vmul.f32 %v15766_v27, %v13912_v15  ;;  %v1525_v21 = vpop.f32.mrb[25].mxu0  ;;  %15003 = vmatpush3.bf16.msra.mxu0 %v15000_v0 }
 0x2b8   : > { %v1572_v22 = vmul.f32 %v15771_v14, %v1525_v21  ;;  %13941 = vmatmul.mubr.msk.f32.vlgmr.msra.gmra.mrb[20].mxu1 %vm371_vm4, %v15635_v42  ;;  %14977 = vmatprep.subr.bf16.mxu1 %v14976_v11 }
 0x2b9   : > { %14979 = vmatpush3.bf16.msra.mxu1 %v14976_v11  ;;  %13947 = vmatprep.mubr.msk.f32.mxu1 %vm371_vm4, %v15650_v50 }
 0x2ba   : > { %v14980_v28 = vpack.c.bf16 %v1573_v20, %v1572_v22  ;;  %v13915_v29 = vpop.f32.mrb[26].mxu0 }
 0x2bb   : > { %v1575_v32 = vmul.f32 %v15776_v36, %v13915_v29  ;;  %v1535_v33 = vpop.f32.mrb[27].mxu0 }
 0x2bc   : > { %v1574_v34 = vmul.f32 %v15781_v38, %v1535_v33  ;;  %13948 = vmatmul.mubr.msk.f32.vlgmr.msra.gmra.mrb[22].mxu1 %vm371_vm4, %v15655_v52  ;;  %14981 = vmatprep.subr.bf16.mxu1 %v14980_v28 }
 0x2bd   : > { %14983 = vmatpush3.bf16.msra.mxu1 %v14980_v28  ;;  %13954 = vmatprep.mubr.msk.f32.mxu1 %vm371_vm4, %v15670_v60 }
 0x2be   : > { %v14984_v35 = vpack.c.bf16 %v1575_v32, %v1574_v34  ;;  %v13918_v19 = vpop.f32.mrb[28].mxu0 }
 0x2bf   : > { %v1577_v37 = vmul.f32 %v15786_v46, %v13918_v19  ;;  %v1545_v39 = vpop.f32.mrb[29].mxu0 }
 0x2c0   : > { %v1576_v41 = vmul.f32 %v15791_v49, %v1545_v39  ;;  %13955 = vmatmul.mubr.msk.f32.vlgmr.msra.gmra.mrb[24].mxu1 %vm371_vm4, %v15675_v62  ;;  %14985 = vmatprep.subr.bf16.mxu1 %v14984_v35 }
 0x2c1   : > { %14987 = vmatpush3.bf16.msra.mxu1 %v14984_v35  ;;  %13961 = vmatprep.mubr.msk.f32.mxu1 %vm371_vm4, %v15690_v6 }
 0x2c2   : > { %v14988_v43 = vpack.c.bf16 %v1577_v37, %v1576_v41  ;;  %v13921_v44 = vpop.f32.mrb[30].mxu0 }
 0x2c3   : > { %v1579_v48 = vmul.f32 %v15796_v57, %v13921_v44  ;;  %v1555_v51 = vpop.f32.mrb[31].mxu0 }
 0x2c4   : > { %v1578_v54 = vmul.f32 %v15801_v61, %v1555_v51  ;;  %13962 = vmatmul.mubr.msk.f32.vlgmr.msra.gmra.mrb[26].mxu1 %vm371_vm4, %v15695_v8  ;;  %14989 = vmatprep.subr.bf16.mxu1 %v14988_v43 }
 0x2c5   : > { %14991 = vmatpush3.bf16.msra.mxu1 %v14988_v43  ;;  %13968 = vmatprep.mubr.msk.f32.mxu1 %vm371_vm4, %v15708_v16 }
 0x2c6   : > { %v14992_v55 = vpack.c.bf16 %v1579_v48, %v1578_v54 }
 0x2c8   : > { %13969 = vmatmul.mubr.msk.f32.vlgmr.msra.gmra.mrb[28].mxu1 %vm371_vm4, %v15712_v17  ;;  %14993 = vmatprep.subr.bf16.mxu1 %v14992_v55 }
 0x2c9   : > { %14995 = vmatpush3.bf16.msra.mxu1 %v14992_v55  ;;  %13975 = vmatprep.mubr.msk.f32.mxu1 %vm371_vm4, %v15723_v25 }
 0x2cc   : > { %13976 = vmatmul.mubr.msk.f32.vlgmr.msra.gmra.mrb[30].mxu1 %vm371_vm4, %v15727_v26 }
 0x2cd   : > { %14014 = vmatprep.mubr.msk.f32.mxu1 %vm371_vm4, %v15593_v23 }
 0x383   : > { %v13928_v3 = vpop.f32.mrb[16].mxu1 }
 0x384   : > { %v2181_v4 = vmul.f32 %v15739_v45, %v13928_v3  ;;  %v1646_v23 = vpop.f32.mrb[17].mxu1 }
 0x385   : > { %v2180_v5 = vmul.f32 %v15741_v47, %v1646_v23 }
 0x386   : > { %v2201_v7 = vadd.f32 %v15941_v2, %v2181_v4 }
 0x387   : > { %v2200_v9 = vadd.f32 %v15941_v2, %v2180_v5  ;;  %v13935_v11 = vpop.f32.mrb[18].mxu1 }
 0x388   : > { %v2183_v15 = vmul.f32 %v15744_v53, %v13935_v11  ;;  %v1721_v20 = vpop.f32.mrb[19].mxu1  ;;  %v2217_v28 = vmax.f32 %v2201_v7, 0.0 }
 0x389   : > { %v2216_v21 = vmax.f32 %v2200_v9, 0.0  ;;  %v2182_v22 = vmul.f32 %v15747_v58, %v1721_v20 }
 0x38a   : > { %v2203_v29 = vadd.f32 %v15941_v2, %v2183_v15 }
 0x38b   : > { %v2202_v32 = vadd.f32 %v15941_v2, %v2182_v22  ;;  %v13942_v33 = vpop.f32.mrb[20].mxu1  ;;  %13986 = vmatprep.mubr.msk.f32.mxu0 %vm1370_vm2, %v2216_v21 }
 0x38c   : > { %v2185_v34 = vmul.f32 %v15750_v63, %v13942_v33  ;;  %v1796_v35 = vpop.f32.mrb[21].mxu1  ;;  %13987 = vmatmul.mubr.msk.f32.vlgmr.msra.gmra.mrb[32].mxu0 %vm1370_vm2, %v2217_v28  ;;  %v2219_v39 = vmax.f32 %v2203_v29, 0.0 }
 0x38d   : > { %v2218_v19 = vmax.f32 %v2202_v32, 0.0  ;;  %v2184_v37 = vmul.f32 %v15753_v1, %v1796_v35 }
 0x38e   : > { %v2205_v41 = vadd.f32 %v15941_v2, %v2185_v34 }
 0x38f   : > { %v2204_v43 = vadd.f32 %v15941_v2, %v2184_v37  ;;  %v13949_v44 = vpop.f32.mrb[22].mxu1  ;;  %13989 = vmatprep.mubr.msk.f32.mxu0 %vm1370_vm2, %v2218_v19 }
 0x390   : > { %v2187_v48 = vmul.f32 %v15756_v10, %v13949_v44  ;;  %v1871_v51 = vpop.f32.mrb[23].mxu1  ;;  %13990 = vmatmul.mubr.msk.f32.gmra.mrb[34].mxu0 %vm1370_vm2, %v2219_v39  ;;  %v2221_v56 = vmax.f32 %v2205_v41, 0.0 }
 0x391   : > { %v2220_v54 = vmax.f32 %v2204_v43, 0.0  ;;  %v2186_v55 = vmul.f32 %v15761_v13, %v1871_v51 }
 0x392   : > { %v2207_v59 = vadd.f32 %v15941_v2, %v2187_v48 }
 0x393   : > { %v2206_v0 = vadd.f32 %v15941_v2, %v2186_v55  ;;  %v13956_v3 = vpop.f32.mrb[24].mxu1  ;;  %13992 = vmatprep.mubr.msk.f32.mxu0 %vm1370_vm2, %v2220_v54 }
 0x394   : > { %v2189_v4 = vmul.f32 %v15766_v27, %v13956_v3  ;;  %v1946_v23 = vpop.f32.mrb[25].mxu1  ;;  %13993 = vmatmul.mubr.msk.f32.gmra.mrb[36].mxu0 %vm1370_vm2, %v2221_v56  ;;  %v2223_v9 = vmax.f32 %v2207_v59, 0.0 }
 0x395   : > { %v2222_v5 = vmax.f32 %v2206_v0, 0.0  ;;  %v2188_v7 = vmul.f32 %v15771_v14, %v1946_v23 }
 0x396   : > { %v2209_v11 = vadd.f32 %v15941_v2, %v2189_v4 }
 0x397   : > { %v2208_v15 = vadd.f32 %v15941_v2, %v2188_v7  ;;  %v13963_v20 = vpop.f32.mrb[26].mxu1  ;;  %13995 = vmatprep.mubr.msk.f32.mxu0 %vm1370_vm2, %v2222_v5 }
 0x398   : > { %v2191_v21 = vmul.f32 %v15776_v36, %v13963_v20  ;;  %v2021_v22 = vpop.f32.mrb[27].mxu1  ;;  %13996 = vmatmul.mubr.msk.f32.gmra.mrb[38].mxu0 %vm1370_vm2, %v2223_v9  ;;  %v2225_v32 = vmax.f32 %v2209_v11, 0.0 }
 0x399   : > { %v2224_v28 = vmax.f32 %v2208_v15, 0.0  ;;  %v2190_v29 = vmul.f32 %v15781_v38, %v2021_v22 }
 0x39a   : > { %v2211_v33 = vadd.f32 %v15941_v2, %v2191_v21 }
 0x39b   : > { %v2210_v34 = vadd.f32 %v15941_v2, %v2190_v29  ;;  %v13970_v35 = vpop.f32.mrb[28].mxu1  ;;  %13998 = vmatprep.mubr.msk.f32.mxu0 %vm1370_vm2, %v2224_v28 }
 0x39c   : > { %v2193_v19 = vmul.f32 %v15786_v46, %v13970_v35  ;;  %v2096_v37 = vpop.f32.mrb[29].mxu1  ;;  %13999 = vmatmul.mubr.msk.f32.gmra.mrb[40].mxu0 %vm1370_vm2, %v2225_v32  ;;  %v2227_v43 = vmax.f32 %v2211_v33, 0.0 }
 0x39d   : > { %v2226_v39 = vmax.f32 %v2210_v34, 0.0  ;;  %v2192_v41 = vmul.f32 %v15791_v49, %v2096_v37 }
 0x39e   : > { %v2213_v44 = vadd.f32 %v15941_v2, %v2193_v19 }
 0x39f   : > { %v2212_v48 = vadd.f32 %v15941_v2, %v2192_v41  ;;  %v13977_v51 = vpop.f32.mrb[30].mxu1  ;;  %14001 = vmatprep.mubr.msk.f32.mxu0 %vm1370_vm2, %v2226_v39 }
 0x3a0   : > { %v2195_v54 = vmul.f32 %v15796_v57, %v13977_v51  ;;  %v2171_v55 = vpop.f32.mrb[31].mxu1  ;;  %14002 = vmatmul.mubr.msk.f32.gmra.mrb[42].mxu0 %vm1370_vm2, %v2227_v43  ;;  %v2229_v0 = vmax.f32 %v2213_v44, 0.0 }
 0x3a1   : > { %v2228_v56 = vmax.f32 %v2212_v48, 0.0  ;;  %v2194_v59 = vmul.f32 %v15801_v61, %v2171_v55 }
 0x3a2   : > { %v2215_v3 = vadd.f32 %v15941_v2, %v2195_v54 }
 0x3a3   : > { %v2214_v4 = vadd.f32 %v15941_v2, %v2194_v59  ;;  %14004 = vmatprep.mubr.msk.f32.mxu0 %vm1370_vm2, %v2228_v56 }
 0x3a4   : > { %14005 = vmatmul.mubr.msk.f32.gmra.mrb[44].mxu0 %vm1370_vm2, %v2229_v0  ;;  %v2231_v5 = vmax.f32 %v2215_v3, 0.0 }
 0x3a5   : > { %v2230_v23 = vmax.f32 %v2214_v4, 0.0 }
 0x3a7   : > { %14007 = vmatprep.mubr.msk.f32.mxu0 %vm1370_vm2, %v2230_v23 }
 0x3a8   : > { %14008 = vmatmul.mubr.msk.f32.gmra.mrb[46].mxu0 %vm1370_vm2, %v2231_v5 }
 0x3a9   : > { %14070 = vmatprep.mubr.msk.f32.mxu0 %vm15464_vm8, %v15462_v18 }
 0x45f   : > { %v13988_v7 = vpop.f32.mrb[32].mxu0 }
 0x460   : > { %v2432_v9 = vmul.f32 %v15739_v45, %v13988_v7  ;;  %v2352_v11 = vpop.f32.mrb[33].mxu0 }
 0x461   : > { %v2431_v15 = vmul.f32 %v15741_v47, %v2352_v11 }
 0x463   : > { %v15004_v20 = vpack.c.bf16 %v2432_v9, %v2431_v15  ;;  %v13991_v21 = vpop.f32.mrb[34].mxu0 }
 0x464   : > { %v2434_v2 = vmul.f32 %v15744_v53, %v13991_v21  ;;  %v2362_v22 = vpop.f32.mrb[35].mxu0 }
 0x465   : > { %v2433_v28 = vmul.f32 %v15747_v58, %v2362_v22  ;;  %15005 = vmatprep.subr.bf16.mxu1 %v15004_v20 }
 0x466   : > { %15007 = vmatpush3.bf16.msra.mxu1 %v15004_v20 }
 0x467   : > { %v15008_v29 = vpack.c.bf16 %v2434_v2, %v2433_v28  ;;  %v13994_v32 = vpop.f32.mrb[36].mxu0 }
 0x468   : > { %v2436_v33 = vmul.f32 %v15750_v63, %v13994_v32  ;;  %v2372_v34 = vpop.f32.mrb[37].mxu0 }
 0x469   : > { %v2435_v35 = vmul.f32 %v15753_v1, %v2372_v34  ;;  %14015 = vmatmul.mubr.msk.f32.vlgmr.msra.gmra.mrb[32].mxu1 %vm371_vm4, %v15597_v24  ;;  %15009 = vmatprep.subr.bf16.mxu1 %v15008_v29 }
 0x46a   : > { %15011 = vmatpush3.bf16.msra.mxu1 %v15008_v29  ;;  %14021 = vmatprep.mubr.msk.f32.mxu1 %vm371_vm4, %v15607_v30 }
 0x46b   : > { %v15012_v19 = vpack.c.bf16 %v2436_v33, %v2435_v35  ;;  %v13997_v37 = vpop.f32.mrb[38].mxu0  ;;  %v16051_v35 = vld [vmem:[%s17338_s2 + $0x70] ss:$0 sm:$0xff] }
 0x46c   : > { %v2438_v39 = vmul.f32 %v15756_v10, %v13997_v37  ;;  %v2382_v41 = vpop.f32.mrb[39].mxu0 }
 0x46d   : > { %v2437_v43 = vmul.f32 %v15761_v13, %v2382_v41  ;;  %14022 = vmatmul.mubr.msk.f32.vlgmr.msra.gmra.mrb[34].mxu1 %vm371_vm4, %v15611_v31  ;;  %15013 = vmatprep.subr.bf16.mxu1 %v15012_v19 }
 0x46e   : > { %15015 = vmatpush3.bf16.msra.mxu1 %v15012_v19  ;;  %14028 = vmatprep.mubr.msk.f32.mxu1 %vm371_vm4, %v15630_v40 }
 0x46f   : > { %v15016_v24 = vpack.c.bf16 %v2438_v39, %v2437_v43  ;;  %v14000_v44 = vpop.f32.mrb[40].mxu0 }
 0x470   : > { %v2440_v48 = vmul.f32 %v15766_v27, %v14000_v44  ;;  %v2392_v30 = vpop.f32.mrb[41].mxu0 }
 0x471   : > { %v2439_v51 = vmul.f32 %v15771_v14, %v2392_v30  ;;  %14029 = vmatmul.mubr.msk.f32.vlgmr.msra.gmra.mrb[36].mxu1 %vm371_vm4, %v15635_v42  ;;  %15017 = vmatprep.subr.bf16.mxu1 %v15016_v24 }
 0x472   : > { %15019 = vmatpush3.bf16.msra.mxu1 %v15016_v24  ;;  %14035 = vmatprep.mubr.msk.f32.mxu1 %vm371_vm4, %v15650_v50 }
 0x473   : > { %v15020_v31 = vpack.c.bf16 %v2440_v48, %v2439_v51  ;;  %v14003_v54 = vpop.f32.mrb[42].mxu0 }
 0x474   : > { %v2442_v55 = vmul.f32 %v15776_v36, %v14003_v54  ;;  %v2402_v40 = vpop.f32.mrb[43].mxu0 }
 0x475   : > { %v2441_v56 = vmul.f32 %v15781_v38, %v2402_v40  ;;  %14036 = vmatmul.mubr.msk.f32.vlgmr.msra.gmra.mrb[38].mxu1 %vm371_vm4, %v15655_v52  ;;  %15021 = vmatprep.subr.bf16.mxu1 %v15020_v31 }
 0x476   : > { %15023 = vmatpush3.bf16.msra.mxu1 %v15020_v31  ;;  %14042 = vmatprep.mubr.msk.f32.mxu1 %vm371_vm4, %v15670_v60 }
 0x477   : > { %v15024_v42 = vpack.c.bf16 %v2442_v55, %v2441_v56  ;;  %v14006_v59 = vpop.f32.mrb[44].mxu0 }
 0x478   : > { %v2444_v0 = vmul.f32 %v15786_v46, %v14006_v59  ;;  %v2412_v50 = vpop.f32.mrb[45].mxu0 }
 0x479   : > { %v2443_v3 = vmul.f32 %v15791_v49, %v2412_v50  ;;  %14043 = vmatmul.mubr.msk.f32.vlgmr.msra.gmra.mrb[40].mxu1 %vm371_vm4, %v15675_v62  ;;  %15025 = vmatprep.subr.bf16.mxu1 %v15024_v42 }
 0x47a   : > { %15027 = vmatpush3.bf16.msra.mxu1 %v15024_v42  ;;  %14049 = vmatprep.mubr.msk.f32.mxu1 %vm371_vm4, %v15690_v6  ;;  %v15463_v6 = vmov 0.0|0.0  }
 0x47b   : > { %v15028_v52 = vpack.c.bf16 %v2444_v0, %v2443_v3  ;;  %v14009_v4 = vpop.f32.mrb[46].mxu0  ;;  %15036 = vmatprep.subr.bf16.mxu0 %v15463_v6 }
 0x47c   : > { %v2446_v23 = vmul.f32 %v15796_v57, %v14009_v4  ;;  %v2422_v60 = vpop.f32.mrb[47].mxu0 }
 0x47d   : > { %v2445_v5 = vmul.f32 %v15801_v61, %v2422_v60  ;;  %14050 = vmatmul.mubr.msk.f32.vlgmr.msra.gmra.mrb[42].mxu1 %vm371_vm4, %v15695_v8  ;;  %15029 = vmatprep.subr.bf16.mxu1 %v15028_v52  ;;  %v3099_v8 = vld [vmem:[%s17339_s3] sm:$0xff] }
 0x47e   : > { %15031 = vmatpush3.bf16.msra.mxu1 %v15028_v52  ;;  %14056 = vmatprep.mubr.msk.f32.mxu1 %vm371_vm4, %v15708_v16  ;;  %v3100_v16 = vsel %vm371_vm4, %v3099_v8, -inf }
 0x47f   : > { %v15032_v62 = vpack.c.bf16 %v2446_v23, %v2445_v5 }
 0x481   : > { %14057 = vmatmul.mubr.msk.f32.vlgmr.msra.gmra.mrb[44].mxu1 %vm371_vm4, %v15712_v17  ;;  %15033 = vmatprep.subr.bf16.mxu1 %v15032_v62  ;;  %v3101_v17 = vrot.slane %v3100_v16, 4 }
 0x482   : > { %15035 = vmatpush3.bf16.msra.mxu1 %v15032_v62  ;;  %14063 = vmatprep.mubr.msk.f32.mxu1 %vm371_vm4, %v15723_v25 }
 0x483   : > { %15039 = vmatprep.subr.bf16.mxu1 %v15463_v6  ;;  %v3102_v25 = vmax.f32 %v3100_v16, %v3101_v17 }
 0x485   : > { %14064 = vmatmul.mubr.msk.f32.vlgmr.msra.gmra.mrb[46].mxu1 %vm371_vm4, %v15727_v26  ;;  %v3103_v26 = vrot.slane %v3102_v25, 2 }
 0x486   : > { %14077 = vmatprep.mubr.msk.f32.mxu1 %vm15464_vm8, %v15462_v18 }
 0x487   : > { %v3104_v7 = vmax.f32 %v3102_v25, %v3103_v26 }
 0x489   : > { %v3105_v9 = vrot.slane %v3104_v7, 1 }
 0x48b   : > { %v3106_v11 = vmax.f32 %v3104_v7, %v3105_v9 }
 0x48d   : > { %v3107_v15 = vsub.f32 %v3099_v8, %v3106_v11 }
 0x48f   : > { %v3108_v20 = vmul.f32 1.442695, %v3107_v15 }
 0x491   : > { %15338 = vpow2.f32 %v3108_v20 }
 0x49b   : > { %v15339_v21 = vpop.eup %15338 }
 0x49c   : > { %v3110_v2 = vsel %vm371_vm4, %v15339_v21, 0.0 }
 0x49d   : > { %v3111_v22 = vrot.slane %v3110_v2, 4 }
 0x49f   : > { %v3112_v28 = vadd.f32 %v3111_v22, %v3110_v2 }
 0x4a1   : > { %v3113_v29 = vrot.slane %v3112_v28, 2 }
 0x4a3   : > { %v3114_v32 = vadd.f32 %v3113_v29, %v3112_v28 }
 0x4a5   : > { %v3115_v33 = vrot.slane %v3114_v32, 1 }
 0x4a7   : > { %v3116_v34 = vadd.f32 %v3115_v33, %v3114_v32 }
 0x4a9   : > { %15340 = vrcp.f32 %v3116_v34 }
 0x4b3   : > { %v15341_v31 = vpop.eup %15340 }
 0x4b4   : > { %v16062_v50 = vmul.f32 %v15341_v31, %v15339_v21 }
 0x53c   : > { %v14016_v19 = vpop.f32.mrb[32].mxu1 }
 0x53d   : > { %v3048_v37 = vmul.f32 %v15739_v45, %v14016_v19  ;;  %v2513_v39 = vpop.f32.mrb[33].mxu1 }
 0x53e   : > { %v3047_v41 = vmul.f32 %v15741_v47, %v2513_v39 }
 0x53f   : > { %v3068_v43 = vadd.f32 %v16051_v35, %v3048_v37 }
 0x540   : > { %v3067_v24 = vadd.f32 %v16051_v35, %v3047_v41  ;;  %v14023_v44 = vpop.f32.mrb[34].mxu1 }
 0x541   : > { %v3084_v48 = vmax.f32 %v3068_v43, 0.0  ;;  %v3050_v30 = vmul.f32 %v15744_v53, %v14023_v44  ;;  %v2588_v51 = vpop.f32.mrb[35].mxu1 }
 0x542   : > { %v3083_v54 = vmax.f32 %v3067_v24, 0.0  ;;  %v3049_v55 = vmul.f32 %v15747_v58, %v2588_v51 }
 0x543   : > { %v3070_v40 = vadd.f32 %v16051_v35, %v3050_v30 }
 0x544   : > { %v15037_v56 = vpack.c.bf16 %v3084_v48, %v3083_v54  ;;  %v3069_v45 = vadd.f32 %v16051_v35, %v3049_v55  ;;  %v14030_v42 = vpop.f32.mrb[36].mxu1 }
 0x545   : > { %v3086_v47 = vmax.f32 %v3070_v40, 0.0  ;;  %v3052_v59 = vmul.f32 %v15750_v63, %v14030_v42  ;;  %v2663_v0 = vpop.f32.mrb[37].mxu1  ;;  %v15382_v40 = vld [vmem:[%s15565_s18] sm:$0xff] }
 0x546   : > { %v3085_v3 = vmax.f32 %v3069_v45, 0.0  ;;  %v3051_v53 = vmul.f32 %v15753_v1, %v2663_v0  ;;  %15038 = vmatpush3.bf16.msra.mxu0 %v15037_v56  ;;  %v15383_v56 = vld [vmem:[%s15565_s18 + $0x8] sm:$0xff] }
 0x547   : > { %v3072_v52 = vadd.f32 %v16051_v35, %v3052_v59  ;;  %15042 = vmatprep.subr.bf16.mxu0 %v15463_v6  ;;  %v15061_v45 = vpack.c.bf16 %v15383_v56, %v15382_v40  ;;  %v15386_v0 = vld [vmem:[%s15565_s18 + $0x28] sm:$0xff] }
 0x548   : > { %v15040_v58 = vpack.c.bf16 %v3086_v47, %v3085_v3  ;;  %v3071_v4 = vadd.f32 %v16051_v35, %v3051_v53  ;;  %v14037_v23 = vpop.f32.mrb[38].mxu1  ;;  %v15385_v47 = vld [vmem:[%s15565_s18 + $0x18] sm:$0xff]  ;;  %v15387_v3 = vld [vmem:[%s15565_s18 + $0x20] sm:$0xff] }
 0x549   : > { %v3088_v60 = vmax.f32 %v3072_v52, 0.0  ;;  %v3054_v5 = vmul.f32 %v15756_v10, %v14037_v23  ;;  %v2738_v62 = vpop.f32.mrb[39].mxu1  ;;  %14071 = vmatmul.mubr.msk.f32.vlgmr.msra.gmra.mrb[48].mxu0 %vm371_vm4, %v16062_v50  ;;  %v15067_v53 = vpack.c.bf16 %v15386_v0, %v15387_v3  ;;  %v15388_v52 = vld [vmem:[%s15565_s18 + $0x38] sm:$0xff]  ;;  %v15390_v23 = vld [vmem:[%s15565_s18 + $0x40] sm:$0xff] }
 0x54a   : > { %v3087_v63 = vmax.f32 %v3071_v4, 0.0  ;;  %v3053_v8 = vmul.f32 %v15761_v13, %v2738_v62  ;;  %15041 = vmatpush3.bf16.msra.mxu1 %v15040_v58  ;;  %14084 = vmatprep.mubr.msk.f32.mxu0 %vm15464_vm8, %v15462_v18  ;;  %v15389_v58 = vld [vmem:[%s15565_s18 + $0x30] sm:$0xff] }
 0x54b   : > { %v3074_v1 = vadd.f32 %v16051_v35, %v3054_v5  ;;  %15045 = vmatprep.subr.bf16.mxu1 %v15463_v6  ;;  %v15070_v4 = vpack.c.bf16 %v15388_v52, %v15389_v58  ;;  %v15392_v62 = vld [vmem:[%s15565_s18 + $0x50] sm:$0xff] }
 0x54c   : > { %v15043_v16 = vpack.c.bf16 %v3088_v60, %v3087_v63  ;;  %v3073_v17 = vadd.f32 %v16051_v35, %v3053_v8  ;;  %v14044_v25 = vpop.f32.mrb[40].mxu1  ;;  %v15391_v60 = vld [vmem:[%s15565_s18 + $0x48] sm:$0xff]  ;;  %v15393_v63 = vld [vmem:[%s15565_s18 + $0x58] sm:$0xff] }
 0x54d   : > { %v3090_v10 = vmax.f32 %v3074_v1, 0.0  ;;  %v3056_v26 = vmul.f32 %v15766_v27, %v14044_v25  ;;  %v2813_v7 = vpop.f32.mrb[41].mxu1  ;;  %14078 = vmatmul.mubr.msk.f32.vlgmr.msra.gmra.mrb[48].mxu1 %vm371_vm4, %v16062_v50  ;;  %v15073_v5 = vpack.c.bf16 %v15391_v60, %v15390_v23  ;;  %v15076_v8 = vpack.c.bf16 %v15393_v63, %v15392_v62  ;;  %v15394_v1 = vld [vmem:[%s15565_s18 + $0x60] sm:$0xff]  ;;  %v15396_v25 = vld [vmem:[%s15565_s18 + $0x70] sm:$0xff] }
 0x54e   : > { %v3089_v13 = vmax.f32 %v3073_v17, 0.0  ;;  %v3055_v9 = vmul.f32 %v15771_v14, %v2813_v7  ;;  %15044 = vmatpush3.bf16.msra.mxu0 %v15043_v16  ;;  %14091 = vmatprep.mubr.msk.f32.mxu1 %vm15464_vm8, %v15462_v18  ;;  %v15395_v16 = vld [vmem:[%s15565_s18 + $0x68] sm:$0xff] }
 0x54f   : > { %v3076_v11 = vadd.f32 %v16051_v35, %v3056_v26  ;;  %15048 = vmatprep.subr.bf16.mxu0 %v15463_v6  ;;  %v15079_v17 = vpack.c.bf16 %v15395_v16, %v15394_v1 }
 0x550   : > { %v15046_v15 = vpack.c.bf16 %v3090_v10, %v3089_v13  ;;  %v3075_v20 = vadd.f32 %v16051_v35, %v3055_v9  ;;  %v14051_v21 = vpop.f32.mrb[42].mxu1  ;;  %v15397_v10 = vld [vmem:[%s15565_s18 + $0x78] sm:$0xff] }
 0x551   : > { %v3092_v27 = vmax.f32 %v3076_v11, 0.0  ;;  %v3058_v2 = vmul.f32 %v15776_v36, %v14051_v21  ;;  %v2888_v22 = vpop.f32.mrb[43].mxu1  ;;  %14085 = vmatmul.mubr.msk.f32.vlgmr.msra.gmra.mrb[50].mxu0 %vm371_vm4, %v16062_v50  ;;  %v15082_v26 = vpack.c.bf16 %v15397_v10, %v15396_v25 }
 0x552   : > { %v3091_v14 = vmax.f32 %v3075_v20, 0.0  ;;  %v3057_v28 = vmul.f32 %v15781_v38, %v2888_v22  ;;  %15047 = vmatpush3.bf16.msra.mxu1 %v15046_v15  ;;  %14098 = vmatprep.mubr.msk.f32.mxu0 %vm15464_vm8, %v15462_v18 }
 0x553   : > { %v3078_v29 = vadd.f32 %v16051_v35, %v3058_v2  ;;  %15051 = vmatprep.subr.bf16.mxu1 %v15463_v6 }
 0x554   : > { %v15049_v32 = vpack.c.bf16 %v3092_v27, %v3091_v14  ;;  %v3077_v33 = vadd.f32 %v16051_v35, %v3057_v28  ;;  %v14058_v34 = vpop.f32.mrb[44].mxu1 }
 0x555   : > { %v3094_v36 = vmax.f32 %v3078_v29, 0.0  ;;  %v3060_v19 = vmul.f32 %v15786_v46, %v14058_v34  ;;  %v2963_v37 = vpop.f32.mrb[45].mxu1  ;;  %14092 = vmatmul.mubr.msk.f32.vlgmr.msra.gmra.mrb[50].mxu1 %vm371_vm4, %v16062_v50 }
 0x556   : > { %v3093_v38 = vmax.f32 %v3077_v33, 0.0  ;;  %v3059_v39 = vmul.f32 %v15791_v49, %v2963_v37  ;;  %15050 = vmatpush3.bf16.msra.mxu0 %v15049_v32  ;;  %14105 = vmatprep.mubr.msk.f32.mxu1 %vm15464_vm8, %v15462_v18 }
 0x557   : > { %v3080_v41 = vadd.f32 %v16051_v35, %v3060_v19  ;;  %15054 = vmatprep.subr.bf16.mxu0 %v15463_v6 }
 0x558   : > { %v15052_v43 = vpack.c.bf16 %v3094_v36, %v3093_v38  ;;  %v3079_v24 = vadd.f32 %v16051_v35, %v3059_v39  ;;  %v14065_v44 = vpop.f32.mrb[46].mxu1 }
 0x559   : > { %v3096_v46 = vmax.f32 %v3080_v41, 0.0  ;;  %v3062_v48 = vmul.f32 %v15796_v57, %v14065_v44  ;;  %v3038_v30 = vpop.f32.mrb[47].mxu1  ;;  %14099 = vmatmul.mubr.msk.f32.vlgmr.msra.gmra.mrb[52].mxu0 %vm371_vm4, %v16062_v50 }
 0x55a   : > { %v3095_v49 = vmax.f32 %v3079_v24, 0.0  ;;  %v3061_v51 = vmul.f32 %v15801_v61, %v3038_v30  ;;  %15053 = vmatpush3.bf16.msra.mxu1 %v15052_v43  ;;  %14112 = vmatprep.mubr.msk.f32.mxu0 %vm15464_vm8, %v15462_v18  ;;  %v13075_v43 = vld [vmem:[%s17338_s2 + $0x78] sm:$0xff]  ;;  %v13076_v24 = vld [vmem:[%s17338_s2 + $0x80] sm:$0xff] }
 0x55b   : > { %v3082_v31 = vadd.f32 %v16051_v35, %v3062_v48  ;;  %15057 = vmatprep.subr.bf16.mxu1 %v15463_v6  ;;  %v15084_v48 = vpack.c.bf16 %v13076_v24, %v13075_v43 }
 0x55c   : > { %v15055_v54 = vpack.c.bf16 %v3096_v46, %v3095_v49  ;;  %v3081_v57 = vadd.f32 %v16051_v35, %v3061_v51  ;;  %v15384_v35 = vld [vmem:[%s15565_s18 + $0x10] sm:$0xff]  ;;  %v13077_v51 = vld [vmem:[%s17338_s2 + $0x88] sm:$0xff]  ;;  %s12815_s18 = scalar_lea.sflag [#allocation3], %s263_s26 }
 0x55d   : > { %v3098_v55 = vmax.f32 %v3082_v31, 0.0  ;;  %14106 = vmatmul.mubr.msk.f32.vlgmr.msra.gmra.mrb[52].mxu1 %vm371_vm4, %v16062_v50  ;;  %v15064_v59 = vpack.c.bf16 %v15385_v47, %v15384_v35  ;;  %v13078_v31 = vld [vmem:[%s17338_s2 + $0x90] sm:$0xff] }
 0x55e   : > { %v3097_v61 = vmax.f32 %v3081_v57, 0.0  ;;  %15056 = vmatpush3.bf16.msra.mxu0 %v15055_v54  ;;  %14119 = vmatprep.mubr.msk.f32.mxu1 %vm15464_vm8, %v15462_v18 }
 0x55f   : > { %15060 = vmatprep.subr.bf16.mxu0 %v15463_v6 }
 0x560   : > { %v15058_v42 = vpack.c.bf16 %v3098_v55, %v3097_v61  ;;  %v15088_v55 = vpack.c.bf16 %v13078_v31, %v13077_v51 }
 0x561   : > { %14113 = vmatmul.mubr.msk.f32.vlgmr.msra.gmra.mrb[54].mxu0 %vm371_vm4, %v16062_v50 }
 0x562   : > { %15059 = vmatpush3.bf16.msra.mxu1 %v15058_v42  ;;  %15062 = vmatpush3.bf16.msra.mxu0 %v15061_v45 }
 0x563   : > { %14126 = vmatprep.mubr.msk.f32.mxu0 %vm15464_vm8, %v15462_v18  ;;  %15063 = vmatprep.subr.bf16.mxu1 %v15463_v6 }
 0x564   : > { %15066 = vmatprep.subr.bf16.mxu0 %v15463_v6 }
 0x565   : > { %14120 = vmatmul.mubr.msk.f32.vlgmr.msra.gmra.mrb[54].mxu1 %vm371_vm4, %v16062_v50  ;;  %14127 = vmatmul.mubr.msk.f32.vlgmr.msra.gmra.mrb[56].mxu0 %vm371_vm4, %v16062_v50 }
 0x566   : > { %15065 = vmatpush3.bf16.msra.mxu1 %v15064_v59  ;;  %15068 = vmatpush3.bf16.msra.mxu0 %v15067_v53 }
 0x567   : > { %14133 = vmatprep.mubr.msk.f32.mxu1 %vm15464_vm8, %v15462_v18  ;;  %14140 = vmatprep.mubr.msk.f32.mxu0 %vm15464_vm8, %v15462_v18 }
 0x568   : > { %15069 = vmatprep.subr.bf16.mxu1 %v15463_v6  ;;  %15072 = vmatprep.subr.bf16.mxu0 %v15463_v6 }
 0x569   : > { %14134 = vmatmul.mubr.msk.f32.vlgmr.msra.gmra.mrb[56].mxu1 %vm371_vm4, %v16062_v50  ;;  %14141 = vmatmul.mubr.msk.f32.vlgmr.msra.gmra.mrb[58].mxu0 %vm371_vm4, %v16062_v50 }
 0x56a   : > { %15071 = vmatpush3.bf16.msra.mxu1 %v15070_v4  ;;  %15074 = vmatpush3.bf16.msra.mxu0 %v15073_v5 }
 0x56b   : > { %14147 = vmatprep.mubr.msk.f32.mxu1 %vm15464_vm8, %v15462_v18  ;;  %14154 = vmatprep.mubr.msk.f32.mxu0 %vm15464_vm8, %v15462_v18 }
 0x56c   : > { %15075 = vmatprep.subr.bf16.mxu1 %v15463_v6  ;;  %15078 = vmatprep.subr.bf16.mxu0 %v15463_v6 }
 0x56d   : > { %14148 = vmatmul.mubr.msk.f32.vlgmr.msra.gmra.mrb[58].mxu1 %vm371_vm4, %v16062_v50  ;;  %14155 = vmatmul.mubr.msk.f32.vlgmr.msra.gmra.mrb[60].mxu0 %vm371_vm4, %v16062_v50 }
 0x56e   : > { %15077 = vmatpush3.bf16.msra.mxu1 %v15076_v8  ;;  %15080 = vmatpush3.bf16.msra.mxu0 %v15079_v17 }
 0x56f   : > { %14161 = vmatprep.mubr.msk.f32.mxu1 %vm15464_vm8, %v15462_v18  ;;  %14168 = vmatprep.mubr.msk.f32.mxu0 %vm15464_vm8, %v15462_v18 }
 0x570   : > { %15081 = vmatprep.subr.bf16.mxu1 %v15463_v6  ;;  %14178 = vmatprep.subr.mxu0 %v15462_v18 }
 0x571   : > { %14162 = vmatmul.mubr.msk.f32.vlgmr.msra.gmra.mrb[60].mxu1 %vm371_vm4, %v16062_v50  ;;  %14169 = vmatmul.mubr.msk.f32.vlgmr.msra.gmra.mrb[62].mxu0 %vm371_vm4, %v16062_v50 }
 0x572   : > { %15083 = vmatpush3.bf16.msra.mxu1 %v15082_v26  ;;  %14175 = vmatprep.mubr.msk.f32.mxu1 %vm15464_vm8, %v15462_v18 }
 0x573   : > { %14180 = vmatprep.mubr.msk.f32.mxu0 %vm15464_vm8, %v15462_v18  ;;  %14183 = vmatprep.subr.mxu1 %v15462_v18 }
 0x575   : > { %14176 = vmatmul.mubr.msk.f32.vlgmr.msra.gmra.mrb[62].mxu1 %vm371_vm4, %v16062_v50 }
 0x576   : > { %14185 = vmatprep.mubr.msk.f32.mxu1 %vm15464_vm8, %v15462_v18 }
 0x577   : > { %14179 = vmatpush3.xpose.msk.msra.mxu0 %vm371_vm4, %v16062_v50 }
 0x578   : > { %14188 = vmatprep.subr.mxu0 %v15462_v18 }
 0x57b   : > { %14184 = vmatpush3.xpose.msk.msra.mxu1 %vm371_vm4, %v16062_v50 }
 0x57c   : > { %14193 = vmatprep.subr.mxu1 %v15462_v18 }
 0x61c   : > { %v3188_v7 = vpop.f32.mrb[48].mxu0 }
 0x61d   : > { %v14072_v13 = vpop.f32.mrb[49].mxu0 }
 0x620   : > { %v16189_v9 = vpop.f32.mrb[48].mxu1 }
 0x621   : > { %v14079_v11 = vpop.f32.mrb[49].mxu1 }
 0x624   : > { %v16191_v15 = vpop.f32.mrb[50].mxu0 }
 0x625   : > { %v14086_v20 = vpop.f32.mrb[51].mxu0 }
 0x628   : > { %v16193_v21 = vpop.f32.mrb[50].mxu1 }
 0x629   : > { %v14093_v27 = vpop.f32.mrb[51].mxu1 }
 0x62c   : > { %v16195_v2 = vpop.f32.mrb[52].mxu0 }
 0x62d   : > { %v14100_v22 = vpop.f32.mrb[53].mxu0 }
 0x630   : > { %v16197_v14 = vpop.f32.mrb[52].mxu1 }
 0x631   : > { %v14107_v28 = vpop.f32.mrb[53].mxu1 }
 0x634   : > { %v16199_v29 = vpop.f32.mrb[54].mxu0 }
 0x635   : > { %v14114_v32 = vpop.f32.mrb[55].mxu0 }
 0x638   : > { %v3748_v33 = vpop.f32.mrb[56].mxu0  ;;  %v3678_v34 = vpop.f32.mrb[54].mxu1 }
 0x639   : > { %14181 = vmatmul.mubr.msk.f32.vlgmr.msra.gmra.mrb[64].mxu0 %vm371_vm4, %v3748_v33  ;;  %v14121_v36 = vpop.f32.mrb[55].mxu1  ;;  %v14128_v19 = vpop.f32.mrb[57].mxu0 }
 0x63a   : > { %14189 = vmatpush3.xpose.msk.msra.mxu0 %vm371_vm4, %v16062_v50  ;;  %14190 = vmatprep.mubr.msk.f32.mxu0 %vm15464_vm8, %v15462_v18 }
 0x63b   : > { %14198 = vmatprep.subr.mxu0 %v15462_v18 }
 0x63c   : > { %v3818_v37 = vpop.f32.mrb[56].mxu1  ;;  %v3888_v38 = vpop.f32.mrb[58].mxu0 }
 0x63d   : > { %14186 = vmatmul.mubr.msk.f32.vlgmr.msra.gmra.mrb[64].mxu1 %vm371_vm4, %v3818_v37  ;;  %14191 = vmatmul.mubr.msk.f32.vlgmr.msra.gmra.mrb[66].mxu0 %vm371_vm4, %v3888_v38  ;;  %v14135_v39 = vpop.f32.mrb[57].mxu1  ;;  %v14142_v41 = vpop.f32.mrb[59].mxu0 }
 0x63e   : > { %14199 = vmatpush3.xpose.msk.msra.mxu0 %vm371_vm4, %v16062_v50  ;;  %14194 = vmatpush3.xpose.msk.msra.mxu1 %vm371_vm4, %v16062_v50 }
 0x63f   : > { %14195 = vmatprep.mubr.msk.f32.mxu1 %vm15464_vm8, %v15462_v18  ;;  %14200 = vmatprep.mubr.msk.f32.mxu0 %vm15464_vm8, %v15462_v18 }
 0x640   : > { %v3958_v44 = vpop.f32.mrb[58].mxu1  ;;  %v4028_v46 = vpop.f32.mrb[60].mxu0  ;;  %14208 = vmatprep.subr.mxu0 %v15462_v18  ;;  %14203 = vmatprep.subr.mxu1 %v15462_v18 }
 0x641   : > { %14196 = vmatmul.mubr.msk.f32.vlgmr.msra.gmra.mrb[66].mxu1 %vm371_vm4, %v3958_v44  ;;  %14201 = vmatmul.mubr.msk.f32.vlgmr.msra.gmra.mrb[68].mxu0 %vm371_vm4, %v4028_v46  ;;  %v14149_v30 = vpop.f32.mrb[59].mxu1  ;;  %v14156_v49 = vpop.f32.mrb[61].mxu0 }
 0x642   : > { %14209 = vmatpush3.xpose.msk.msra.mxu0 %vm371_vm4, %v16062_v50  ;;  %14204 = vmatpush3.xpose.msk.msra.mxu1 %vm371_vm4, %v16062_v50 }
 0x643   : > { %14205 = vmatprep.mubr.msk.f32.mxu1 %vm15464_vm8, %v15462_v18  ;;  %14210 = vmatprep.mubr.msk.f32.mxu0 %vm15464_vm8, %v15462_v18 }
 0x644   : > { %v4098_v54 = vpop.f32.mrb[60].mxu1  ;;  %v4168_v57 = vpop.f32.mrb[62].mxu0  ;;  %15085 = vmatprep.subr.bf16.mxu0 %v15084_v48  ;;  %14213 = vmatprep.subr.mxu1 %v15462_v18 }
 0x645   : > { %14206 = vmatmul.mubr.msk.f32.vlgmr.msra.gmra.mrb[68].mxu1 %vm371_vm4, %v4098_v54  ;;  %14211 = vmatmul.mubr.msk.f32.vlgmr.msra.gmra.mrb[70].mxu0 %vm371_vm4, %v4168_v57  ;;  %v14163_v61 = vpop.f32.mrb[61].mxu1  ;;  %v14170_v40 = vpop.f32.mrb[63].mxu0 }
 0x646   : > { %15087 = vmatpush3.bf16.msra.mxu0 %v15084_v48  ;;  %14214 = vmatpush3.xpose.msk.msra.mxu1 %vm371_vm4, %v16062_v50 }
 0x647   : > { %14226 = vmatprep.mubr.msk.f32.mxu0 %vm1370_vm2, %v3188_v7  ;;  %14215 = vmatprep.mubr.msk.f32.mxu1 %vm15464_vm8, %v15462_v18 }
 0x648   : > { %v4238_v56 = vpop.f32.mrb[62].mxu1  ;;  %15089 = vmatprep.subr.bf16.mxu0 %v15088_v55  ;;  %14238 = vmatprep.subr.mxu1 %v15462_v18 }
 0x649   : > { %14216 = vmatmul.mubr.msk.f32.vlgmr.msra.gmra.mrb[70].mxu1 %vm371_vm4, %v4238_v56  ;;  %v14177_v45 = vpop.f32.mrb[63].mxu1 }
 0x64a   : > { %15091 = vmatpush3.bf16.msra.mxu0 %v15088_v55  ;;  %14240 = vmatprep.mubr.msk.f32.mxu1 %vm15464_vm8, %v15462_v18 }
 0x64b   : > { %14263 = vmatprep.subr.mxu0 %v15462_v18 }
 0x64d   : > { %14227 = vmatmul.mubr.msk.f32.vlgmr.msra.gmra.mrb[72].mxu0 %vm1370_vm2, %v16189_v9 }
 0x64e   : > { %14229 = vmatprep.mubr.msk.f32.mxu0 %vm1370_vm2, %v16191_v15 }
 0x651   : > { %14230 = vmatmul.mubr.msk.f32.gmra.mrb[74].mxu0 %vm1370_vm2, %v16193_v21 }
 0x652   : > { %14232 = vmatprep.mubr.msk.f32.mxu0 %vm1370_vm2, %v16195_v2 }
 0x655   : > { %14233 = vmatmul.mubr.msk.f32.gmra.mrb[76].mxu0 %vm1370_vm2, %v16197_v14 }
 0x656   : > { %14235 = vmatprep.mubr.msk.f32.mxu0 %vm1370_vm2, %v16199_v29 }
 0x659   : > { %14236 = vmatmul.mubr.msk.f32.gmra.mrb[78].mxu0 %vm1370_vm2, %v3678_v34 }
 0x65a   : > { %14265 = vmatprep.mubr.msk.f32.mxu0 %vm15464_vm8, %v15462_v18 }
 0x70c   : > { %v16269_v50 = vpop.f32.mrb[64].mxu0 }
 0x70d   : > { %vm4826_vm9 = vcmp.ne.f32.partialorder %v16269_v50, 0.0  ;;  %v14182_v42 = vpop.f32.mrb[65].mxu0 }
 0x70e   : > { %v13067_v35 = vsel %vm4826_vm9, 1.0, %v15462_v18 }
 0x70f   : > { %v16275_v47 = vsel %vm15573_vm1, 1.0, %v13067_v35 }
 0x710   : > { %v16277_v59 = vpop.f32.mrb[64].mxu1  ;;  %v16279_v0 = vpop.f32.mrb[66].mxu0  ;;  %v4858_v3 = vsel %vm454_vm0, %v16275_v47, 0.0 }
 0x711   : > { %vm4827_vm10 = vcmp.ne.f32.partialorder %v16277_v59, 0.0  ;;  %vm4828_vm11 = vcmp.ne.f32.partialorder %v16279_v0, 0.0  ;;  %4859 = vadd.xlane.f32.xlu0 %v4858_v3  ;;  %v14187_v53 = vpop.f32.mrb[65].mxu1  ;;  %v14192_v52 = vpop.f32.mrb[67].mxu0 }
 0x712   : > { %v13068_v58 = vsel %vm4827_vm10, 1.0, %v15462_v18  ;;  %v13069_v4 = vsel %vm4828_vm11, 1.0, %v15462_v18 }
 0x713   : > { %v16289_v23 = vsel %vm15573_vm1, 1.0, %v13068_v58  ;;  %v16293_v60 = vsel %vm15573_vm1, 1.0, %v13069_v4 }
 0x714   : > { %v16295_v5 = vpop.f32.mrb[66].mxu1  ;;  %v16297_v62 = vpop.f32.mrb[68].mxu0  ;;  %v4864_v63 = vsel %vm454_vm0, %v16293_v60, 0.0  ;;  %v4861_v8 = vsel %vm454_vm0, %v16289_v23, 0.0 }
 0x715   : > { %vm4829_vm12 = vcmp.ne.f32.partialorder %v16295_v5, 0.0  ;;  %vm4830_vm13 = vcmp.ne.f32.partialorder %v16297_v62, 0.0  ;;  %4865 = vadd.xlane.f32.xlu0 %v4864_v63  ;;  %4862 = vadd.xlane.f32.xlu1 %v4861_v8  ;;  %v14197_v1 = vpop.f32.mrb[67].mxu1  ;;  %v14202_v16 = vpop.f32.mrb[69].mxu0 }
 0x716   : > { %v13070_v17 = vsel %vm4829_vm12, 1.0, %v15462_v18  ;;  %v13071_v25 = vsel %vm4830_vm13, 1.0, %v15462_v18 }
 0x717   : > { %v16309_v10 = vsel %vm15573_vm1, 1.0, %v13070_v17  ;;  %v16313_v26 = vsel %vm15573_vm1, 1.0, %v13071_v25  ;;  %v13097_v17 = vld [vmem:[%s17338_s2 + $0xa0] sm:$0xff]  ;;  %v13098_v25 = vld [vmem:[%s17338_s2 + $0xa8] sm:$0xff] }
 0x718   : > { %v16315_v7 = vpop.f32.mrb[68].mxu1  ;;  %v16317_v13 = vpop.f32.mrb[70].mxu0  ;;  %v4870_v9 = vsel %vm454_vm0, %v16313_v26, 0.0  ;;  %v4867_v11 = vsel %vm454_vm0, %v16309_v10, 0.0 }
 0x719   : > { %vm4831_vm14 = vcmp.ne.f32.partialorder %v16315_v7, 0.0  ;;  %vm4832_vm15 = vcmp.ne.f32.partialorder %v16317_v13, 0.0  ;;  %4871 = vadd.xlane.f32.xlu0 %v4870_v9  ;;  %4868 = vadd.xlane.f32.xlu1 %v4867_v11  ;;  %v14207_v15 = vpop.f32.mrb[69].mxu1  ;;  %v14212_v20 = vpop.f32.mrb[71].mxu0  ;;  %v15092_v9 = vpack.c.bf16 %v13098_v25, %v13097_v17  ;;  %v13099_v11 = vld [vmem:[%s17338_s2 + $0xb0] sm:$0xff] }
 0x71a   : > { %v13072_v21 = vsel %vm4831_vm14, 1.0, %v15462_v18  ;;  %v13073_v27 = vsel %vm4832_vm15, 1.0, %v15462_v18  ;;  %v13100_v15 = vld [vmem:[%s17338_s2 + $0xb8] sm:$0xff]  ;;  %vm9498_vm15 = vcmask 31744  }
 0x71b   : > { %v16329_v2 = vsel %vm15573_vm1, 1.0, %v13072_v21  ;;  %v16333_v22 = vsel %vm15573_vm1, 1.0, %v13073_v27  ;;  %v15096_v20 = vpack.c.bf16 %v13100_v15, %v13099_v11  ;;  %v13096_v21 = vld [vmem:[%s17338_s2 + $0x98] ss:$0 sm:$0xff] }
 0x71c   : > { %v16335_v14 = vpop.f32.mrb[70].mxu1  ;;  %v4876_v28 = vsel %vm454_vm0, %v16333_v22, 0.0  ;;  %v4873_v29 = vsel %vm454_vm0, %v16329_v2, 0.0 }
 0x71d   : > { %vm4833_vm3 = vcmp.ne.f32.partialorder %v16335_v14, 0.0  ;;  %4877 = vadd.xlane.f32.xlu0 %v4876_v28  ;;  %4874 = vadd.xlane.f32.xlu1 %v4873_v29  ;;  %v14217_v32 = vpop.f32.mrb[71].mxu1 }
 0x71e   : > { %v13074_v33 = vsel %vm4833_vm3, 1.0, %v15462_v18  ;;  %vm12644_vm3 = vcmask 1041409  }
 0x71f   : > { %v16345_v34 = vsel %vm15573_vm1, 1.0, %v13074_v33 }
 0x720   : > { %v14228_v36 = vpop.f32.mrb[72].mxu0  ;;  %v4879_v19 = vsel %vm454_vm0, %v16345_v34, 0.0 }
 0x721   : > { %v4986_v37 = vpop.f32.mrb[73].mxu0  ;;  %4880 = vadd.xlane.f32.xlu1 %v4879_v19 }
 0x724   : > { %v14231_v38 = vpop.f32.mrb[74].mxu0 }
 0x725   : > { %v4996_v39 = vpop.f32.mrb[75].mxu0 }
 0x728   : > { %v14234_v41 = vpop.f32.mrb[76].mxu0 }
 0x729   : > { %v5006_v43 = vpop.f32.mrb[77].mxu0 }
 0x72c   : > { %v14237_v24 = vpop.f32.mrb[78].mxu0 }
 0x72d   : > { %v5016_v44 = vpop.f32.mrb[79].mxu0 }
 0x79e   : > { %v4860_v46 = vpop.xlane.xlu0 %4859 }
 0x79f   : > { %15342 = vrsqrt.f32 %v4860_v46 }
 0x7a2   : > { %v4866_v48 = vpop.xlane.xlu0 %4865  ;;  %v4863_v30 = vpop.xlane.xlu1 %4862 }
 0x7a3   : > { %15344 = vrsqrt.f32 %v4866_v48 }
 0x7a4   : > { %15346 = vrsqrt.f32 %v4863_v30 }
 0x7a6   : > { %v4869_v49 = vpop.xlane.xlu1 %4868  ;;  %v4872_v51 = vpop.xlane.xlu0 %4871 }
 0x7a7   : > { %15348 = vrsqrt.f32 %v4869_v49 }
 0x7a8   : > { %15350 = vrsqrt.f32 %v4872_v51 }
 0x7a9   : > { %v16349_v31 = vpop.eup %15342 }
 0x7aa   : > { %v4875_v54 = vpop.xlane.xlu1 %4874  ;;  %v5025_v57 = vmul.f32 %v16349_v31, %v4986_v37  ;;  %v4878_v61 = vpop.xlane.xlu0 %4877 }
 0x7ab   : > { %15352 = vrsqrt.f32 %v4875_v54 }
 0x7ac   : > { %14239 = vmatpush3.msra.mxu1 %v5025_v57 }
 0x7ad   : > { %v16352_v55 = vpop.eup %15344  ;;  %14241 = vmatmul.mubr.msk.f32.vlgmr.msra.gmra.mrb[72].mxu1 %vm454_vm0, %v16275_v47  ;;  %14243 = vmatprep.subr.mxu1 %v15462_v18 }
 0x7ae   : > { %v16357_v40 = vpop.eup %15346  ;;  %v4881_v56 = vpop.xlane.xlu1 %4880  ;;  %14245 = vmatprep.mubr.msk.f32.mxu1 %vm15464_vm8, %v15462_v18  ;;  %v5027_v42 = vmul.f32 %v16352_v55, %v4996_v39 }
 0x7af   : > { %15354 = vrsqrt.f32 %v4881_v56  ;;  %v5026_v45 = vmul.f32 %v16357_v40, %v14228_v36 }
 0x7b0   : > { %15356 = vrsqrt.f32 %v4878_v61 }
 0x7b1   : > { %14244 = vmatpush3.msra.mxu1 %v5026_v45  ;;  %v16363_v35 = vpop.eup %15348 }
 0x7b2   : > { %14246 = vmatmul.mubr.msk.f32.vlgmr.msra.gmra.mrb[74].mxu1 %vm454_vm0, %v16289_v23  ;;  %14248 = vmatprep.subr.mxu1 %v15462_v18  ;;  %v5028_v3 = vmul.f32 %v16363_v35, %v14231_v38  ;;  %v16372_v53 = vpop.eup %15350 }
 0x7b3   : > { %14249 = vmatpush3.msra.mxu1 %v5027_v42  ;;  %14250 = vmatprep.mubr.msk.f32.mxu1 %vm15464_vm8, %v15462_v18  ;;  %v5029_v63 = vmul.f32 %v16372_v53, %v5006_v43 }
 0x7b4   : > { %14253 = vmatprep.subr.mxu1 %v15462_v18 }
 0x7b5   : > { %v16374_v52 = vpop.eup %15352 }
 0x7b6   : > { %14251 = vmatmul.mubr.msk.f32.vlgmr.msra.gmra.mrb[76].mxu1 %vm454_vm0, %v16293_v60  ;;  %v5030_v58 = vmul.f32 %v16374_v52, %v14234_v41 }
 0x7b7   : > { %14254 = vmatpush3.msra.mxu1 %v5028_v3  ;;  %14255 = vmatprep.mubr.msk.f32.mxu1 %vm15464_vm8, %v15462_v18 }
 0x7b8   : > { %14258 = vmatprep.subr.mxu1 %v15462_v18  ;;  %14264 = vmatpush3.msra.mxu0 %v5030_v58 }
 0x7b9   : > { %v16382_v4 = vpop.eup %15354  ;;  %14266 = vmatmul.mubr.msk.f32.vlgmr.msra.gmra.mrb[80].mxu0 %vm454_vm0, %v16329_v2  ;;  %14273 = vmatprep.subr.mxu0 %v15462_v18 }
 0x7ba   : > { %v16385_v8 = vpop.eup %15356  ;;  %14256 = vmatmul.mubr.msk.f32.vlgmr.msra.gmra.mrb[78].mxu1 %vm454_vm0, %v16309_v10  ;;  %v5032_v1 = vmul.f32 %v16382_v4, %v14237_v24  ;;  %14275 = vmatprep.mubr.msk.f32.mxu0 %vm15464_vm8, %v15462_v18 }
 0x7bb   : > { %14259 = vmatpush3.msra.mxu1 %v5029_v63  ;;  %14260 = vmatprep.mubr.msk.f32.mxu1 %vm15464_vm8, %v15462_v18  ;;  %v5031_v16 = vmul.f32 %v16385_v8, %v5016_v44 }
 0x7bc   : > { %14268 = vmatprep.subr.mxu1 %v15462_v18  ;;  %14274 = vmatpush3.msra.mxu0 %v5032_v1 }
 0x7bd   : > { %14276 = vmatmul.mubr.msk.f32.vlgmr.msra.gmra.mrb[82].mxu0 %vm454_vm0, %v16345_v34  ;;  %14298 = vmatprep.subr.mxu0 %v15462_v18 }
 0x7be   : > { %14261 = vmatmul.mubr.msk.f32.vlgmr.msra.gmra.mrb[80].mxu1 %vm454_vm0, %v16313_v26  ;;  %14300 = vmatprep.mubr.msk.f32.mxu0 %vm15464_vm8, %v15462_v18 }
 0x7bf   : > { %14269 = vmatpush3.msra.mxu1 %v5031_v16  ;;  %14270 = vmatprep.mubr.msk.f32.mxu1 %vm15464_vm8, %v15462_v18 }
 0x7c0   : > { %15093 = vmatprep.subr.bf16.mxu1 %v15092_v9 }
 0x7c2   : > { %14271 = vmatmul.mubr.msk.f32.vlgmr.msra.gmra.mrb[82].mxu1 %vm454_vm0, %v16333_v22 }
 0x7c3   : > { %15095 = vmatpush3.bf16.msra.mxu1 %v15092_v9 }
 0x7c4   : > { %15097 = vmatprep.subr.bf16.mxu1 %v15096_v20 }
 0x7c7   : > { %15099 = vmatpush3.bf16.msra.mxu1 %v15096_v20 }
 0x7c8   : > { %14323 = vmatprep.subr.mxu1 %v15462_v18 }
 0x880   : > { %v5102_v27 = vpop.f32.mrb[72].mxu1 }
 0x881   : > { %v5617_v28 = vmul.f32 %v16349_v31, %v5102_v27  ;;  %v14242_v29 = vpop.f32.mrb[73].mxu1 }
 0x883   : > { %v5629_v32 = vadd.f32 %v13096_v21, %v5617_v28 }
 0x885   : > { %v5637_v33 = vmax.f32 %v5629_v32, 0.0  ;;  %v5175_v36 = vpop.f32.mrb[74].mxu1 }
 0x886   : > { %v5618_v19 = vmul.f32 %v16357_v40, %v5175_v36  ;;  %v14247_v37 = vpop.f32.mrb[75].mxu1 }
 0x887   : > { %14286 = vmatprep.mubr.msk.f32.mxu1 %vm1370_vm2, %v5637_v33 }
 0x888   : > { %v5630_v38 = vadd.f32 %v13096_v21, %v5618_v19 }
 0x889   : > { %v5248_v39 = vpop.f32.mrb[76].mxu1 }
 0x88a   : > { %v5638_v41 = vmax.f32 %v5630_v38, 0.0  ;;  %v5619_v43 = vmul.f32 %v16352_v55, %v5248_v39  ;;  %v14252_v24 = vpop.f32.mrb[77].mxu1 }
 0x88c   : > { %v5631_v44 = vadd.f32 %v13096_v21, %v5619_v43  ;;  %14287 = vmatmul.mubr.msk.f32.vlgmr.msra.gmra.mrb[84].mxu1 %vm1370_vm2, %v5638_v41  ;;  %v5467_v48 = vpop.f32.mrb[80].mxu0 }
 0x88d   : > { %v5321_v46 = vpop.f32.mrb[78].mxu1  ;;  %v14267_v54 = vpop.f32.mrb[81].mxu0  ;;  %v5622_v57 = vmul.f32 %v16374_v52, %v5467_v48 }
 0x88e   : > { %v5639_v30 = vmax.f32 %v5631_v44, 0.0  ;;  %v5620_v49 = vmul.f32 %v16363_v35, %v5321_v46  ;;  %v14257_v51 = vpop.f32.mrb[79].mxu1  ;;  %v13119_v54 = vld [vmem:[%s17338_s2 + $0xc8] sm:$0xff] }
 0x88f   : > { %v5634_v1 = vadd.f32 %v13096_v21, %v5622_v57  ;;  %v13120_v57 = vld [vmem:[%s17338_s2 + $0xd0] sm:$0xff] }
 0x890   : > { %v5632_v61 = vadd.f32 %v13096_v21, %v5620_v49  ;;  %14289 = vmatprep.mubr.msk.f32.mxu1 %vm1370_vm2, %v5639_v30  ;;  %v5613_v45 = vpop.f32.mrb[82].mxu0 }
 0x891   : > { %v5394_v56 = vpop.f32.mrb[80].mxu1  ;;  %v14277_v63 = vpop.f32.mrb[83].mxu0  ;;  %v5624_v16 = vmul.f32 %v16382_v4, %v5613_v45  ;;  %v5642_v20 = vmax.f32 %v5634_v1, 0.0  ;;  %v13122_v45 = vld [vmem:[%s17338_s2 + $0xe0] sm:$0xff] }
 0x892   : > { %v5640_v42 = vmax.f32 %v5632_v61, 0.0  ;;  %v5621_v3 = vmul.f32 %v16372_v53, %v5394_v56  ;;  %v14262_v58 = vpop.f32.mrb[81].mxu1  ;;  %v15100_v61 = vpack.c.bf16 %v13120_v57, %v13119_v54  ;;  %v13121_v56 = vld [vmem:[%s17338_s2 + $0xd8] sm:$0xff] }
 0x893   : > { %v5636_v27 = vadd.f32 %v13096_v21, %v5624_v16 }
 0x894   : > { %v5633_v17 = vadd.f32 %v13096_v21, %v5621_v3  ;;  %14290 = vmatmul.mubr.msk.f32.gmra.mrb[86].mxu1 %vm1370_vm2, %v5640_v42  ;;  %v15104_v42 = vpack.c.bf16 %v13122_v45, %v13121_v56  ;;  %v13118_v3 = vld [vmem:[%s17338_s2 + $0xc0] ss:$0 sm:$0xff] }
 0x895   : > { %v5540_v25 = vpop.f32.mrb[82].mxu1  ;;  %v5644_v32 = vmax.f32 %v5636_v27, 0.0 }
 0x896   : > { %v5641_v9 = vmax.f32 %v5633_v17, 0.0  ;;  %v5623_v11 = vmul.f32 %v16385_v8, %v5540_v25  ;;  %v14272_v15 = vpop.f32.mrb[83].mxu1 }
 0x898   : > { %v5635_v28 = vadd.f32 %v13096_v21, %v5623_v11  ;;  %14292 = vmatprep.mubr.msk.f32.mxu1 %vm1370_vm2, %v5641_v9 }
 0x899   : > { %14293 = vmatmul.mubr.msk.f32.gmra.mrb[88].mxu1 %vm1370_vm2, %v5642_v20 }
 0x89a   : > { %v5643_v29 = vmax.f32 %v5635_v28, 0.0 }
 0x89c   : > { %14295 = vmatprep.mubr.msk.f32.mxu1 %vm1370_vm2, %v5643_v29 }
 0x89d   : > { %14296 = vmatmul.mubr.msk.f32.gmra.mrb[90].mxu1 %vm1370_vm2, %v5644_v32 }
 0x89e   : > { %14325 = vmatprep.mubr.msk.f32.mxu1 %vm15464_vm8, %v15462_v18 }
 0x95f   : > { %v14288_v33 = vpop.f32.mrb[84].mxu1 }
 0x960   : > { %v5741_v36 = vpop.f32.mrb[85].mxu1  ;;  %v5781_v37 = vmul.f32 %v16357_v40, %v14288_v33 }
 0x961   : > { %v5780_v19 = vmul.f32 %v16349_v31, %v5741_v36 }
 0x963   : > { %14299 = vmatpush3.msra.mxu0 %v5780_v19 }
 0x964   : > { %14301 = vmatmul.mubr.msk.f32.vlgmr.msra.gmra.mrb[84].mxu0 %vm454_vm0, %v16275_v47  ;;  %14303 = vmatprep.subr.mxu0 %v15462_v18 }
 0x965   : > { %14304 = vmatpush3.msra.mxu0 %v5781_v37  ;;  %14305 = vmatprep.mubr.msk.f32.mxu0 %vm15464_vm8, %v15462_v18 }
 0x966   : > { %14308 = vmatprep.subr.mxu0 %v15462_v18 }
 0x967   : > { %v14291_v21 = vpop.f32.mrb[86].mxu1 }
 0x968   : > { %v5751_v38 = vpop.f32.mrb[87].mxu1  ;;  %14306 = vmatmul.mubr.msk.f32.vlgmr.msra.gmra.mrb[86].mxu0 %vm454_vm0, %v16289_v23  ;;  %v5783_v41 = vmul.f32 %v16363_v35, %v14291_v21 }
 0x969   : > { %v5782_v39 = vmul.f32 %v16352_v55, %v5751_v38  ;;  %14310 = vmatprep.mubr.msk.f32.mxu0 %vm15464_vm8, %v15462_v18 }
 0x96b   : > { %14309 = vmatpush3.msra.mxu0 %v5782_v39 }
 0x96c   : > { %v14294_v43 = vpop.f32.mrb[88].mxu1  ;;  %14311 = vmatmul.mubr.msk.f32.vlgmr.msra.gmra.mrb[88].mxu0 %vm454_vm0, %v16293_v60  ;;  %14313 = vmatprep.subr.mxu0 %v15462_v18 }
 0x96d   : > { %v5785_v24 = vmul.f32 %v16374_v52, %v14294_v43  ;;  %v5761_v44 = vpop.f32.mrb[89].mxu1  ;;  %14314 = vmatpush3.msra.mxu0 %v5783_v41  ;;  %14315 = vmatprep.mubr.msk.f32.mxu0 %vm15464_vm8, %v15462_v18 }
 0x96e   : > { %v5784_v46 = vmul.f32 %v16372_v53, %v5761_v44  ;;  %14318 = vmatprep.subr.mxu0 %v15462_v18 }
 0x96f   : > { %14324 = vmatpush3.msra.mxu1 %v5785_v24 }
 0x970   : > { %v14297_v48 = vpop.f32.mrb[90].mxu1  ;;  %14316 = vmatmul.mubr.msk.f32.vlgmr.msra.gmra.mrb[90].mxu0 %vm454_vm0, %v16309_v10  ;;  %14326 = vmatmul.mubr.msk.f32.vlgmr.msra.gmra.mrb[92].mxu1 %vm454_vm0, %v16329_v2 }
 0x971   : > { %v5787_v30 = vmul.f32 %v16382_v4, %v14297_v48  ;;  %14319 = vmatpush3.msra.mxu0 %v5784_v46  ;;  %v5771_v49 = vpop.f32.mrb[91].mxu1  ;;  %14333 = vmatprep.subr.mxu1 %v15462_v18 }
 0x972   : > { %v5786_v51 = vmul.f32 %v16385_v8, %v5771_v49  ;;  %14320 = vmatprep.mubr.msk.f32.mxu0 %vm15464_vm8, %v15462_v18  ;;  %14328 = vmatprep.subr.mxu0 %v15462_v18 }
 0x973   : > { %14334 = vmatpush3.msra.mxu1 %v5787_v30  ;;  %14335 = vmatprep.mubr.msk.f32.mxu1 %vm15464_vm8, %v15462_v18 }
 0x974   : > { %14321 = vmatmul.mubr.msk.f32.vlgmr.msra.gmra.mrb[92].mxu0 %vm454_vm0, %v16313_v26  ;;  %14336 = vmatmul.mubr.msk.f32.vlgmr.msra.gmra.mrb[94].mxu1 %vm454_vm0, %v16345_v34 }
 0x975   : > { %14329 = vmatpush3.msra.mxu0 %v5786_v51  ;;  %14330 = vmatprep.mubr.msk.f32.mxu0 %vm15464_vm8, %v15462_v18 }
 0x976   : > { %14358 = vmatprep.subr.mxu1 %v15462_v18  ;;  %14360 = vmatprep.mubr.msk.f32.mxu1 %vm15464_vm8, %v15462_v18 }
 0x977   : > { %15101 = vmatprep.subr.bf16.mxu0 %v15100_v61 }
 0x978   : > { %14331 = vmatmul.mubr.msk.f32.vlgmr.msra.gmra.mrb[94].mxu0 %vm454_vm0, %v16333_v22 }
 0x979   : > { %15103 = vmatpush3.bf16.msra.mxu0 %v15100_v61 }
 0x97a   : > { %15105 = vmatprep.subr.bf16.mxu0 %v15104_v42 }
 0x97d   : > { %15107 = vmatpush3.bf16.msra.mxu0 %v15104_v42 }
 0x97e   : > { %14383 = vmatprep.subr.mxu0 %v15462_v18 }
 0xa37   : > { %v5854_v58 = vpop.f32.mrb[84].mxu0 }
 0xa38   : > { %v6348_v63 = vmul.f32 %v16349_v31, %v5854_v58  ;;  %v14302_v1 = vpop.f32.mrb[85].mxu0 }
 0xa3a   : > { %v6360_v16 = vadd.f32 %v13118_v3, %v6348_v63 }
 0xa3b   : > { %v5924_v17 = vpop.f32.mrb[86].mxu0 }
 0xa3c   : > { %v6368_v25 = vmax.f32 %v6360_v16, 0.0  ;;  %v6349_v9 = vmul.f32 %v16357_v40, %v5924_v17  ;;  %v14307_v11 = vpop.f32.mrb[87].mxu0 }
 0xa3e   : > { %v6361_v15 = vadd.f32 %v13118_v3, %v6349_v9  ;;  %14346 = vmatprep.mubr.msk.f32.mxu0 %vm1370_vm2, %v6368_v25 }
 0xa3f   : > { %v5994_v20 = vpop.f32.mrb[88].mxu0 }
 0xa40   : > { %v6369_v27 = vmax.f32 %v6361_v15, 0.0  ;;  %v6350_v28 = vmul.f32 %v16352_v55, %v5994_v20  ;;  %v14312_v29 = vpop.f32.mrb[89].mxu0 }
 0xa42   : > { %v6362_v32 = vadd.f32 %v13118_v3, %v6350_v28  ;;  %14347 = vmatmul.mubr.msk.f32.vlgmr.msra.gmra.mrb[96].mxu0 %vm1370_vm2, %v6369_v27 }
 0xa43   : > { %v6064_v33 = vpop.f32.mrb[90].mxu0  ;;  %v6204_v36 = vpop.f32.mrb[92].mxu1 }
 0xa44   : > { %v6370_v19 = vmax.f32 %v6362_v32, 0.0  ;;  %v6351_v37 = vmul.f32 %v16363_v35, %v6064_v33  ;;  %v14317_v21 = vpop.f32.mrb[91].mxu0  ;;  %v14327_v38 = vpop.f32.mrb[93].mxu1  ;;  %v6353_v39 = vmul.f32 %v16374_v52, %v6204_v36 }
 0xa46   : > { %v6363_v41 = vadd.f32 %v13118_v3, %v6351_v37  ;;  %14349 = vmatprep.mubr.msk.f32.mxu0 %vm1370_vm2, %v6370_v19  ;;  %v6365_v49 = vadd.f32 %v13118_v3, %v6353_v39 }
 0xa47   : > { %v6134_v43 = vpop.f32.mrb[92].mxu0  ;;  %v6344_v24 = vpop.f32.mrb[94].mxu1 }
 0xa48   : > { %v6371_v44 = vmax.f32 %v6363_v41, 0.0  ;;  %v6352_v46 = vmul.f32 %v16372_v53, %v6134_v43  ;;  %v14322_v48 = vpop.f32.mrb[93].mxu0  ;;  %v14337_v30 = vpop.f32.mrb[95].mxu1  ;;  %v6355_v51 = vmul.f32 %v16382_v4, %v6344_v24  ;;  %v6373_v42 = vmax.f32 %v6365_v49, 0.0 }
 0xa4a   : > { %v6364_v54 = vadd.f32 %v13118_v3, %v6352_v46  ;;  %14350 = vmatmul.mubr.msk.f32.gmra.mrb[98].mxu0 %vm1370_vm2, %v6371_v44  ;;  %v6367_v58 = vadd.f32 %v13118_v3, %v6355_v51  ;;  %v13140_v51 = vld [vmem:[%s17338_s2 + $0xe8] ss:$0 sm:$0xff] }
 0xa4b   : > { %v6274_v57 = vpop.f32.mrb[94].mxu0 }
 0xa4c   : > { %v6372_v61 = vmax.f32 %v6364_v54, 0.0  ;;  %v6354_v56 = vmul.f32 %v16385_v8, %v6274_v57  ;;  %v14332_v45 = vpop.f32.mrb[95].mxu0  ;;  %v6375_v16 = vmax.f32 %v6367_v58, 0.0 }
 0xa4e   : > { %v6366_v63 = vadd.f32 %v13118_v3, %v6354_v56  ;;  %14352 = vmatprep.mubr.msk.f32.mxu0 %vm1370_vm2, %v6372_v61 }
 0xa4f   : > { %14353 = vmatmul.mubr.msk.f32.gmra.mrb[100].mxu0 %vm1370_vm2, %v6373_v42 }
 0xa50   : > { %v6374_v1 = vmax.f32 %v6366_v63, 0.0 }
 0xa52   : > { %14355 = vmatprep.mubr.msk.f32.mxu0 %vm1370_vm2, %v6374_v1 }
 0xa53   : > { %14356 = vmatmul.mubr.msk.f32.gmra.mrb[102].mxu0 %vm1370_vm2, %v6375_v16 }
 0xa54   : > { %14385 = vmatprep.mubr.msk.f32.mxu0 %vm15464_vm8, %v15462_v18 }
 0xb15   : > { %v14348_v17 = vpop.f32.mrb[96].mxu0 }
 0xb16   : > { %v6472_v25 = vpop.f32.mrb[97].mxu0  ;;  %v6512_v11 = vmul.f32 %v16357_v40, %v14348_v17 }
 0xb17   : > { %v6511_v9 = vmul.f32 %v16349_v31, %v6472_v25 }
 0xb19   : > { %14359 = vmatpush3.msra.mxu1 %v6511_v9 }
 0xb1a   : > { %14361 = vmatmul.mubr.msk.f32.vlgmr.msra.gmra.mrb[96].mxu1 %vm454_vm0, %v16275_v47  ;;  %14363 = vmatprep.subr.mxu1 %v15462_v18 }
 0xb1b   : > { %14364 = vmatpush3.msra.mxu1 %v6512_v11  ;;  %14365 = vmatprep.mubr.msk.f32.mxu1 %vm15464_vm8, %v15462_v18 }
 0xb1c   : > { %14368 = vmatprep.subr.mxu1 %v15462_v18 }
 0xb1d   : > { %v14351_v3 = vpop.f32.mrb[98].mxu0 }
 0xb1e   : > { %v6482_v15 = vpop.f32.mrb[99].mxu0  ;;  %14366 = vmatmul.mubr.msk.f32.vlgmr.msra.gmra.mrb[98].mxu1 %vm454_vm0, %v16289_v23  ;;  %v6514_v47 = vmul.f32 %v16363_v35, %v14351_v3 }
 0xb1f   : > { %v6513_v20 = vmul.f32 %v16352_v55, %v6482_v15  ;;  %14370 = vmatprep.mubr.msk.f32.mxu1 %vm15464_vm8, %v15462_v18 }
 0xb21   : > { %14369 = vmatpush3.msra.mxu1 %v6513_v20 }
 0xb22   : > { %v14354_v27 = vpop.f32.mrb[100].mxu0  ;;  %14371 = vmatmul.mubr.msk.f32.vlgmr.msra.gmra.mrb[100].mxu1 %vm454_vm0, %v16293_v60  ;;  %14373 = vmatprep.subr.mxu1 %v15462_v18 }
 0xb23   : > { %v6516_v28 = vmul.f32 %v16374_v52, %v14354_v27  ;;  %v6492_v29 = vpop.f32.mrb[101].mxu0  ;;  %14374 = vmatpush3.msra.mxu1 %v6514_v47  ;;  %14375 = vmatprep.mubr.msk.f32.mxu1 %vm15464_vm8, %v15462_v18 }
 0xb24   : > { %v6515_v23 = vmul.f32 %v16372_v53, %v6492_v29  ;;  %14378 = vmatprep.subr.mxu1 %v15462_v18 }
 0xb25   : > { %14384 = vmatpush3.msra.mxu0 %v6516_v28 }
 0xb26   : > { %v14357_v32 = vpop.f32.mrb[102].mxu0  ;;  %14376 = vmatmul.mubr.msk.f32.vlgmr.msra.gmra.mrb[102].mxu1 %vm454_vm0, %v16309_v10  ;;  %14386 = vmatmul.mubr.msk.f32.vlgmr.msra.gmra.mrb[104].mxu0 %vm454_vm0, %v16329_v2  ;;  %v7107_v10 = vld [vmem:[%s17340_s4] sm:$0xf] }
 0xb27   : > { %v6518_v60 = vmul.f32 %v16382_v4, %v14357_v32  ;;  %14379 = vmatpush3.msra.mxu1 %v6515_v23  ;;  %v6502_v33 = vpop.f32.mrb[103].mxu0  ;;  %14393 = vmatprep.subr.mxu0 %v15462_v18 }
 0xb28   : > { %v6517_v36 = vmul.f32 %v16385_v8, %v6502_v33  ;;  %14380 = vmatprep.mubr.msk.f32.mxu1 %vm15464_vm8, %v15462_v18  ;;  %14388 = vmatprep.subr.mxu1 %v15462_v18 }
 0xb29   : > { %14394 = vmatpush3.msra.mxu0 %v6518_v60  ;;  %14395 = vmatprep.mubr.msk.f32.mxu0 %vm15464_vm8, %v15462_v18 }
 0xb2a   : > { %14381 = vmatmul.mubr.msk.f32.vlgmr.msra.gmra.mrb[104].mxu1 %vm454_vm0, %v16313_v26  ;;  %14396 = vmatmul.mubr.msk.f32.vlgmr.msra.gmra.mrb[106].mxu0 %vm454_vm0, %v16345_v34  ;;  %v7109_v26 = vsel %vm7108_vm5, %v7107_v10, -inf }
 0xb2b   : > { %14389 = vmatpush3.msra.mxu1 %v6517_v36  ;;  %14390 = vmatprep.mubr.msk.f32.mxu1 %vm15464_vm8, %v15462_v18  ;;  %v7110_v2 = vrot.slane %v7109_v26, 4 }
 0xb2c   : > { %14398 = vmatprep.subr.mxu1 %v15462_v18  ;;  %14403 = vmatprep.subr.mxu0 %v15462_v18 }
 0xb2d   : > { %14405 = vmatprep.mubr.msk.f32.mxu0 %vm15464_vm8, %v15462_v18  ;;  %v7111_v34 = vmax.f32 %v7109_v26, %v7110_v2 }
 0xb2e   : > { %14391 = vmatmul.mubr.msk.f32.vlgmr.msra.gmra.mrb[106].mxu1 %vm454_vm0, %v16333_v22 }
 0xb2f   : > { %14400 = vmatprep.mubr.msk.f32.mxu1 %vm15464_vm8, %v15462_v18  ;;  %v7112_v19 = vrot.slane %v7111_v34, 2 }
 0xb31   : > { %v7113_v37 = vmax.f32 %v7111_v34, %v7112_v19 }
 0xb33   : > { %v7114_v21 = vrot.slane %v7113_v37, 1 }
 0xb35   : > { %v7115_v38 = vmax.f32 %v7113_v37, %v7114_v21 }
 0xb37   : > { %v7116_v39 = vsub.f32 %v7107_v10, %v7115_v38 }
 0xb39   : > { %v7117_v41 = vmul.f32 1.442695, %v7116_v39 }
 0xb3b   : > { %15358 = vpow2.f32 %v7117_v41 }
 0xb45   : > { %v15359_v43 = vpop.eup %15358 }
 0xb46   : > { %v7119_v22 = vsel %vm7108_vm5, %v15359_v43, 0.0  ;;  %vm12646_vm5 = vcmask 1042434  }
 0xb47   : > { %v7120_v24 = vrot.slane %v7119_v22, 4 }
 0xb49   : > { %v7121_v44 = vadd.f32 %v7120_v24, %v7119_v22 }
 0xb4b   : > { %v7122_v46 = vrot.slane %v7121_v44, 2 }
 0xb4d   : > { %v7123_v48 = vadd.f32 %v7122_v46, %v7121_v44 }
 0xb4f   : > { %v7124_v30 = vrot.slane %v7123_v48, 1 }
 0xb51   : > { %v7125_v49 = vadd.f32 %v7124_v30, %v7123_v48 }
 0xb53   : > { %15360 = vrcp.f32 %v7125_v49 }
 0xb5d   : > { %v15361_v57 = vpop.eup %15360 }
 0xb5e   : > { %v16578_v58 = vmul.f32 %v15361_v57, %v15359_v43 }
 0xbed   : > { %v6585_v54 = vpop.f32.mrb[96].mxu1 }
 0xbee   : > { %v7079_v61 = vmul.f32 %v16349_v31, %v6585_v54  ;;  %v14362_v56 = vpop.f32.mrb[97].mxu1 }
 0xbf0   : > { %v7091_v45 = vadd.f32 %v13140_v51, %v7079_v61 }
 0xbf1   : > { %v6655_v42 = vpop.f32.mrb[98].mxu1 }
 0xbf2   : > { %v7099_v63 = vmax.f32 %v7091_v45, 0.0  ;;  %v7080_v1 = vmul.f32 %v16357_v40, %v6655_v42  ;;  %v14367_v16 = vpop.f32.mrb[99].mxu1  ;;  %v13181_v42 = vld [vmem:[%s17338_s2 + $0xf0] sm:$0xff] }
 0xbf4   : > { %v7092_v17 = vadd.f32 %v13140_v51, %v7080_v1  ;;  %14399 = vmatpush3.msra.mxu1 %v7099_v63  ;;  %v13182_v63 = vld [vmem:[%s17338_s2 + $0xf8] sm:$0xff] }
 0xbf5   : > { %v6725_v25 = vpop.f32.mrb[100].mxu1  ;;  %14408 = vmatprep.subr.mxu1 %v15462_v18  ;;  %14401 = vmatmul.mubr.msk.f32.vlgmr.msra.gmra.mrb[108].mxu1 %vm454_vm0, %v16578_v58 }
 0xbf6   : > { %v7100_v9 = vmax.f32 %v7092_v17, 0.0  ;;  %v7081_v31 = vmul.f32 %v16352_v55, %v6725_v25  ;;  %v14372_v11 = vpop.f32.mrb[101].mxu1  ;;  %14410 = vmatprep.mubr.msk.f32.mxu1 %vm15464_vm8, %v15462_v18 }
 0xbf7   : > { %v13184_v11 = vld [vmem:[%s17338_s2 + $0x108] sm:$0xff] }
 0xbf8   : > { %v7093_v3 = vadd.f32 %v13140_v51, %v7081_v31  ;;  %14404 = vmatpush3.msra.mxu0 %v7100_v9  ;;  %v15109_v9 = vpack.c.bf16 %v13182_v63, %v13181_v42  ;;  %v13183_v31 = vld [vmem:[%s17338_s2 + $0x100] sm:$0xff] }
 0xbf9   : > { %v6795_v15 = vpop.f32.mrb[102].mxu1  ;;  %v6935_v40 = vpop.f32.mrb[104].mxu0  ;;  %14406 = vmatmul.mubr.msk.f32.vlgmr.msra.gmra.mrb[108].mxu0 %vm454_vm0, %v16578_v58  ;;  %14413 = vmatprep.subr.mxu0 %v15462_v18 }
 0xbfa   : > { %v7101_v20 = vmax.f32 %v7093_v3, 0.0  ;;  %v7082_v47 = vmul.f32 %v16363_v35, %v6795_v15  ;;  %v7084_v27 = vmul.f32 %v16374_v52, %v6935_v40  ;;  %v14377_v28 = vpop.f32.mrb[103].mxu1  ;;  %v14387_v55 = vpop.f32.mrb[105].mxu0  ;;  %14415 = vmatprep.mubr.msk.f32.mxu0 %vm15464_vm8, %v15462_v18  ;;  %v15112_v40 = vpack.c.bf16 %v13184_v11, %v13183_v31 }
 0xbfc   : > { %v7094_v29 = vadd.f32 %v13140_v51, %v7082_v47  ;;  %v7096_v23 = vadd.f32 %v13140_v51, %v7084_v27  ;;  %14409 = vmatpush3.msra.mxu1 %v7101_v20 }
 0xbfd   : > { %v6865_v32 = vpop.f32.mrb[104].mxu1  ;;  %v7075_v60 = vpop.f32.mrb[106].mxu0  ;;  %14411 = vmatmul.mubr.msk.f32.vlgmr.msra.gmra.mrb[110].mxu1 %vm454_vm0, %v16578_v58  ;;  %14418 = vmatprep.subr.mxu1 %v15462_v18 }
 0xbfe   : > { %v7102_v33 = vmax.f32 %v7094_v29, 0.0  ;;  %v7083_v35 = vmul.f32 %v16372_v53, %v6865_v32  ;;  %v7086_v52 = vmul.f32 %v16382_v4, %v7075_v60  ;;  %v14382_v36 = vpop.f32.mrb[105].mxu1  ;;  %v14397_v10 = vpop.f32.mrb[107].mxu0  ;;  %14420 = vmatprep.mubr.msk.f32.mxu1 %vm15464_vm8, %v15462_v18  ;;  %v7104_v26 = vmax.f32 %v7096_v23, 0.0 }
 0xc00   : > { %v7095_v2 = vadd.f32 %v13140_v51, %v7083_v35  ;;  %v7098_v34 = vadd.f32 %v13140_v51, %v7086_v52  ;;  %14414 = vmatpush3.msra.mxu0 %v7102_v33 }
 0xc01   : > { %v7005_v19 = vpop.f32.mrb[106].mxu1  ;;  %14416 = vmatmul.mubr.msk.f32.vlgmr.msra.gmra.mrb[110].mxu0 %vm454_vm0, %v16578_v58  ;;  %14423 = vmatprep.subr.mxu0 %v15462_v18 }
 0xc02   : > { %v7103_v37 = vmax.f32 %v7095_v2, 0.0  ;;  %v7106_v21 = vmax.f32 %v7098_v34, 0.0  ;;  %v7085_v53 = vmul.f32 %v16385_v8, %v7005_v19  ;;  %v14392_v4 = vpop.f32.mrb[107].mxu1  ;;  %14424 = vmatpush3.msra.mxu0 %v7104_v26  ;;  %14425 = vmatprep.mubr.msk.f32.mxu0 %vm15464_vm8, %v15462_v18 }
 0xc03   : > { %14433 = vmatprep.subr.mxu0 %v15462_v18 }
 0xc04   : > { %v7097_v38 = vadd.f32 %v13140_v51, %v7085_v53  ;;  %14419 = vmatpush3.msra.mxu1 %v7103_v37 }
 0xc05   : > { %14421 = vmatmul.mubr.msk.f32.vlgmr.msra.gmra.mrb[112].mxu1 %vm454_vm0, %v16578_v58  ;;  %14426 = vmatmul.mubr.msk.f32.vlgmr.msra.gmra.mrb[112].mxu0 %vm454_vm0, %v16578_v58 }
 0xc06   : > { %v7105_v39 = vmax.f32 %v7097_v38, 0.0  ;;  %14434 = vmatpush3.msra.mxu0 %v7106_v21  ;;  %14428 = vmatprep.subr.mxu1 %v15462_v18 }
 0xc07   : > { %14430 = vmatprep.mubr.msk.f32.mxu1 %vm15464_vm8, %v15462_v18  ;;  %14435 = vmatprep.mubr.msk.f32.mxu0 %vm15464_vm8, %v15462_v18 }
 0xc08   : > { %14429 = vmatpush3.msra.mxu1 %v7105_v39  ;;  %14443 = vmatprep.subr.mxu0 %v15462_v18 }
 0xc09   : > { %14431 = vmatmul.mubr.msk.f32.vlgmr.msra.gmra.mrb[114].mxu1 %vm454_vm0, %v16578_v58  ;;  %14436 = vmatmul.mubr.msk.f32.vlgmr.msra.gmra.mrb[114].mxu0 %vm454_vm0, %v16578_v58 }
 0xc0a   : > { %14438 = vmatprep.subr.mxu1 %v15462_v18  ;;  %14444 = vmatpush3.msra.mxu0 %v16277_v59 }
 0xc0b   : > { %14439 = vmatpush3.msra.mxu1 %v16269_v50  ;;  %14440 = vmatprep.mubr.msk.f32.mxu1 %vm15464_vm8, %v15462_v18 }
 0xc0c   : > { %14445 = vmatprep.mubr.msk.f32.mxu0 %vm15464_vm8, %v15462_v18  ;;  %14448 = vmatprep.subr.mxu1 %v15462_v18 }
 0xc0d   : > { %14453 = vmatprep.subr.mxu0 %v15462_v18  ;;  %14441 = vmatmul.mubr.msk.f32.vlgmr.msra.gmra.mrb[116].mxu1 %vm454_vm0, %v16578_v58 }
 0xc0e   : > { %14446 = vmatmul.mubr.msk.f32.vlgmr.msra.gmra.mrb[116].mxu0 %vm454_vm0, %v16578_v58  ;;  %14449 = vmatpush3.msra.mxu1 %v16279_v0 }
 0xc0f   : > { %14454 = vmatpush3.msra.mxu0 %v16295_v5  ;;  %14450 = vmatprep.mubr.msk.f32.mxu1 %vm15464_vm8, %v15462_v18 }
 0xc10   : > { %14455 = vmatprep.mubr.msk.f32.mxu0 %vm15464_vm8, %v15462_v18  ;;  %14458 = vmatprep.subr.mxu1 %v15462_v18 }
 0xc11   : > { %14463 = vmatprep.subr.mxu0 %v15462_v18  ;;  %14451 = vmatmul.mubr.msk.f32.vlgmr.msra.gmra.mrb[118].mxu1 %vm454_vm0, %v16578_v58 }
 0xc12   : > { %14456 = vmatmul.mubr.msk.f32.vlgmr.msra.gmra.mrb[118].mxu0 %vm454_vm0, %v16578_v58  ;;  %14459 = vmatpush3.msra.mxu1 %v16297_v62 }
 0xc13   : > { %14464 = vmatpush3.msra.mxu0 %v16315_v7  ;;  %14460 = vmatprep.mubr.msk.f32.mxu1 %vm15464_vm8, %v15462_v18 }
 0xc14   : > { %14465 = vmatprep.mubr.msk.f32.mxu0 %vm15464_vm8, %v15462_v18  ;;  %14468 = vmatprep.subr.mxu1 %v15462_v18 }
 0xc15   : > { %14473 = vmatprep.subr.mxu0 %v15462_v18  ;;  %14461 = vmatmul.mubr.msk.f32.vlgmr.msra.gmra.mrb[120].mxu1 %vm454_vm0, %v16578_v58 }
 0xc16   : > { %14466 = vmatmul.mubr.msk.f32.vlgmr.msra.gmra.mrb[120].mxu0 %vm454_vm0, %v16578_v58  ;;  %14469 = vmatpush3.msra.mxu1 %v16317_v13 }
 0xc17   : > { %14474 = vmatpush3.msra.mxu0 %v16335_v14  ;;  %14470 = vmatprep.mubr.msk.f32.mxu1 %vm15464_vm8, %v15462_v18 }
 0xc18   : > { %14475 = vmatprep.mubr.msk.f32.mxu0 %vm15464_vm8, %v15462_v18  ;;  %14478 = vmatprep.subr.mxu1 %v15462_v18 }
 0xc19   : > { %14471 = vmatmul.mubr.msk.f32.vlgmr.msra.gmra.mrb[122].mxu1 %vm454_vm0, %v16578_v58  ;;  %14483 = vmatprep.subr.mxu0 %v15462_v18 }
 0xc1a   : > { %14476 = vmatmul.mubr.msk.f32.vlgmr.msra.gmra.mrb[122].mxu0 %vm454_vm0, %v16578_v58  ;;  %14480 = vmatprep.mubr.msk.f32.mxu1 %vm15464_vm8, %v15462_v18 }
 0xc1b   : > { %14485 = vmatprep.mubr.msk.f32.mxu0 %vm15464_vm8, %v15462_v18 }
 0xc1d   : > { %14479 = vmatpush3.xpose.msk.msra.mxu1 %vm454_vm0, %v16578_v58 }
 0xc1e   : > { %14484 = vmatpush3.xpose.msk.msra.mxu0 %vm454_vm0, %v16578_v58  ;;  %14488 = vmatprep.subr.mxu1 %v15462_v18 }
 0xc1f   : > { %14493 = vmatprep.subr.mxu0 %v15462_v18 }
 0xcc8   : > { %v16681_v50 = vpop.f32.mrb[108].mxu1 }
 0xcc9   : > { %v14402_v59 = vpop.f32.mrb[109].mxu1 }
 0xccc   : > { %v16683_v0 = vpop.f32.mrb[108].mxu0 }
 0xccd   : > { %v14407_v5 = vpop.f32.mrb[109].mxu0 }
 0xcd0   : > { %v16685_v62 = vpop.f32.mrb[110].mxu1 }
 0xcd1   : > { %v14412_v7 = vpop.f32.mrb[111].mxu1 }
 0xcd4   : > { %v16687_v13 = vpop.f32.mrb[110].mxu0 }
 0xcd5   : > { %v14417_v14 = vpop.f32.mrb[111].mxu0 }
 0xcd8   : > { %v16689_v8 = vpop.f32.mrb[112].mxu1  ;;  %v16691_v41 = vpop.f32.mrb[112].mxu0 }
 0xcd9   : > { %v14422_v43 = vpop.f32.mrb[113].mxu1  ;;  %v14427_v22 = vpop.f32.mrb[113].mxu0 }
 0xcdc   : > { %v16693_v24 = vpop.f32.mrb[114].mxu1  ;;  %v16695_v44 = vpop.f32.mrb[114].mxu0 }
 0xcdd   : > { %v14432_v46 = vpop.f32.mrb[115].mxu1  ;;  %v14437_v48 = vpop.f32.mrb[115].mxu0 }
 0xce0   : > { %v7757_v30 = vpop.f32.mrb[116].mxu1 }
 0xce1   : > { %v7827_v49 = vpop.f32.mrb[116].mxu0  ;;  %14481 = vmatmul.mubr.msk.f32.vlgmr.msra.gmra.mrb[124].mxu1 %vm454_vm0, %v7757_v30  ;;  %v14442_v51 = vpop.f32.mrb[117].mxu1 }
 0xce2   : > { %14486 = vmatmul.mubr.msk.f32.vlgmr.msra.gmra.mrb[124].mxu0 %vm454_vm0, %v7827_v49  ;;  %14489 = vmatpush3.xpose.msk.msra.mxu1 %vm454_vm0, %v16578_v58  ;;  %v14447_v54 = vpop.f32.mrb[117].mxu0 }
 0xce3   : > { %14494 = vmatpush3.xpose.msk.msra.mxu0 %vm454_vm0, %v16578_v58  ;;  %14490 = vmatprep.mubr.msk.f32.mxu1 %vm15464_vm8, %v15462_v18 }
 0xce4   : > { %v7897_v57 = vpop.f32.mrb[118].mxu1  ;;  %14495 = vmatprep.mubr.msk.f32.mxu0 %vm15464_vm8, %v15462_v18  ;;  %14498 = vmatprep.subr.mxu1 %v15462_v18 }
 0xce5   : > { %v7967_v61 = vpop.f32.mrb[118].mxu0  ;;  %14503 = vmatprep.subr.mxu0 %v15462_v18  ;;  %14491 = vmatmul.mubr.msk.f32.vlgmr.msra.gmra.mrb[126].mxu1 %vm454_vm0, %v7897_v57  ;;  %v14452_v56 = vpop.f32.mrb[119].mxu1 }
 0xce6   : > { %14496 = vmatmul.mubr.msk.f32.vlgmr.msra.gmra.mrb[126].mxu0 %vm454_vm0, %v7967_v61  ;;  %14499 = vmatpush3.xpose.msk.msra.mxu1 %vm454_vm0, %v16578_v58  ;;  %v14457_v45 = vpop.f32.mrb[119].mxu0 }
 0xce7   : > { %14504 = vmatpush3.xpose.msk.msra.mxu0 %vm454_vm0, %v16578_v58  ;;  %14500 = vmatprep.mubr.msk.f32.mxu1 %vm15464_vm8, %v15462_v18 }
 0xce8   : > { %v8037_v1 = vpop.f32.mrb[120].mxu1  ;;  %14505 = vmatprep.mubr.msk.f32.mxu0 %vm15464_vm8, %v15462_v18  ;;  %14508 = vmatprep.subr.mxu1 %v15462_v18 }
 0xce9   : > { %v8107_v16 = vpop.f32.mrb[120].mxu0  ;;  %14513 = vmatprep.subr.mxu0 %v15462_v18  ;;  %14501 = vmatmul.mubr.msk.f32.vlgmr.msra.gmra.mrb[128].mxu1 %vm454_vm0, %v8037_v1  ;;  %v14462_v17 = vpop.f32.mrb[121].mxu1 }
 0xcea   : > { %14506 = vmatmul.mubr.msk.f32.vlgmr.msra.gmra.mrb[128].mxu0 %vm454_vm0, %v8107_v16  ;;  %14509 = vmatpush3.xpose.msk.msra.mxu1 %vm454_vm0, %v16578_v58  ;;  %v14467_v25 = vpop.f32.mrb[121].mxu0 }
 0xceb   : > { %14514 = vmatpush3.xpose.msk.msra.mxu0 %vm454_vm0, %v16578_v58  ;;  %14510 = vmatprep.mubr.msk.f32.mxu1 %vm15464_vm8, %v15462_v18 }
 0xcec   : > { %v8177_v3 = vpop.f32.mrb[122].mxu1  ;;  %14515 = vmatprep.mubr.msk.f32.mxu0 %vm15464_vm8, %v15462_v18  ;;  %15108 = vmatprep.subr.bf16.mxu1 %v15463_v6 }
 0xced   : > { %v8247_v15 = vpop.f32.mrb[122].mxu0  ;;  %15114 = vmatprep.subr.bf16.mxu0 %v15463_v6  ;;  %14511 = vmatmul.mubr.msk.f32.vlgmr.msra.gmra.mrb[130].mxu1 %vm454_vm0, %v8177_v3  ;;  %v14472_v58 = vpop.f32.mrb[123].mxu1 }
 0xcee   : > { %14516 = vmatmul.mubr.msk.f32.vlgmr.msra.gmra.mrb[130].mxu0 %vm454_vm0, %v8247_v15  ;;  %15110 = vmatpush3.bf16.msra.mxu1 %v15109_v9  ;;  %v14477_v20 = vpop.f32.mrb[123].mxu0 }
 0xcef   : > { %15116 = vmatpush3.bf16.msra.mxu0 %v15109_v9  ;;  %15111 = vmatprep.subr.bf16.mxu1 %v15463_v6 }
 0xcf0   : > { %15117 = vmatprep.subr.bf16.mxu0 %v15463_v6  ;;  %14526 = vmatprep.mubr.msk.f32.mxu1 %vm15464_vm8, %v15462_v18 }
 0xcf1   : > { %14537 = vmatprep.mubr.msk.f32.mxu0 %vm15464_vm8, %v15462_v18 }
 0xcf2   : > { %15113 = vmatpush3.bf16.msra.mxu1 %v15112_v40 }
 0xcf3   : > { %15119 = vmatpush3.bf16.msra.mxu0 %v15112_v40  ;;  %15120 = vmatprep.subr.bf16.mxu1 %v15463_v6 }
 0xcf4   : > { %15126 = vmatprep.subr.bf16.mxu0 %v15463_v6 }
 0xcf5   : > { %14527 = vmatmul.mubr.msk.f32.vlgmr.msra.gmra.mrb[132].mxu1 %vm1370_vm2, %v16681_v50 }
 0xcf6   : > { %14538 = vmatmul.mubr.msk.f32.vlgmr.msra.gmra.mrb[132].mxu0 %vm1370_vm2, %v16683_v0  ;;  %15122 = vmatpush3.bf16.msra.mxu1 %v15109_v9 }
 0xcf7   : > { %15128 = vmatpush3.bf16.msra.mxu0 %v15109_v9  ;;  %15123 = vmatprep.subr.bf16.mxu1 %v15463_v6 }
 0xcf8   : > { %15129 = vmatprep.subr.bf16.mxu0 %v15463_v6  ;;  %14548 = vmatprep.mubr.msk.f32.mxu1 %vm15464_vm8, %v15462_v18 }
 0xcf9   : > { %14559 = vmatprep.mubr.msk.f32.mxu0 %vm15464_vm8, %v15462_v18 }
 0xcfa   : > { %15125 = vmatpush3.bf16.msra.mxu1 %v15112_v40 }
 0xcfb   : > { %15131 = vmatpush3.bf16.msra.mxu0 %v15112_v40  ;;  %15132 = vmatprep.subr.bf16.mxu1 %v15463_v6 }
 0xcfc   : > { %15138 = vmatprep.subr.bf16.mxu0 %v15463_v6 }
 0xcfd   : > { %14549 = vmatmul.mubr.msk.f32.vlgmr.msra.gmra.mrb[134].mxu1 %vm1370_vm2, %v16685_v62 }
 0xcfe   : > { %14560 = vmatmul.mubr.msk.f32.vlgmr.msra.gmra.mrb[134].mxu0 %vm1370_vm2, %v16687_v13  ;;  %15134 = vmatpush3.bf16.msra.mxu1 %v15109_v9 }
 0xcff   : > { %15140 = vmatpush3.bf16.msra.mxu0 %v15109_v9  ;;  %15135 = vmatprep.subr.bf16.mxu1 %v15463_v6 }
 0xd00   : > { %15141 = vmatprep.subr.bf16.mxu0 %v15463_v6  ;;  %14570 = vmatprep.mubr.msk.f32.mxu1 %vm15464_vm8, %v15462_v18 }
 0xd01   : > { %14581 = vmatprep.mubr.msk.f32.mxu0 %vm15464_vm8, %v15462_v18 }
 0xd02   : > { %15137 = vmatpush3.bf16.msra.mxu1 %v15112_v40 }
 0xd03   : > { %15143 = vmatpush3.bf16.msra.mxu0 %v15112_v40  ;;  %15144 = vmatprep.subr.bf16.mxu1 %v15463_v6 }
 0xd04   : > { %15150 = vmatprep.subr.bf16.mxu0 %v15463_v6 }
 0xd05   : > { %14571 = vmatmul.mubr.msk.f32.vlgmr.msra.gmra.mrb[136].mxu1 %vm1370_vm2, %v16689_v8 }
 0xd06   : > { %14582 = vmatmul.mubr.msk.f32.vlgmr.msra.gmra.mrb[136].mxu0 %vm1370_vm2, %v16691_v41  ;;  %15146 = vmatpush3.bf16.msra.mxu1 %v15109_v9 }
 0xd07   : > { %15152 = vmatpush3.bf16.msra.mxu0 %v15109_v9  ;;  %15147 = vmatprep.subr.bf16.mxu1 %v15463_v6 }
 0xd08   : > { %15153 = vmatprep.subr.bf16.mxu0 %v15463_v6  ;;  %14592 = vmatprep.mubr.msk.f32.mxu1 %vm15464_vm8, %v15462_v18 }
 0xd09   : > { %14603 = vmatprep.mubr.msk.f32.mxu0 %vm15464_vm8, %v15462_v18 }
 0xd0a   : > { %15149 = vmatpush3.bf16.msra.mxu1 %v15112_v40 }
 0xd0b   : > { %15155 = vmatpush3.bf16.msra.mxu0 %v15112_v40  ;;  %14606 = vmatprep.subr.mxu1 %v15462_v18 }
 0xd0c   : > { %14611 = vmatprep.subr.mxu0 %v15462_v18 }
 0xd0d   : > { %14593 = vmatmul.mubr.msk.f32.vlgmr.msra.gmra.mrb[138].mxu1 %vm1370_vm2, %v16693_v24 }
 0xd0e   : > { %14604 = vmatmul.mubr.msk.f32.vlgmr.msra.gmra.mrb[138].mxu0 %vm1370_vm2, %v16695_v44  ;;  %14608 = vmatprep.mubr.msk.f32.mxu1 %vm15464_vm8, %v15462_v18 }
 0xd0f   : > { %14613 = vmatprep.mubr.msk.f32.mxu0 %vm15464_vm8, %v15462_v18 }
 0xdb4   : > { %v8320_v47 = vpop.f32.mrb[124].mxu1 }
 0xdb5   : > { %vm8835_vm0 = vcmp.ne.f32.partialorder %v8320_v47, 0.0  ;;  %v8393_v27 = vpop.f32.mrb[124].mxu0  ;;  %v14482_v28 = vpop.f32.mrb[125].mxu1 }
 0xdb6   : > { %v13173_v55 = vsel %vm8835_vm0, 1.0, %v15462_v18  ;;  %vm8836_vm7 = vcmp.ne.f32.partialorder %v8393_v27, 0.0  ;;  %v14487_v29 = vpop.f32.mrb[125].mxu0  ;;  %vm12648_vm0 = vcmask 1043459  }
 0xdb7   : > { %v16802_v23 = vsel %vm15573_vm1, 1.0, %v13173_v55  ;;  %v13174_v32 = vsel %vm8836_vm7, 1.0, %v15462_v18  ;;  %vm12652_vm7 = vcmask 1045509  }
 0xdb8   : > { %v16807_v60 = vsel %vm15573_vm1, 1.0, %v13174_v32  ;;  %v8466_v33 = vpop.f32.mrb[126].mxu1  ;;  %v8868_v35 = vsel %vm8867_vm6, %v16802_v23, 0.0 }
 0xdb9   : > { %vm8837_vm9 = vcmp.ne.f32.partialorder %v8466_v33, 0.0  ;;  %v8539_v52 = vpop.f32.mrb[126].mxu0  ;;  %v8871_v36 = vsel %vm8867_vm6, %v16807_v60, 0.0  ;;  %8869 = vadd.xlane.f32.xlu0 %v8868_v35  ;;  %v14492_v10 = vpop.f32.mrb[127].mxu1 }
 0xdba   : > { %v13175_v26 = vsel %vm8837_vm9, 1.0, %v15462_v18  ;;  %vm8838_vm10 = vcmp.ne.f32.partialorder %v8539_v52, 0.0  ;;  %8872 = vadd.xlane.f32.xlu1 %v8871_v36  ;;  %v14497_v2 = vpop.f32.mrb[127].mxu0  ;;  %vm12654_vm9 = vcmask 1046534  }
 0xdbb   : > { %v16816_v34 = vsel %vm15573_vm1, 1.0, %v13175_v26  ;;  %v13176_v19 = vsel %vm8838_vm10, 1.0, %v15462_v18  ;;  %vm12656_vm10 = vcmask 1047559  }
 0xdbc   : > { %v16821_v37 = vsel %vm15573_vm1, 1.0, %v13176_v19  ;;  %v8612_v21 = vpop.f32.mrb[128].mxu1  ;;  %v8874_v53 = vsel %vm8867_vm6, %v16816_v34, 0.0 }
 0xdbd   : > { %vm8839_vm11 = vcmp.ne.f32.partialorder %v8612_v21, 0.0  ;;  %v8685_v4 = vpop.f32.mrb[128].mxu0  ;;  %v8877_v38 = vsel %vm8867_vm6, %v16821_v37, 0.0  ;;  %8875 = vadd.xlane.f32.xlu0 %v8874_v53  ;;  %v14502_v39 = vpop.f32.mrb[129].mxu1  ;;  %v13211_v21 = vld [vmem:[%s17338_s2 + $0x118] sm:$0xff]  ;;  %v13212_v53 = vld [vmem:[%s17338_s2 + $0x120] sm:$0xff] }
 0xdbe   : > { %v13177_v50 = vsel %vm8839_vm11, 1.0, %v15462_v18  ;;  %vm8840_vm12 = vcmp.ne.f32.partialorder %v8685_v4, 0.0  ;;  %8878 = vadd.xlane.f32.xlu1 %v8877_v38  ;;  %v14507_v59 = vpop.f32.mrb[129].mxu0 }
 0xdbf   : > { %v16830_v0 = vsel %vm15573_vm1, 1.0, %v13177_v50  ;;  %v13178_v5 = vsel %vm8840_vm12, 1.0, %v15462_v18  ;;  %v16919_v59 = vpack.c.bf16 %v13212_v53, %v13211_v21 }
 0xdc0   : > { %v16835_v62 = vsel %vm15573_vm1, 1.0, %v13178_v5  ;;  %v8758_v7 = vpop.f32.mrb[130].mxu1  ;;  %v8880_v13 = vsel %vm8867_vm6, %v16830_v0, 0.0  ;;  %v13213_v5 = vld [vmem:[%s17338_s2 + $0x128] sm:$0xff] }
 0xdc1   : > { %vm8841_vm13 = vcmp.ne.f32.partialorder %v8758_v7, 0.0  ;;  %v8831_v14 = vpop.f32.mrb[130].mxu0  ;;  %v8883_v8 = vsel %vm8867_vm6, %v16835_v62, 0.0  ;;  %8881 = vadd.xlane.f32.xlu0 %v8880_v13  ;;  %v14512_v41 = vpop.f32.mrb[131].mxu1  ;;  %v13214_v7 = vld [vmem:[%s17338_s2 + $0x130] sm:$0xff] }
 0xdc2   : > { %v13179_v43 = vsel %vm8841_vm13, 1.0, %v15462_v18  ;;  %vm8842_vm14 = vcmp.ne.f32.partialorder %v8831_v14, 0.0  ;;  %8884 = vadd.xlane.f32.xlu1 %v8883_v8  ;;  %v14517_v22 = vpop.f32.mrb[131].mxu0  ;;  %v16945_v13 = vpack.c.bf16 %v13214_v7, %v13213_v5  ;;  %v16954_v14 = vld [vmem:[%s17338_s2 + $0x110] ss:$0 sm:$0xff] }
 0xdc3   : > { %v16844_v24 = vsel %vm15573_vm1, 1.0, %v13179_v43  ;;  %v13180_v44 = vsel %vm8842_vm14, 1.0, %v15462_v18 }
 0xdc4   : > { %v16849_v46 = vsel %vm15573_vm1, 1.0, %v13180_v44  ;;  %v8886_v48 = vsel %vm8867_vm6, %v16844_v24, 0.0  ;;  %vm9502_vm1 = vcmask 1043456  }
 0xdc5   : > { %v8889_v30 = vsel %vm8867_vm6, %v16849_v46, 0.0  ;;  %8887 = vadd.xlane.f32.xlu0 %v8886_v48  ;;  %vm12650_vm6 = vcmask 1044484  }
 0xdc6   : > { %8890 = vadd.xlane.f32.xlu1 %v8889_v30 }
 0xdc8   : > { %v8975_v49 = vpop.f32.mrb[132].mxu1 }
 0xdc9   : > { %v9048_v51 = vpop.f32.mrb[132].mxu0  ;;  %v14528_v54 = vpop.f32.mrb[133].mxu1 }
 0xdca   : > { %v14539_v57 = vpop.f32.mrb[133].mxu0 }
 0xdd0   : > { %v9121_v61 = vpop.f32.mrb[134].mxu1 }
 0xdd1   : > { %v9194_v56 = vpop.f32.mrb[134].mxu0  ;;  %v14550_v45 = vpop.f32.mrb[135].mxu1 }
 0xdd2   : > { %v14561_v42 = vpop.f32.mrb[135].mxu0 }
 0xdd8   : > { %v9267_v63 = vpop.f32.mrb[136].mxu1 }
 0xdd9   : > { %v9340_v12 = vpop.f32.mrb[136].mxu0  ;;  %v14572_v1 = vpop.f32.mrb[137].mxu1 }
 0xdda   : > { %v14583_v16 = vpop.f32.mrb[137].mxu0 }
 0xde0   : > { %v9413_v17 = vpop.f32.mrb[138].mxu1 }
 0xde1   : > { %v9486_v25 = vpop.f32.mrb[138].mxu0  ;;  %v14594_v9 = vpop.f32.mrb[139].mxu1 }
 0xde2   : > { %v14605_v31 = vpop.f32.mrb[139].mxu0 }
 0xe46   : > { %v8870_v11 = vpop.xlane.xlu0 %8869 }
 0xe47   : > { %v8873_v3 = vpop.xlane.xlu1 %8872  ;;  %15362 = vrsqrt.f32 %v8870_v11 }
 0xe48   : > { %15364 = vrsqrt.f32 %v8873_v3 }
 0xe4a   : > { %v8876_v15 = vpop.xlane.xlu0 %8875 }
 0xe4b   : > { %v8879_v58 = vpop.xlane.xlu1 %8878  ;;  %15366 = vrsqrt.f32 %v8876_v15 }
 0xe4c   : > { %15368 = vrsqrt.f32 %v8879_v58 }
 0xe4e   : > { %v8882_v40 = vpop.xlane.xlu0 %8881 }
 0xe4f   : > { %v8885_v20 = vpop.xlane.xlu1 %8884  ;;  %15370 = vrsqrt.f32 %v8882_v40 }
 0xe50   : > { %15372 = vrsqrt.f32 %v8885_v20 }
 0xe51   : > { %v16855_v47 = vpop.eup %15362 }
 0xe52   : > { %v16857_v27 = vpop.eup %15364  ;;  %v8888_v28 = vpop.xlane.xlu0 %8887  ;;  %v9490_v55 = vmul.f32 %v16855_v47, %v8975_v49 }
 0xe53   : > { %v8891_v29 = vpop.xlane.xlu1 %8890  ;;  %15374 = vrsqrt.f32 %v8888_v28  ;;  %v9491_v32 = vmul.f32 %v16857_v27, %v9048_v51 }
 0xe54   : > { %15376 = vrsqrt.f32 %v8891_v29  ;;  %14607 = vmatpush3.msk.msra.mxu1 %vm9502_vm1, %v9490_v55 }
 0xe55   : > { %v16862_v33 = vpop.eup %15366  ;;  %14612 = vmatpush3.msk.msra.mxu0 %vm9502_vm1, %v9491_v32  ;;  %14609 = vmatmul.mubr.msk.f32.vlgmr.msra.gmra.mrb[140].mxu1 %vm9498_vm15, %v16802_v23 }
 0xe56   : > { %v16867_v35 = vpop.eup %15368  ;;  %14614 = vmatmul.mubr.msk.f32.vlgmr.msra.gmra.mrb[140].mxu0 %vm9498_vm15, %v16807_v60  ;;  %14616 = vmatprep.subr.mxu1 %v15462_v18  ;;  %v9492_v52 = vmul.f32 %v16862_v33, %v9121_v61 }
 0xe57   : > { %14621 = vmatprep.subr.mxu0 %v15462_v18  ;;  %14618 = vmatprep.mubr.msk.f32.mxu1 %vm15464_vm8, %v15462_v18  ;;  %v9493_v36 = vmul.f32 %v16867_v35, %v9194_v56 }
 0xe58   : > { %14617 = vmatpush3.msk.msra.mxu1 %vm9502_vm1, %v9492_v52  ;;  %14623 = vmatprep.mubr.msk.f32.mxu0 %vm15464_vm8, %v15462_v18 }
 0xe59   : > { %v16880_v10 = vpop.eup %15370  ;;  %14622 = vmatpush3.msk.msra.mxu0 %vm9502_vm1, %v9493_v36  ;;  %14619 = vmatmul.mubr.msk.f32.vlgmr.msra.gmra.mrb[142].mxu1 %vm9498_vm15, %v16816_v34 }
 0xe5a   : > { %v16885_v26 = vpop.eup %15372  ;;  %14624 = vmatmul.mubr.msk.f32.vlgmr.msra.gmra.mrb[142].mxu0 %vm9498_vm15, %v16821_v37  ;;  %14626 = vmatprep.subr.mxu1 %v15462_v18  ;;  %v9494_v2 = vmul.f32 %v16880_v10, %v9267_v63 }
 0xe5b   : > { %14631 = vmatprep.subr.mxu0 %v15462_v18  ;;  %14628 = vmatprep.mubr.msk.f32.mxu1 %vm15464_vm8, %v15462_v18  ;;  %v9495_v19 = vmul.f32 %v16885_v26, %v9340_v12 }
 0xe5c   : > { %14627 = vmatpush3.msk.msra.mxu1 %vm9502_vm1, %v9494_v2  ;;  %14633 = vmatprep.mubr.msk.f32.mxu0 %vm15464_vm8, %v15462_v18 }
 0xe5d   : > { %v16904_v4 = vpop.eup %15374  ;;  %14632 = vmatpush3.msk.msra.mxu0 %vm9502_vm1, %v9495_v19  ;;  %14629 = vmatmul.mubr.msk.f32.vlgmr.msra.gmra.mrb[144].mxu1 %vm9498_vm15, %v16830_v0 }
 0xe5e   : > { %v16909_v38 = vpop.eup %15376  ;;  %14634 = vmatmul.mubr.msk.f32.vlgmr.msra.gmra.mrb[144].mxu0 %vm9498_vm15, %v16835_v62  ;;  %14636 = vmatprep.subr.mxu1 %v15462_v18  ;;  %v9496_v39 = vmul.f32 %v16904_v4, %v9413_v17 }
 0xe5f   : > { %14641 = vmatprep.subr.mxu0 %v15462_v18  ;;  %14638 = vmatprep.mubr.msk.f32.mxu1 %vm15464_vm8, %v15462_v18  ;;  %v9497_v50 = vmul.f32 %v16909_v38, %v9486_v25 }
 0xe60   : > { %14637 = vmatpush3.msk.msra.mxu1 %vm9502_vm1, %v9496_v39  ;;  %14643 = vmatprep.mubr.msk.f32.mxu0 %vm15464_vm8, %v15462_v18 }
 0xe61   : > { %14642 = vmatpush3.msk.msra.mxu0 %vm9502_vm1, %v9497_v50  ;;  %14639 = vmatmul.mubr.msk.f32.vlgmr.msra.gmra.mrb[146].mxu1 %vm9498_vm15, %v16844_v24 }
 0xe62   : > { %14644 = vmatmul.mubr.msk.f32.vlgmr.msra.gmra.mrb[146].mxu0 %vm9498_vm15, %v16849_v46  ;;  %15156 = vmatprep.subr.bf16.mxu1 %v15463_v6 }
 0xe63   : > { %15162 = vmatprep.subr.bf16.mxu0 %v15463_v6  ;;  %15158 = vmatpush3.bf16.msra.mxu1 %v16919_v59 }
 0xe64   : > { %15164 = vmatpush3.bf16.msra.mxu0 %v16919_v59  ;;  %15159 = vmatprep.subr.bf16.mxu1 %v15463_v6 }
 0xe65   : > { %15165 = vmatprep.subr.bf16.mxu0 %v15463_v6  ;;  %14654 = vmatprep.mubr.msk.f32.mxu1 %vm15464_vm8, %v15462_v18 }
 0xe66   : > { %14665 = vmatprep.mubr.msk.f32.mxu0 %vm15464_vm8, %v15462_v18 }
 0xe67   : > { %15161 = vmatpush3.bf16.msra.mxu1 %v16945_v13 }
 0xe68   : > { %15167 = vmatpush3.bf16.msra.mxu0 %v16945_v13  ;;  %15168 = vmatprep.subr.bf16.mxu1 %v15463_v6 }
 0xe69   : > { %15174 = vmatprep.subr.bf16.mxu0 %v15463_v6 }
 0xf28   : > { %v9572_v8 = vpop.f32.mrb[140].mxu1 }
 0xf29   : > { %v10108_v41 = vmul.f32 %v16855_v47, %v9572_v8  ;;  %v9648_v43 = vpop.f32.mrb[140].mxu0  ;;  %v14610_v22 = vpop.f32.mrb[141].mxu1 }
 0xf2a   : > { %v10109_v44 = vmul.f32 %v16857_v27, %v9648_v43  ;;  %v14615_v48 = vpop.f32.mrb[141].mxu0 }
 0xf2b   : > { %v10120_v30 = vadd.f32 %v16954_v14, %v10108_v41 }
 0xf2c   : > { %v10121_v49 = vadd.f32 %v16954_v14, %v10109_v44  ;;  %v9724_v51 = vpop.f32.mrb[142].mxu1 }
 0xf2d   : > { %v10128_v54 = vmax.f32 %v10120_v30, 0.0  ;;  %v10110_v57 = vmul.f32 %v16862_v33, %v9724_v51  ;;  %v9800_v61 = vpop.f32.mrb[142].mxu0  ;;  %v14620_v56 = vpop.f32.mrb[143].mxu1 }
 0xf2e   : > { %v10129_v45 = vmax.f32 %v10121_v49, 0.0  ;;  %v10111_v42 = vmul.f32 %v16867_v35, %v9800_v61  ;;  %v14625_v63 = vpop.f32.mrb[143].mxu0  ;;  %v13241_v56 = vld [vmem:[%s17338_s2 + $0x140] sm:$0xff] }
 0xf2f   : > { %14655 = vmatmul.mubr.msk.f32.vlgmr.msra.gmra.mrb[148].mxu1 %vm1370_vm2, %v10128_v54  ;;  %v10122_v1 = vadd.f32 %v16954_v14, %v10110_v57 }
 0xf30   : > { %14666 = vmatmul.mubr.msk.f32.vlgmr.msra.gmra.mrb[148].mxu0 %vm1370_vm2, %v10129_v45  ;;  %15170 = vmatpush3.bf16.msra.mxu1 %v16919_v59  ;;  %v9876_v12 = vpop.f32.mrb[144].mxu1  ;;  %v10123_v25 = vadd.f32 %v16954_v14, %v10111_v42  ;;  %v13242_v45 = vld [vmem:[%s17338_s2 + $0x148] sm:$0xff] }
 0xf31   : > { %15176 = vmatpush3.bf16.msra.mxu0 %v16919_v59  ;;  %v9952_v16 = vpop.f32.mrb[144].mxu0  ;;  %v14630_v17 = vpop.f32.mrb[145].mxu1  ;;  %15171 = vmatprep.subr.bf16.mxu1 %v15463_v6  ;;  %v10130_v11 = vmax.f32 %v10122_v1, 0.0  ;;  %v10112_v3 = vmul.f32 %v16880_v10, %v9876_v12 }
 0xf32   : > { %v14635_v9 = vpop.f32.mrb[145].mxu0  ;;  %15177 = vmatprep.subr.bf16.mxu0 %v15463_v6  ;;  %14676 = vmatprep.mubr.msk.f32.mxu1 %vm15464_vm8, %v15462_v18  ;;  %v10131_v40 = vmax.f32 %v10123_v25, 0.0  ;;  %v10113_v20 = vmul.f32 %v16885_v26, %v9952_v16  ;;  %v17070_v25 = vpack.c.bf16 %v13242_v45, %v13241_v56 }
 0xf33   : > { %14687 = vmatprep.mubr.msk.f32.mxu0 %vm15464_vm8, %v15462_v18  ;;  %v10124_v55 = vadd.f32 %v16954_v14, %v10112_v3  ;;  %v13243_v9 = vld [vmem:[%s17338_s2 + $0x150] sm:$0xff]  ;;  %v17103_v3 = vld [vmem:[%s17338_s2 + $0x138] ss:$0 sm:$0xff] }
 0xf34   : > { %15173 = vmatpush3.bf16.msra.mxu1 %v16945_v13  ;;  %v10028_v31 = vpop.f32.mrb[146].mxu1  ;;  %v10125_v29 = vadd.f32 %v16954_v14, %v10113_v20 }
 0xf35   : > { %15179 = vmatpush3.bf16.msra.mxu0 %v16945_v13  ;;  %v10104_v15 = vpop.f32.mrb[146].mxu0  ;;  %v14640_v58 = vpop.f32.mrb[147].mxu1  ;;  %15180 = vmatprep.subr.bf16.mxu1 %v15463_v6  ;;  %v10132_v32 = vmax.f32 %v10124_v55, 0.0  ;;  %v10114_v52 = vmul.f32 %v16904_v4, %v10028_v31  ;;  %v13244_v31 = vld [vmem:[%s17338_s2 + $0x158] sm:$0xff] }
 0xf36   : > { %v14645_v28 = vpop.f32.mrb[147].mxu0  ;;  %15186 = vmatprep.subr.bf16.mxu0 %v15463_v6  ;;  %v10133_v36 = vmax.f32 %v10125_v29, 0.0  ;;  %v10115_v2 = vmul.f32 %v16909_v38, %v10104_v15 }
 0xf37   : > { %14677 = vmatmul.mubr.msk.f32.vlgmr.msra.gmra.mrb[150].mxu1 %vm1370_vm2, %v10130_v11  ;;  %v10126_v19 = vadd.f32 %v16954_v14, %v10114_v52  ;;  %v17094_v11 = vpack.c.bf16 %v13244_v31, %v13243_v9 }
 0xf38   : > { %14688 = vmatmul.mubr.msk.f32.vlgmr.msra.gmra.mrb[150].mxu0 %vm1370_vm2, %v10131_v40  ;;  %15182 = vmatpush3.bf16.msra.mxu1 %v16919_v59  ;;  %v10127_v21 = vadd.f32 %v16954_v14, %v10115_v2 }
 0xf39   : > { %15188 = vmatpush3.bf16.msra.mxu0 %v16919_v59  ;;  %15183 = vmatprep.subr.bf16.mxu1 %v15463_v6  ;;  %v10134_v53 = vmax.f32 %v10126_v19, 0.0 }
 0xf3a   : > { %15189 = vmatprep.subr.bf16.mxu0 %v15463_v6  ;;  %14698 = vmatprep.mubr.msk.f32.mxu1 %vm15464_vm8, %v15462_v18  ;;  %v10135_v39 = vmax.f32 %v10127_v21, 0.0 }
 0xf3b   : > { %14709 = vmatprep.mubr.msk.f32.mxu0 %vm15464_vm8, %v15462_v18 }
 0xf3c   : > { %15185 = vmatpush3.bf16.msra.mxu1 %v16945_v13 }
 0xf3d   : > { %15191 = vmatpush3.bf16.msra.mxu0 %v16945_v13  ;;  %15192 = vmatprep.subr.bf16.mxu1 %v15463_v6 }
 0xf3e   : > { %15198 = vmatprep.subr.bf16.mxu0 %v15463_v6 }
 0xf3f   : > { %14699 = vmatmul.mubr.msk.f32.vlgmr.msra.gmra.mrb[152].mxu1 %vm1370_vm2, %v10132_v32 }
 0xf40   : > { %14710 = vmatmul.mubr.msk.f32.vlgmr.msra.gmra.mrb[152].mxu0 %vm1370_vm2, %v10133_v36  ;;  %15194 = vmatpush3.bf16.msra.mxu1 %v16919_v59 }
 0xf41   : > { %15200 = vmatpush3.bf16.msra.mxu0 %v16919_v59  ;;  %15195 = vmatprep.subr.bf16.mxu1 %v15463_v6 }
 0xf42   : > { %15201 = vmatprep.subr.bf16.mxu0 %v15463_v6  ;;  %14720 = vmatprep.mubr.msk.f32.mxu1 %vm15464_vm8, %v15462_v18 }
 0xf43   : > { %14731 = vmatprep.mubr.msk.f32.mxu0 %vm15464_vm8, %v15462_v18 }
 0xf44   : > { %15197 = vmatpush3.bf16.msra.mxu1 %v16945_v13 }
 0xf45   : > { %15203 = vmatpush3.bf16.msra.mxu0 %v16945_v13  ;;  %14734 = vmatprep.subr.mxu1 %v15462_v18 }
 0xf46   : > { %14739 = vmatprep.subr.mxu0 %v15462_v18 }
 0xf47   : > { %14721 = vmatmul.mubr.msk.f32.vlgmr.msra.gmra.mrb[154].mxu1 %vm1370_vm2, %v10134_v53 }
 0xf48   : > { %14732 = vmatmul.mubr.msk.f32.vlgmr.msra.gmra.mrb[154].mxu0 %vm1370_vm2, %v10135_v39  ;;  %14736 = vmatprep.mubr.msk.f32.mxu1 %vm15464_vm8, %v15462_v18 }
 0xf49   : > { %14741 = vmatprep.mubr.msk.f32.mxu0 %vm15464_vm8, %v15462_v18 }
0x1002   : > { %v10211_v50 = vpop.f32.mrb[148].mxu1 }
0x1003   : > { %v10726_v59 = vmul.f32 %v16855_v47, %v10211_v50  ;;  %v10284_v5 = vpop.f32.mrb[148].mxu0  ;;  %v14656_v7 = vpop.f32.mrb[149].mxu1 }
0x1004   : > { %v10727_v13 = vmul.f32 %v16857_v27, %v10284_v5  ;;  %v14667_v14 = vpop.f32.mrb[149].mxu0 }
0x1005   : > { %14735 = vmatpush3.msk.msra.mxu1 %vm9502_vm1, %v10726_v59 }
0x1006   : > { %14740 = vmatpush3.msk.msra.mxu0 %vm9502_vm1, %v10727_v13  ;;  %14737 = vmatmul.mubr.msk.f32.vlgmr.msra.gmra.mrb[156].mxu1 %vm9498_vm15, %v16802_v23 }
0x1007   : > { %14742 = vmatmul.mubr.msk.f32.vlgmr.msra.gmra.mrb[156].mxu0 %vm9498_vm15, %v16807_v60  ;;  %14744 = vmatprep.subr.mxu1 %v15462_v18 }
0x1008   : > { %14749 = vmatprep.subr.mxu0 %v15462_v18  ;;  %14746 = vmatprep.mubr.msk.f32.mxu1 %vm15464_vm8, %v15462_v18 }
0x1009   : > { %14751 = vmatprep.mubr.msk.f32.mxu0 %vm15464_vm8, %v15462_v18 }
0x100a   : > { %v10357_v8 = vpop.f32.mrb[150].mxu1 }
0x100b   : > { %v10728_v41 = vmul.f32 %v16862_v33, %v10357_v8  ;;  %v10430_v43 = vpop.f32.mrb[150].mxu0  ;;  %v14678_v22 = vpop.f32.mrb[151].mxu1 }
0x100c   : > { %v10729_v44 = vmul.f32 %v16867_v35, %v10430_v43  ;;  %v14689_v48 = vpop.f32.mrb[151].mxu0 }
0x100d   : > { %14745 = vmatpush3.msk.msra.mxu1 %vm9502_vm1, %v10728_v41 }
0x100e   : > { %14750 = vmatpush3.msk.msra.mxu0 %vm9502_vm1, %v10729_v44  ;;  %14747 = vmatmul.mubr.msk.f32.vlgmr.msra.gmra.mrb[158].mxu1 %vm9498_vm15, %v16816_v34 }
0x100f   : > { %14752 = vmatmul.mubr.msk.f32.vlgmr.msra.gmra.mrb[158].mxu0 %vm9498_vm15, %v16821_v37  ;;  %14754 = vmatprep.subr.mxu1 %v15462_v18 }
0x1010   : > { %14759 = vmatprep.subr.mxu0 %v15462_v18  ;;  %14756 = vmatprep.mubr.msk.f32.mxu1 %vm15464_vm8, %v15462_v18 }
0x1011   : > { %14761 = vmatprep.mubr.msk.f32.mxu0 %vm15464_vm8, %v15462_v18 }
0x1012   : > { %v10503_v30 = vpop.f32.mrb[152].mxu1 }
0x1013   : > { %v10730_v49 = vmul.f32 %v16880_v10, %v10503_v30  ;;  %v10576_v51 = vpop.f32.mrb[152].mxu0  ;;  %v14700_v54 = vpop.f32.mrb[153].mxu1 }
0x1014   : > { %v10731_v57 = vmul.f32 %v16885_v26, %v10576_v51  ;;  %v14711_v61 = vpop.f32.mrb[153].mxu0 }
0x1015   : > { %14755 = vmatpush3.msk.msra.mxu1 %vm9502_vm1, %v10730_v49 }
0x1016   : > { %14760 = vmatpush3.msk.msra.mxu0 %vm9502_vm1, %v10731_v57  ;;  %14757 = vmatmul.mubr.msk.f32.vlgmr.msra.gmra.mrb[160].mxu1 %vm9498_vm15, %v16830_v0 }
0x1017   : > { %14762 = vmatmul.mubr.msk.f32.vlgmr.msra.gmra.mrb[160].mxu0 %vm9498_vm15, %v16835_v62  ;;  %14764 = vmatprep.subr.mxu1 %v15462_v18 }
0x1018   : > { %14769 = vmatprep.subr.mxu0 %v15462_v18  ;;  %14766 = vmatprep.mubr.msk.f32.mxu1 %vm15464_vm8, %v15462_v18 }
0x1019   : > { %14771 = vmatprep.mubr.msk.f32.mxu0 %vm15464_vm8, %v15462_v18 }
0x101a   : > { %v10649_v42 = vpop.f32.mrb[154].mxu1 }
0x101b   : > { %v10732_v63 = vmul.f32 %v16904_v4, %v10649_v42  ;;  %v10722_v12 = vpop.f32.mrb[154].mxu0  ;;  %v14722_v1 = vpop.f32.mrb[155].mxu1 }
0x101c   : > { %v10733_v16 = vmul.f32 %v16909_v38, %v10722_v12  ;;  %v14733_v17 = vpop.f32.mrb[155].mxu0 }
0x101d   : > { %14765 = vmatpush3.msk.msra.mxu1 %vm9502_vm1, %v10732_v63 }
0x101e   : > { %14770 = vmatpush3.msk.msra.mxu0 %vm9502_vm1, %v10733_v16  ;;  %14767 = vmatmul.mubr.msk.f32.vlgmr.msra.gmra.mrb[162].mxu1 %vm9498_vm15, %v16844_v24 }
0x101f   : > { %14772 = vmatmul.mubr.msk.f32.vlgmr.msra.gmra.mrb[162].mxu0 %vm9498_vm15, %v16849_v46  ;;  %15204 = vmatprep.subr.bf16.mxu1 %v15463_v6 }
0x1020   : > { %15210 = vmatprep.subr.bf16.mxu0 %v15463_v6  ;;  %15206 = vmatpush3.bf16.msra.mxu1 %v17070_v25 }
0x1021   : > { %15212 = vmatpush3.bf16.msra.mxu0 %v17070_v25  ;;  %15207 = vmatprep.subr.bf16.mxu1 %v15463_v6 }
0x1022   : > { %15213 = vmatprep.subr.bf16.mxu0 %v15463_v6  ;;  %14782 = vmatprep.mubr.msk.f32.mxu1 %vm15464_vm8, %v15462_v18 }
0x1023   : > { %14793 = vmatprep.mubr.msk.f32.mxu0 %vm15464_vm8, %v15462_v18 }
0x1024   : > { %15209 = vmatpush3.bf16.msra.mxu1 %v17094_v11 }
0x1025   : > { %15215 = vmatpush3.bf16.msra.mxu0 %v17094_v11  ;;  %15216 = vmatprep.subr.bf16.mxu1 %v15463_v6 }
0x1026   : > { %15222 = vmatprep.subr.bf16.mxu0 %v15463_v6 }
0x10d9   : > { %v10803_v15 = vpop.f32.mrb[156].mxu1 }
0x10da   : > { %v11318_v58 = vmul.f32 %v16855_v47, %v10803_v15  ;;  %v10876_v40 = vpop.f32.mrb[156].mxu0  ;;  %v14738_v20 = vpop.f32.mrb[157].mxu1 }
0x10db   : > { %v11319_v28 = vmul.f32 %v16857_v27, %v10876_v40  ;;  %v14743_v55 = vpop.f32.mrb[157].mxu0 }
0x10dc   : > { %v11330_v29 = vadd.f32 %v17103_v3, %v11318_v58 }
0x10dd   : > { %v11331_v32 = vadd.f32 %v17103_v3, %v11319_v28 }
0x10de   : > { %v11338_v52 = vmax.f32 %v11330_v29, 0.0 }
0x10df   : > { %v11339_v36 = vmax.f32 %v11331_v32, 0.0 }
0x10e0   : > { %14783 = vmatmul.mubr.msk.f32.vlgmr.msra.gmra.mrb[164].mxu1 %vm1370_vm2, %v11338_v52 }
0x10e1   : > { %v10949_v2 = vpop.f32.mrb[158].mxu1  ;;  %14794 = vmatmul.mubr.msk.f32.vlgmr.msra.gmra.mrb[164].mxu0 %vm1370_vm2, %v11339_v36  ;;  %15218 = vmatpush3.bf16.msra.mxu1 %v17070_v25 }
0x10e2   : > { %v11320_v19 = vmul.f32 %v16862_v33, %v10949_v2  ;;  %v11022_v21 = vpop.f32.mrb[158].mxu0  ;;  %15224 = vmatpush3.bf16.msra.mxu0 %v17070_v25  ;;  %v14748_v53 = vpop.f32.mrb[159].mxu1  ;;  %15219 = vmatprep.subr.bf16.mxu1 %v15463_v6 }
0x10e3   : > { %v11321_v39 = vmul.f32 %v16867_v35, %v11022_v21  ;;  %v14753_v50 = vpop.f32.mrb[159].mxu0  ;;  %15225 = vmatprep.subr.bf16.mxu0 %v15463_v6  ;;  %14804 = vmatprep.mubr.msk.f32.mxu1 %vm15464_vm8, %v15462_v18 }
0x10e4   : > { %v11332_v59 = vadd.f32 %v17103_v3, %v11320_v19  ;;  %14815 = vmatprep.mubr.msk.f32.mxu0 %vm15464_vm8, %v15462_v18  ;;  %v12627_v50 = vld [vmem:[%s17341_s5 + $0x28] sm:$0xff] }
0x10e5   : > { %v11333_v5 = vadd.f32 %v17103_v3, %v11321_v39  ;;  %15221 = vmatpush3.bf16.msra.mxu1 %v17094_v11 }
0x10e6   : > { %v11340_v7 = vmax.f32 %v11332_v59, 0.0  ;;  %15227 = vmatpush3.bf16.msra.mxu0 %v17094_v11  ;;  %15228 = vmatprep.subr.bf16.mxu1 %v15463_v6  ;;  %v12628_v59 = vld [vmem:[%s17341_s5 + $0x30] sm:$0xff] }
0x10e7   : > { %v11341_v13 = vmax.f32 %v11333_v5, 0.0  ;;  %15234 = vmatprep.subr.bf16.mxu0 %v15463_v6  ;;  %v15259_v5 = vpack.c.bf16 %v12628_v59, %v12627_v50 }
0x10e8   : > { %14805 = vmatmul.mubr.msk.f32.vlgmr.msra.gmra.mrb[166].mxu1 %vm1370_vm2, %v11340_v7  ;;  %v17248_v7 = vld [vmem:[%s17338_s2 + $0x160] ss:$0 sm:$0xff] }
0x10e9   : > { %14816 = vmatmul.mubr.msk.f32.vlgmr.msra.gmra.mrb[166].mxu0 %vm1370_vm2, %v11341_v13  ;;  %v11095_v14 = vpop.f32.mrb[160].mxu1  ;;  %15230 = vmatpush3.bf16.msra.mxu1 %v17070_v25 }
0x10ea   : > { %v11322_v8 = vmul.f32 %v16880_v10, %v11095_v14  ;;  %v11168_v41 = vpop.f32.mrb[160].mxu0  ;;  %15236 = vmatpush3.bf16.msra.mxu0 %v17070_v25  ;;  %v14758_v43 = vpop.f32.mrb[161].mxu1  ;;  %15231 = vmatprep.subr.bf16.mxu1 %v15463_v6 }
0x10eb   : > { %v11323_v22 = vmul.f32 %v16885_v26, %v11168_v41  ;;  %v14763_v44 = vpop.f32.mrb[161].mxu0  ;;  %15237 = vmatprep.subr.bf16.mxu0 %v15463_v6  ;;  %14826 = vmatprep.mubr.msk.f32.mxu1 %vm15464_vm8, %v15462_v18 }
0x10ec   : > { %v11334_v48 = vadd.f32 %v17103_v3, %v11322_v8  ;;  %14837 = vmatprep.mubr.msk.f32.mxu0 %vm15464_vm8, %v15462_v18 }
0x10ed   : > { %v11335_v30 = vadd.f32 %v17103_v3, %v11323_v22  ;;  %15233 = vmatpush3.bf16.msra.mxu1 %v17094_v11 }
0x10ee   : > { %v11342_v49 = vmax.f32 %v11334_v48, 0.0  ;;  %15239 = vmatpush3.bf16.msra.mxu0 %v17094_v11  ;;  %15240 = vmatprep.subr.bf16.mxu1 %v15463_v6 }
0x10ef   : > { %v11343_v51 = vmax.f32 %v11335_v30, 0.0  ;;  %15246 = vmatprep.subr.bf16.mxu0 %v15463_v6 }
0x10f0   : > { %14827 = vmatmul.mubr.msk.f32.vlgmr.msra.gmra.mrb[168].mxu1 %vm1370_vm2, %v11342_v49 }
0x10f1   : > { %14838 = vmatmul.mubr.msk.f32.vlgmr.msra.gmra.mrb[168].mxu0 %vm1370_vm2, %v11343_v51  ;;  %v11241_v54 = vpop.f32.mrb[162].mxu1  ;;  %15242 = vmatpush3.bf16.msra.mxu1 %v17070_v25 }
0x10f2   : > { %v11324_v57 = vmul.f32 %v16904_v4, %v11241_v54  ;;  %v11314_v61 = vpop.f32.mrb[162].mxu0  ;;  %15248 = vmatpush3.bf16.msra.mxu0 %v17070_v25  ;;  %v14768_v56 = vpop.f32.mrb[163].mxu1  ;;  %15243 = vmatprep.subr.bf16.mxu1 %v15463_v6 }
0x10f3   : > { %v11325_v45 = vmul.f32 %v16909_v38, %v11314_v61  ;;  %v14773_v42 = vpop.f32.mrb[163].mxu0  ;;  %15249 = vmatprep.subr.bf16.mxu0 %v15463_v6  ;;  %14848 = vmatprep.mubr.msk.f32.mxu1 %vm15464_vm8, %v15462_v18 }
0x10f4   : > { %v11336_v63 = vadd.f32 %v17103_v3, %v11324_v57  ;;  %14859 = vmatprep.mubr.msk.f32.mxu0 %vm15464_vm8, %v15462_v18 }
0x10f5   : > { %v11337_v12 = vadd.f32 %v17103_v3, %v11325_v45  ;;  %15245 = vmatpush3.bf16.msra.mxu1 %v17094_v11 }
0x10f6   : > { %v11344_v1 = vmax.f32 %v11336_v63, 0.0  ;;  %15251 = vmatpush3.bf16.msra.mxu0 %v17094_v11  ;;  %14862 = vmatprep.subr.mxu1 %v15462_v18 }
0x10f7   : > { %v11345_v16 = vmax.f32 %v11337_v12, 0.0  ;;  %14867 = vmatprep.subr.mxu0 %v15462_v18 }
0x10f8   : > { %14849 = vmatmul.mubr.msk.f32.vlgmr.msra.gmra.mrb[170].mxu1 %vm1370_vm2, %v11344_v1 }
0x10f9   : > { %14860 = vmatmul.mubr.msk.f32.vlgmr.msra.gmra.mrb[170].mxu0 %vm1370_vm2, %v11345_v16  ;;  %14864 = vmatprep.mubr.msk.f32.mxu1 %vm15464_vm8, %v15462_v18 }
0x10fa   : > { %14869 = vmatprep.mubr.msk.f32.mxu0 %vm15464_vm8, %v15462_v18 }
0x11b3   : > { %v11421_v17 = vpop.f32.mrb[164].mxu1 }
0x11b4   : > { %v11936_v25 = vmul.f32 %v16855_v47, %v11421_v17  ;;  %v11494_v9 = vpop.f32.mrb[164].mxu0  ;;  %v14784_v31 = vpop.f32.mrb[165].mxu1 }
0x11b5   : > { %v11937_v11 = vmul.f32 %v16857_v27, %v11494_v9  ;;  %v14795_v3 = vpop.f32.mrb[165].mxu0 }
0x11b6   : > { %14863 = vmatpush3.msk.msra.mxu1 %vm9502_vm1, %v11936_v25 }
0x11b7   : > { %14868 = vmatpush3.msk.msra.mxu0 %vm9502_vm1, %v11937_v11  ;;  %14865 = vmatmul.mubr.msk.f32.vlgmr.msra.gmra.mrb[172].mxu1 %vm9498_vm15, %v16802_v23 }
0x11b8   : > { %14870 = vmatmul.mubr.msk.f32.vlgmr.msra.gmra.mrb[172].mxu0 %vm9498_vm15, %v16807_v60  ;;  %14872 = vmatprep.subr.mxu1 %v15462_v18 }
0x11b9   : > { %14877 = vmatprep.subr.mxu0 %v15462_v18  ;;  %14874 = vmatprep.mubr.msk.f32.mxu1 %vm15464_vm8, %v15462_v18 }
0x11ba   : > { %14879 = vmatprep.mubr.msk.f32.mxu0 %vm15464_vm8, %v15462_v18 }
0x11bb   : > { %v11567_v15 = vpop.f32.mrb[166].mxu1 }
0x11bc   : > { %v11938_v58 = vmul.f32 %v16862_v33, %v11567_v15  ;;  %v11640_v40 = vpop.f32.mrb[166].mxu0  ;;  %v14806_v20 = vpop.f32.mrb[167].mxu1 }
0x11bd   : > { %v11939_v23 = vmul.f32 %v16867_v35, %v11640_v40  ;;  %v14817_v28 = vpop.f32.mrb[167].mxu0 }
0x11be   : > { %14873 = vmatpush3.msk.msra.mxu1 %vm9502_vm1, %v11938_v58 }
0x11bf   : > { %14878 = vmatpush3.msk.msra.mxu0 %vm9502_vm1, %v11939_v23  ;;  %14875 = vmatmul.mubr.msk.f32.vlgmr.msra.gmra.mrb[174].mxu1 %vm9498_vm15, %v16816_v34 }
0x11c0   : > { %14880 = vmatmul.mubr.msk.f32.vlgmr.msra.gmra.mrb[174].mxu0 %vm9498_vm15, %v16821_v37  ;;  %14882 = vmatprep.subr.mxu1 %v15462_v18 }
0x11c1   : > { %14887 = vmatprep.subr.mxu0 %v15462_v18  ;;  %14884 = vmatprep.mubr.msk.f32.mxu1 %vm15464_vm8, %v15462_v18 }
0x11c2   : > { %14889 = vmatprep.mubr.msk.f32.mxu0 %vm15464_vm8, %v15462_v18 }
0x11c3   : > { %v11713_v60 = vpop.f32.mrb[168].mxu1 }
0x11c4   : > { %v11940_v55 = vmul.f32 %v16880_v10, %v11713_v60  ;;  %v11786_v29 = vpop.f32.mrb[168].mxu0  ;;  %v14828_v32 = vpop.f32.mrb[169].mxu1 }
0x11c5   : > { %v11941_v34 = vmul.f32 %v16885_v26, %v11786_v29  ;;  %v14839_v52 = vpop.f32.mrb[169].mxu0 }
0x11c6   : > { %14883 = vmatpush3.msk.msra.mxu1 %vm9502_vm1, %v11940_v55 }
0x11c7   : > { %14888 = vmatpush3.msk.msra.mxu0 %vm9502_vm1, %v11941_v34  ;;  %14885 = vmatmul.mubr.msk.f32.vlgmr.msra.gmra.mrb[176].mxu1 %vm9498_vm15, %v16830_v0 }
0x11c8   : > { %14890 = vmatmul.mubr.msk.f32.vlgmr.msra.gmra.mrb[176].mxu0 %vm9498_vm15, %v16835_v62  ;;  %14892 = vmatprep.subr.mxu1 %v15462_v18  ;;  %v12622_v62 = vld [vmem:[%s17341_s5] sm:$0xff] }
0x11c9   : > { %14897 = vmatprep.subr.mxu0 %v15462_v18  ;;  %14894 = vmatprep.mubr.msk.f32.mxu1 %vm15464_vm8, %v15462_v18 }
0x11ca   : > { %14899 = vmatprep.mubr.msk.f32.mxu0 %vm15464_vm8, %v15462_v18 }
0x11cb   : > { %v11859_v37 = vpop.f32.mrb[170].mxu1 }
0x11cc   : > { %v11942_v36 = vmul.f32 %v16904_v4, %v11859_v37  ;;  %v11932_v2 = vpop.f32.mrb[170].mxu0  ;;  %v14850_v19 = vpop.f32.mrb[171].mxu1 }
0x11cd   : > { %v11943_v0 = vmul.f32 %v16909_v38, %v11932_v2  ;;  %v14861_v21 = vpop.f32.mrb[171].mxu0 }
0x11ce   : > { %14893 = vmatpush3.msk.msra.mxu1 %vm9502_vm1, %v11942_v36 }
0x11cf   : > { %14898 = vmatpush3.msk.msra.mxu0 %vm9502_vm1, %v11943_v0  ;;  %14895 = vmatmul.mubr.msk.f32.vlgmr.msra.gmra.mrb[178].mxu1 %vm9498_vm15, %v16844_v24  ;;  %v12623_v24 = vld [vmem:[%s17341_s5 + $0x8] sm:$0xff] }
0x11d0   : > { %14900 = vmatmul.mubr.msk.f32.vlgmr.msra.gmra.mrb[178].mxu0 %vm9498_vm15, %v16849_v46  ;;  %15252 = vmatprep.subr.bf16.mxu1 %v15463_v6  ;;  %v15253_v53 = vpack.c.bf16 %v12623_v24, %v12622_v62  ;;  %v12624_v46 = vld [vmem:[%s17341_s5 + $0x10] sm:$0xff] }
0x11d1   : > { %14910 = vmatprep.mubr.msk.f32.mxu1 %vm15464_vm8, %v15462_v18  ;;  %15258 = vmatprep.subr.bf16.mxu0 %v15463_v6 }
0x11d2   : > { %14921 = vmatprep.mubr.msk.f32.mxu0 %vm15464_vm8, %v15462_v18  ;;  %15254 = vmatpush3.bf16.msra.mxu1 %v15253_v53  ;;  %v12625_v18 = vld [vmem:[%s17341_s5 + $0x18] sm:$0xff]  ;;  %vm12556_vm8 = vcmask 257024  }
0x11d3   : > { %15255 = vmatprep.subr.bf16.mxu1 %v15463_v6  ;;  %v15256_v39 = vpack.c.bf16 %v12625_v18, %v12624_v46  ;;  %15260 = vmatpush3.bf16.msra.mxu0 %v15259_v5 }
0x11d4   : > { %15261 = vmatprep.subr.bf16.mxu0 %v15463_v6 }
0x11d6   : > { %15257 = vmatpush3.bf16.msra.mxu1 %v15256_v39 }
0x128a   : > { %v12013_v13 = vpop.f32.mrb[172].mxu1 }
0x128b   : > { %v12528_v14 = vmul.f32 %v16855_v47, %v12013_v13  ;;  %v12086_v8 = vpop.f32.mrb[172].mxu0  ;;  %v14866_v41 = vpop.f32.mrb[173].mxu1 }
0x128c   : > { %v12529_v43 = vmul.f32 %v16857_v27, %v12086_v8  ;;  %v14871_v22 = vpop.f32.mrb[173].mxu0 }
0x128d   : > { %v12540_v44 = vadd.f32 %v17248_v7, %v12528_v14 }
0x128e   : > { %v12541_v48 = vadd.f32 %v17248_v7, %v12529_v43 }
0x128f   : > { %v12548_v30 = vmax.f32 %v12540_v44, 0.0 }
0x1290   : > { %v12549_v6 = vmax.f32 %v12541_v48, 0.0 }
0x1291   : > { %v12557_v49 = vsel %vm12556_vm8, %v12548_v30, 0.0 }
0x1292   : > { %v12558_v51 = vrot.slane %v12557_v49, 4  ;;  %v12564_v54 = vsel %vm12556_vm8, %v12549_v6, 0.0  ;;  %v12159_v57 = vpop.f32.mrb[174].mxu1 }
0x1293   : > { %v12565_v61 = vrot.slane %v12564_v54, 4  ;;  %v12530_v47 = vmul.f32 %v16862_v33, %v12159_v57  ;;  %v12232_v56 = vpop.f32.mrb[174].mxu0  ;;  %v14876_v45 = vpop.f32.mrb[175].mxu1 }
0x1294   : > { %v12559_v27 = vadd.f32 %v12558_v51, %v12557_v49  ;;  %v12531_v42 = vmul.f32 %v16867_v35, %v12232_v56  ;;  %v14881_v63 = vpop.f32.mrb[175].mxu0 }
0x1295   : > { %v12566_v12 = vadd.f32 %v12565_v61, %v12564_v54  ;;  %v12542_v1 = vadd.f32 %v17248_v7, %v12530_v47 }
0x1296   : > { %v12560_v16 = vrot.slane %v12559_v27, 2  ;;  %v12543_v17 = vadd.f32 %v17248_v7, %v12531_v42 }
0x1297   : > { %v12567_v25 = vrot.slane %v12566_v12, 2  ;;  %v12550_v9 = vmax.f32 %v12542_v1, 0.0 }
0x1298   : > { %v12561_v31 = vadd.f32 %v12560_v16, %v12559_v27  ;;  %v12551_v11 = vmax.f32 %v12543_v17, 0.0 }
0x1299   : > { %v12568_v3 = vadd.f32 %v12567_v25, %v12566_v12  ;;  %v12571_v15 = vsel %vm12556_vm8, %v12550_v9, 0.0 }
0x129a   : > { %v12562_v33 = vrot.slane %v12561_v31, 1  ;;  %v12572_v58 = vrot.slane %v12571_v15, 4  ;;  %v12578_v40 = vsel %vm12556_vm8, %v12551_v11, 0.0  ;;  %v12305_v20 = vpop.f32.mrb[176].mxu1 }
0x129b   : > { %v12569_v35 = vrot.slane %v12568_v3, 1  ;;  %v12579_v23 = vrot.slane %v12578_v40, 4  ;;  %v12532_v28 = vmul.f32 %v16880_v10, %v12305_v20  ;;  %v12378_v60 = vpop.f32.mrb[176].mxu0  ;;  %v14886_v55 = vpop.f32.mrb[177].mxu1 }
0x129c   : > { %v12563_v29 = vadd.f32 %v12562_v33, %v12561_v31  ;;  %v12573_v32 = vadd.f32 %v12572_v58, %v12571_v15  ;;  %v12533_v34 = vmul.f32 %v16885_v26, %v12378_v60  ;;  %v14891_v52 = vpop.f32.mrb[177].mxu0 }
0x129d   : > { %v12570_v37 = vadd.f32 %v12569_v35, %v12568_v3  ;;  %v12580_v36 = vadd.f32 %v12579_v23, %v12578_v40  ;;  %v12544_v2 = vadd.f32 %v17248_v7, %v12532_v28 }
0x129e   : > { %v12614_v19 = vmul.f32 0.25, %v12563_v29  ;;  %v12574_v0 = vrot.slane %v12573_v32, 2  ;;  %v12545_v21 = vadd.f32 %v17248_v7, %v12533_v34 }
0x129f   : > { %v12615_v62 = vmul.f32 0.25, %v12570_v37  ;;  %v12581_v24 = vrot.slane %v12580_v36, 2  ;;  %v12552_v53 = vmax.f32 %v12544_v2, 0.0 }
0x12a0   : > { %v12575_v10 = vadd.f32 %v12574_v0, %v12573_v32  ;;  %v12553_v46 = vmax.f32 %v12545_v21, 0.0  ;;  %v12630_v0 = vld [vmem:[%s17341_s5 + $0x40] sm:$0xff] }
0x12a1   : > { %v12645_v18 = vsel %vm12644_vm3, %v12615_v62, %v12614_v19  ;;  %v12582_v39 = vadd.f32 %v12581_v24, %v12580_v36  ;;  %v12585_v50 = vsel %vm12556_vm8, %v12552_v53, 0.0  ;;  %v12629_v19 = vld [vmem:[%s17341_s5 + $0x38] sm:$0xff]  ;;  %v13271_v62 = vld [vmem:[%s17341_s5 + $0x20] ss:$0 sm:$0xff] }
0x12a2   : > { %v12576_v26 = vrot.slane %v12575_v10, 1  ;;  %v12586_v59 = vrot.slane %v12585_v50, 4  ;;  %v12592_v5 = vsel %vm12556_vm8, %v12553_v46, 0.0  ;;  %v12451_v13 = vpop.f32.mrb[178].mxu1  ;;  %v15262_v21 = vpack.c.bf16 %v12630_v0, %v12629_v19 }
0x12a3   : > { %v12583_v14 = vrot.slane %v12582_v39, 1  ;;  %v12593_v8 = vrot.slane %v12592_v5, 4  ;;  %v12534_v41 = vmul.f32 %v16904_v4, %v12451_v13  ;;  %v12524_v43 = vpop.f32.mrb[178].mxu0  ;;  %v14896_v22 = vpop.f32.mrb[179].mxu1 }
0x12a4   : > { %v12577_v44 = vadd.f32 %v12576_v26, %v12575_v10  ;;  %v12587_v48 = vadd.f32 %v12586_v59, %v12585_v50  ;;  %v12535_v30 = vmul.f32 %v16909_v38, %v12524_v43  ;;  %v14901_v6 = vpop.f32.mrb[179].mxu0  ;;  %15263 = vmatpush3.bf16.msra.mxu0 %v15262_v21 }
0x12a5   : > { %v12584_v49 = vadd.f32 %v12583_v14, %v12582_v39  ;;  %v12594_v51 = vadd.f32 %v12593_v8, %v12592_v5  ;;  %v12546_v54 = vadd.f32 %v17248_v7, %v12534_v41 }
0x12a6   : > { %v12616_v57 = vmul.f32 0.25, %v12577_v44  ;;  %v12588_v61 = vrot.slane %v12587_v48, 2  ;;  %v12547_v47 = vadd.f32 %v17248_v7, %v12535_v30 }
0x12a7   : > { %v12617_v56 = vmul.f32 0.25, %v12584_v49  ;;  %v12595_v45 = vrot.slane %v12594_v51, 2  ;;  %v12554_v4 = vmax.f32 %v12546_v54, 0.0 }
0x12a8   : > { %v12647_v27 = vsel %vm12646_vm5, %v12616_v57, %v12645_v18  ;;  %v12589_v42 = vadd.f32 %v12588_v61, %v12587_v48  ;;  %v12555_v63 = vmax.f32 %v12547_v47, 0.0  ;;  %v13273_v18 = vld [vmem:[%s17341_s5 + $0x48] ss:$0 sm:$0xff] }
0x12a9   : > { %v12596_v12 = vadd.f32 %v12595_v45, %v12594_v51  ;;  %v12599_v38 = vsel %vm12556_vm8, %v12554_v4, 0.0  ;;  %v12649_v1 = vsel %vm12648_vm0, %v12617_v56, %v12647_v27 }
0x12aa   : > { %v12590_v16 = vrot.slane %v12589_v42, 1  ;;  %v12600_v17 = vrot.slane %v12599_v38, 4  ;;  %v12606_v25 = vsel %vm12556_vm8, %v12555_v63, 0.0 }
0x12ab   : > { %v12597_v9 = vrot.slane %v12596_v12, 1  ;;  %v12607_v31 = vrot.slane %v12606_v25, 4 }
0x12ac   : > { %v12591_v11 = vadd.f32 %v12590_v16, %v12589_v42  ;;  %v12601_v3 = vadd.f32 %v12600_v17, %v12599_v38 }
0x12ad   : > { %v12598_v7 = vadd.f32 %v12597_v9, %v12596_v12  ;;  %v12608_v15 = vadd.f32 %v12607_v31, %v12606_v25 }
0x12ae   : > { %v12618_v33 = vmul.f32 0.25, %v12591_v11  ;;  %v12602_v58 = vrot.slane %v12601_v3, 2 }
0x12af   : > { %v12619_v40 = vmul.f32 0.25, %v12598_v7  ;;  %v12609_v20 = vrot.slane %v12608_v15, 2 }
0x12b0   : > { %v12603_v35 = vadd.f32 %v12602_v58, %v12601_v3  ;;  %v12651_v23 = vsel %vm12650_vm6, %v12618_v33, %v12649_v1 }
0x12b1   : > { %v12610_v28 = vadd.f32 %v12609_v20, %v12608_v15  ;;  %v12653_v60 = vsel %vm12652_vm7, %v12619_v40, %v12651_v23 }
0x12b2   : > { %v12604_v55 = vrot.slane %v12603_v35, 1 }
0x12b3   : > { %v12611_v29 = vrot.slane %v12610_v28, 1 }
0x12b4   : > { %v12605_v32 = vadd.f32 %v12604_v55, %v12603_v35 }
0x12b5   : > { %v12612_v34 = vadd.f32 %v12611_v29, %v12610_v28 }
0x12b6   : > { %v12620_v52 = vmul.f32 0.25, %v12605_v32 }
0x12b7   : > { %v12621_v37 = vmul.f32 0.25, %v12612_v34 }
0x12b8   : > { %v12655_v36 = vsel %vm12654_vm9, %v12620_v52, %v12653_v60 }
0x12b9   : > { %v12657_v2 = vsel %vm12656_vm10, %v12621_v37, %v12655_v36 }
0x12ba   : > { %14911 = vmatmul.mubr.msk.f32.vlgmr.msra.gmra.mrb[180].mxu1 %vm1370_vm2, %v12657_v2 }
0x138d   : > { %v12726_v24 = vpop.f32.mrb[180].mxu1 }
0x138e   : > { %v12727_v53 = vadd.f32 %v13271_v62, %v12726_v24  ;;  %v14912_v10 = vpop.f32.mrb[181].mxu1 }
0x1390   : > { %v12730_v46 = vmax.f32 %v12727_v53, 0.0 }
0x1392   : > { %14922 = vmatmul.mubr.msk.f32.vlgmr.msra.gmra.mrb[180].mxu0 %vm1370_vm2, %v12730_v46 }
0x1465   : > { %v12804_v39 = vpop.f32.mrb[180].mxu0 }
0x1466   : > { %v12805_v50 = vadd.f32 %v13273_v18, %v12804_v39  ;;  %v14923_v26 = vpop.f32.mrb[181].mxu0 }
0x1468   : > { %v12808_v59 = vsub.f32 0.0, %v12805_v50 }
0x146a   : > { %v12809_v5 = vmul.f32 1.442695, %v12808_v59 }
0x146c   : > { %15378 = vpow2.f32 %v12809_v5 }
0x1476   : > { %v15379_v13 = vpop.eup %15378 }
0x1477   : > { %v12811_v14 = vadd.f32 1.0, %v15379_v13 }
0x1479   : > { %15380 = vrcp.f32 %v12811_v14 }
0x1483   : > { %v15381_v8 = vpop.eup %15380 }
0x1484   : > { %12813 = vst.msk [vmem:[%s265_s9] sm:$0xff] %vm371_vm4, %v15381_v8 }
0x1485   : > { %15411 = shalt.err (!%p15408_p3)
}
0x1486   : > { %s15412_s17 = scalar_lea.hbm %s17293_s13, 128  ;;  %s15416_s26 = scalar_lea.hbm %s17342_s6, 256 }
0x1487   : > { %p15413_p4 = scmp.ne.s32.totalorder %s17293_s13, %s15412_s17  ;;  %p15417_p9 = scmp.lt.u32.totalorder %s17293_s13, %s17342_s6 }
0x1488   : > { %p15418_p10 = scmp.lt.u32.totalorder %s15416_s26, %s15412_s17  ;;  %p15420_p12 = scmp.lt.u32.totalorder %s15412_s17, %s17293_s13 }
0x1489   : > { %p15414_p7 = pnand %p15413_p4, %p15539_p5 }
0x148a   : > { %p15419_p11 = por %p15418_p10, %p15417_p9 }
0x148b   : > { %p15415_p8 = pneg %p15414_p7 }
0x148c   : > { %p15421_p13 = por %p15420_p12, %p15419_p11 }
0x148e   : > { %p15422_p0 = pnand %p15421_p13, %p15415_p8 }
0x1490   : > { %15425 = shalt.err (!%p15422_p0)
}
0x1491   : > { %15264 = dma.vmem_to_hbm [thread:$0]  (%p15539_p5), %s17295_s10, 128, %s17293_s13, %s12815_s18  }
0x1492 PF: > { %p15270_p1 = scmp.ge.s32.totalorder %s15460_s24, 2  ;;  %s12840_s9 = sand.u32 1, %s15448_s21  }
0x1493   : > { %s12841_s11 = scalar_lea.sflag [#allocation3], %s12840_s9 }
0x1494   : > { %p15267_p2 = pnand %p15270_p1, %p15543_p6 }
0x1496   : > { %15443 = dma.done.wait (!%p15267_p2), %s12841_s11, 128  }
0x1497   : > { %15445 = vsyncadd (!%p15267_p2), %s12841_s11, 4294967168  ;;  %p16_p3 = scmp.ge.s32.totalorder %s15526_s27, 4   ;;  %s17349_s21 = smov %s15452_s22 }
0x1498   : > { %s17350_s22 = smov %s15456_s23  ;;  %s17351_s23 = smov %s15537_s30 }
0x1499   : > { %s17352_s24 = smov %s15526_s27  ;;  %18 = sbr.rel (!%p16_p3) target bundleno = 3 (0x3), region = 90 }
0x14a0   :  { %12846 = vsyncpa [#allocation3], 1 }
0x14a1   :  { %12848 = vsyncpa [#allocation3 + $0x1], 1 }

</bundles_post_ra>
